<compile_context>
chip_gen: v7x
topology: tpu7x:2x2x1
jax: 0.10.0
libtpu: 0.0.40
codegen_flags: <defaults>
</compile_context>

<pallas_src>
import jax
import jax.numpy as jnp
from jax import lax
from jax.experimental import pallas as pl
from jax.experimental.pallas import tpu as pltpu


def _round_up(x, m):
    return (x + m - 1) // m * m


# ---------------------------------------------------------------------------
# Fused conv kernel: ONE matmul (im2col x fused 3x3 weights) + bias, then a
# fully vectorized ReLU + 2x2/stride-2 max-pool epilogue, for `bt` images per
# grid step.
#
# im2col row order: r = img*(H*W) + a*W + b  (one row per conv-output pixel),
# so the whole block is one (bt*H*W, K) matmul with no garbage rows.
# Pooling:
#   pass 1 (columns): row pitch W is even, so a global stride-2 split of the
#     accumulator pairs columns (2j, 2j+1) of every conv row at once.
#   pass 2 (rows): the column-max block is written into a 3-D scratch
#     (bt*H/2, W, C) -- each major index holds one conv-row PAIR -- so the
#     row-pair max is two static slices, and the pooled block is stored once.
# ---------------------------------------------------------------------------
def _make_conv_pool_kernel(Himg, Wimg, Cout, bt):
    M_img = Himg * Wimg
    M_tot = bt * M_img           # conv output rows in this block
    Mh = M_tot // 2              # rows after the column-pair max
    Ho, Wo = Himg // 2, Wimg // 2
    G = bt * Ho                  # pooled-row groups in this block

    def kernel(x_ref, w_ref, b_ref, o_ref, acc_ref, hmax_ref):
        # x_ref:    (M_tot, K)       bf16  im2col rows
        # w_ref:    (K, Cout)        bf16  fused 3x3 weights
        # b_ref:    (1, Cout)        f32
        # o_ref:    (G*Wo, Cout)     bf16  pooled output, (img, i, j) row order
        # acc_ref:  (M_tot, Cout)    f32   conv accumulator
        # hmax_ref: (G, 2*Wo, Cout)  f32   column-pair maxima (2*Wo == Wimg)
        acc_ref[...] = (jnp.dot(x_ref[...], w_ref[...],
                                preferred_element_type=jnp.float32)
                        + b_ref[...])

        # pass 1: column-pair max over the whole block (2 strided loads)
        ca = acc_ref[pl.ds(0, Mh, stride=2), :]
        cb = acc_ref[pl.ds(1, Mh, stride=2), :]
        hmax_ref[...] = jnp.maximum(ca, cb).reshape(G, 2 * Wo, Cout)

        # pass 2: row-pair max + ReLU, single store of the pooled block
        top = hmax_ref[:, 0:Wo, :]           # conv rows 2i
        bot = hmax_ref[:, Wo:2 * Wo, :]      # conv rows 2i+1
        pooled = jnp.maximum(jnp.maximum(top, bot), 0.0)
        o_ref[...] = pooled.reshape(G * Wo, Cout).astype(o_ref.dtype)

    return kernel


def conv3x3_bias_relu_pool(x_cols, w, b, *, Himg, Wimg, Cout, bt):
    """x_cols: (Bpad*Himg*Wimg, K) bf16 im2col rows.
    Returns (Bpad*(Himg//2)*(Wimg//2), Cout) bf16 in (img, i, j) row order."""
    M_img = Himg * Wimg
    rows, K = x_cols.shape
    Bpad = rows // M_img
    assert Bpad % bt == 0
    Ho, Wo = Himg // 2, Wimg // 2
    kernel = _make_conv_pool_kernel(Himg, Wimg, Cout, bt)
    return pl.pallas_call(
        kernel,
        out_shape=jax.ShapeDtypeStruct((Bpad * Ho * Wo, Cout), jnp.bfloat16),
        grid_spec=pltpu.PrefetchScalarGridSpec(
            num_scalar_prefetch=0,
            grid=(Bpad // bt,),
            in_specs=[
                pl.BlockSpec((bt * M_img, K), lambda n: (n, 0)),
                pl.BlockSpec((K, Cout), lambda n: (0, 0)),
                pl.BlockSpec((1, Cout), lambda n: (0, 0)),
            ],
            out_specs=pl.BlockSpec((bt * Ho * Wo, Cout), lambda n: (n, 0)),
            scratch_shapes=[
                pltpu.VMEM((bt * M_img, Cout), jnp.float32),
                pltpu.VMEM((bt * Ho, Wimg, Cout), jnp.float32),
            ],
        ),
        compiler_params=pltpu.CompilerParams(
            dimension_semantics=("parallel",),
            vmem_limit_bytes=32 * 1024 * 1024,
        ),
    )(x_cols, w, b.reshape(1, Cout))


# ---------------------------------------------------------------------------
# Kernel 3: fused fc1 + ReLU + fc2, tiled over M rows with resident weights.
# ---------------------------------------------------------------------------
def _mlp_kernel(x_ref, w1_ref, b1_ref, w2_ref, b2_ref, o_ref):
    h = jnp.dot(x_ref[...], w1_ref[...], preferred_element_type=jnp.float32)
    h = jnp.maximum(h + b1_ref[...], 0.0)
    o_ref[...] = (jnp.dot(h.astype(w2_ref.dtype), w2_ref[...],
                          preferred_element_type=jnp.float32) + b2_ref[...])


def mlp_head(x, w1, b1, w2, b2):
    """x: (Mp, K) bf16 (Mp a multiple of 8); w1: (K, H1) bf16; w2: (H1, N) bf16."""
    Mp, K = x.shape
    H1 = w1.shape[1]
    N = w2.shape[1]
    tm = Mp if Mp <= 512 else 512
    return pl.pallas_call(
        _mlp_kernel,
        out_shape=jax.ShapeDtypeStruct((Mp, N), jnp.float32),
        grid_spec=pltpu.PrefetchScalarGridSpec(
            num_scalar_prefetch=0,
            grid=(Mp // tm,),
            in_specs=[
                pl.BlockSpec((tm, K), lambda i: (i, 0)),
                pl.BlockSpec((K, H1), lambda i: (0, 0)),
                pl.BlockSpec((1, H1), lambda i: (0, 0)),
                pl.BlockSpec((H1, N), lambda i: (0, 0)),
                pl.BlockSpec((1, N), lambda i: (0, 0)),
            ],
            out_specs=pl.BlockSpec((tm, N), lambda i: (i, 0)),
        ),
        compiler_params=pltpu.CompilerParams(dimension_semantics=("parallel",)),
    )(x, w1, b1.reshape(1, H1), w2, b2.reshape(1, N))


# ---------------------------------------------------------------------------
# Host-side (XLA) glue: im2col for a 3x3 SAME conv, channels-last.
# K order is (di, dj, cin), matching the fused-weight reshape below.
# ---------------------------------------------------------------------------
def _im2col_3x3(x_nhwc):
    B, H, W, C = x_nhwc.shape
    xp = jnp.pad(x_nhwc, ((0, 0), (1, 1), (1, 1), (0, 0)))
    cols = [xp[:, di:di + H, dj:dj + W, :] for di in range(3) for dj in range(3)]
    return jnp.concatenate(cols, axis=-1).reshape(B * H * W, 9 * C)


# ---------------------------------------------------------------------------
# One-time weight preparation (torch layouts -> kernel layouts, bf16).
# ---------------------------------------------------------------------------
def prepare_params(p):
    def conv_w(w, k_pad=None):
        cout, cin = w.shape[0], w.shape[1]
        # (Cout,Cin,3,3) -> (di,dj,Cin,Cout) -> (9*Cin, Cout); zero-pad K
        wf = jnp.transpose(w, (2, 3, 1, 0)).reshape(9 * cin, cout)
        if k_pad is not None and k_pad > 9 * cin:
            wf = jnp.pad(wf, ((0, k_pad - 9 * cin), (0, 0)))
        return wf.astype(jnp.bfloat16)

    # permute fc1 columns from torch's CHW flatten order to our HWC flatten order
    w1 = (p["fc1_w"].reshape(64, 32, 8, 8).transpose(0, 2, 3, 1)
          .reshape(64, 32 * 8 * 8).T)                        # (2048, 64)
    return {
        "conv1_w": conv_w(p["conv1_w"], k_pad=32),           # (32, 16)  bf16
        "conv1_b": p["conv1_b"].astype(jnp.float32),
        "conv2_w": conv_w(p["conv2_w"]),                     # (144, 32) bf16
        "conv2_b": p["conv2_b"].astype(jnp.float32),
        "fc1_w": w1.astype(jnp.bfloat16),                    # (2048, 64) bf16
        "fc1_b": p["fc1_b"].astype(jnp.float32),
        "fc2_w": p["fc2_w"].T.astype(jnp.bfloat16),          # (64, 10) bf16
        "fc2_b": p["fc2_b"].astype(jnp.float32),
    }


# ---------------------------------------------------------------------------
# Forward pass: 3 pallas_calls + small fusable XLA glue (layout + im2col).
# ---------------------------------------------------------------------------
def simple_cnn_forward(x_nchw, kp):
    B, C, H, W = x_nchw.shape                                # (B, 3, 32, 32)

    # image-block sizes per conv grid step; pad the batch once if needed
    Bpad = B if B <= 4 else _round_up(B, 8)
    bt1 = Bpad if Bpad <= 4 else 4
    bt2 = Bpad if Bpad <= 8 else 8

    x = jnp.transpose(x_nchw, (0, 2, 3, 1))                  # NHWC
    if Bpad != B:
        x = jnp.pad(x, ((0, Bpad - B), (0, 0), (0, 0), (0, 0)))

    # stage 1: im2col (K=27 -> pad 32), fused conv+bias+ReLU+pool kernel
    x1 = _im2col_3x3(x)                                      # (Bpad*1024, 27)
    x1 = jnp.pad(x1, ((0, 0), (0, 32 - 27))).astype(jnp.bfloat16)
    y1 = conv3x3_bias_relu_pool(x1, kp["conv1_w"], kp["conv1_b"],
                                Himg=H, Wimg=W, Cout=16, bt=bt1)  # (Bpad*256, 16)

    # stage 2: im2col of the pooled maps (K=144), fused conv+bias+ReLU+pool
    H2, W2 = H // 2, W // 2
    x2 = _im2col_3x3(y1.reshape(Bpad, H2, W2, 16)).astype(jnp.bfloat16)  # (Bpad*256, 144)
    y2 = conv3x3_bias_relu_pool(x2, kp["conv2_w"], kp["conv2_b"],
                                Himg=H2, Wimg=W2, Cout=32, bt=bt2)  # (Bpad*64, 32)

    # HWC flatten (fc1 weights were permuted to match torch's CHW view),
    # pad rows to a sublane/tile multiple, fused MLP head.
    feat = y2.reshape(Bpad, 32 * (H // 4) * (W // 4))        # (Bpad, 2048)
    Mp = _round_up(Bpad, 8) if Bpad <= 512 else _round_up(Bpad, 512)
    if Mp != Bpad:
        feat = jnp.pad(feat, ((0, Mp - Bpad), (0, 0)))
    out = mlp_head(feat, kp["fc1_w"], kp["fc1_b"], kp["fc2_w"], kp["fc2_b"])
    return out[:B]


# ---------------------------------------------------------------------------
# Pure-JAX reference (torch semantics) for a correctness check.
# ---------------------------------------------------------------------------
def reference_forward(x_nchw, params):
    def conv(x, w, b):
        y = lax.conv_general_dilated(
            x, w, window_strides=(1, 1), padding="SAME",
            dimension_numbers=("NCHW", "OIHW", "NCHW"))
        return jnp.maximum(y + b[None, :, None, None], 0.0)

    def pool(x):
        return lax.reduce_window(x, -jnp.inf, lax.max,
                                 (1, 1, 2, 2), (1, 1, 2, 2), "VALID")

    x = pool(conv(x_nchw, params["conv1_w"], params["conv1_b"]))
    x = pool(conv(x, params["conv2_w"], params["conv2_b"]))
    x = x.reshape(x.shape[0], -1)
    x = jnp.maximum(x @ params["fc1_w"].T + params["fc1_b"], 0.0)
    return x @ params["fc2_w"].T + params["fc2_b"]


def init_params(key):
    ks = jax.random.split(key, 8)

    def u(k, shape, fan_in):
        bound = 1.0 / jnp.sqrt(fan_in)
        return jax.random.uniform(k, shape, jnp.float32, -bound, bound)

    return {
        "conv1_w": u(ks[0], (16, 3, 3, 3), 3 * 9),
        "conv1_b": u(ks[1], (16,), 3 * 9),
        "conv2_w": u(ks[2], (32, 16, 3, 3), 16 * 9),
        "conv2_b": u(ks[3], (32,), 16 * 9),
        "fc1_w": u(ks[4], (64, 32 * 8 * 8), 32 * 8 * 8),
        "fc1_b": u(ks[5], (64,), 32 * 8 * 8),
        "fc2_w": u(ks[6], (10, 64), 64),
        "fc2_b": u(ks[7], (10,), 64),
    }


if __name__ == "__main__":
    key = jax.random.PRNGKey(0)
    k_x, k_p = jax.random.split(key)
    # fc1 expects 32*8*8 features => 32x32 spatial, 3 channels (CIFAR-like).
    x = jax.random.normal(k_x, (2, 3, 32, 32), jnp.float32)
    params = init_params(k_p)
    kparams = prepare_params(params)          # one-time layout/dtype prep

    fwd = jax.jit(simple_cnn_forward)
    out = jax.block_until_ready(fwd(x, kparams))
    assert out.shape == (2, 10) and out.dtype == jnp.float32

    ref = jax.block_until_ready(reference_forward(x, params))
    assert jnp.allclose(out, ref, rtol=2e-2, atol=2e-2), (
        f"max abs diff {jnp.max(jnp.abs(out - ref))}")

    print("KERNEL_OK")
</pallas_src>

<mosaic_0001>
module attributes {stable_mosaic.version = 11 : i64} {
  func.func @kernel(%arg0: i32, %arg1: memref<2048x32xbf16, #tpu.memory_space<vmem>>, %arg2: memref<32x16xbf16, #tpu.memory_space<vmem>>, %arg3: memref<1x16xf32, #tpu.memory_space<vmem>>, %arg4: memref<512x16xbf16, #tpu.memory_space<vmem>>, %arg5: memref<2048x16xf32, #tpu.memory_space<vmem>>, %arg6: memref<32x32x16xf32, #tpu.memory_space<vmem>>) attributes {dimension_semantics = [#tpu.dimension_semantics<parallel>], iteration_bounds = array<i64: 1>, scalar_prefetch = 0 : i64, scratch_operands = 2 : i64, tpu.core_type = #tpu.core_type<tc>, window_params = [{transform_indices = @transform_0, window_bounds = array<i64: 2048, 32>}, {pipeline_mode = #tpu.pipeline_mode<synchronous>, transform_indices = @transform_1, window_bounds = array<i64: 32, 16>}, {pipeline_mode = #tpu.pipeline_mode<synchronous>, transform_indices = @transform_2, window_bounds = array<i64: 1, 16>}, {transform_indices = @transform_3, window_bounds = array<i64: 512, 16>}]} {
    %c0 = arith.constant 0 : index
    %c0_0 = arith.constant 0 : index
    %0 = vector.load %arg1[%c0, %c0_0] : memref<2048x32xbf16, #tpu.memory_space<vmem>>, vector<2048x32xbf16>
    %c0_1 = arith.constant 0 : index
    %c0_2 = arith.constant 0 : index
    %1 = vector.load %arg2[%c0_1, %c0_2] : memref<32x16xbf16, #tpu.memory_space<vmem>>, vector<32x16xbf16>
    %cst = arith.constant dense<0.000000e+00> : vector<2048x16xf32>
    %2 = tpu.matmul %0, %1, %cst {dimension_numbers = #tpu.dot_dimension_numbers<[1], [0], [0], [1], [0, 0, 1, 1], [], []>} : vector<2048x32xbf16>, vector<32x16xbf16>, vector<2048x16xf32> -> vector<2048x16xf32>
    %c0_3 = arith.constant 0 : index
    %c0_4 = arith.constant 0 : index
    %3 = vector.load %arg3[%c0_3, %c0_4] : memref<1x16xf32, #tpu.memory_space<vmem>>, vector<1x16xf32>
    %4 = vector.broadcast %3 : vector<1x16xf32> to vector<2048x16xf32>
    %5 = arith.addf %2, %4 : vector<2048x16xf32>
    %c0_5 = arith.constant 0 : index
    %c0_6 = arith.constant 0 : index
    %6 = vector.load %arg5[%c0_5, %c0_6] : memref<2048x16xf32, #tpu.memory_space<vmem>>, vector<2048x16xf32>
    tpu.vector_store %arg5[%c0_5, %c0_6], %5 {strides = array<i32>} : memref<2048x16xf32, #tpu.memory_space<vmem>>, vector<2048x16xf32>,
    %c0_7 = arith.constant 0 : index
    %c0_8 = arith.constant 0 : index
    %7 = tpu.strided_load %arg5[%c0_7, %c0_8] {strides = array<i32: 2, 1>} : memref<2048x16xf32, #tpu.memory_space<vmem>>, vector<1024x16xf32>
    %c1 = arith.constant 1 : index
    %c0_9 = arith.constant 0 : index
    %8 = tpu.strided_load %arg5[%c1, %c0_9] {strides = array<i32: 2, 1>} : memref<2048x16xf32, #tpu.memory_space<vmem>>, vector<1024x16xf32>
    %9 = arith.maximumf %7, %8 : vector<1024x16xf32>
    %10 = vector.shape_cast %9 : vector<1024x16xf32> to vector<32x32x16xf32>
    %c0_10 = arith.constant 0 : index
    %c0_11 = arith.constant 0 : index
    %c0_12 = arith.constant 0 : index
    %11 = vector.load %arg6[%c0_10, %c0_11, %c0_12] : memref<32x32x16xf32, #tpu.memory_space<vmem>>, vector<32x32x16xf32>
    tpu.vector_store %arg6[%c0_10, %c0_11, %c0_12], %10 {strides = array<i32>} : memref<32x32x16xf32, #tpu.memory_space<vmem>>, vector<32x32x16xf32>,
    %c0_13 = arith.constant 0 : index
    %c0_14 = arith.constant 0 : index
    %c0_15 = arith.constant 0 : index
    %12 = vector.load %arg6[%c0_13, %c0_14, %c0_15] : memref<32x32x16xf32, #tpu.memory_space<vmem>>, vector<32x16x16xf32>
    %c0_16 = arith.constant 0 : index
    %c16 = arith.constant 16 : index
    %c0_17 = arith.constant 0 : index
    %13 = vector.load %arg6[%c0_16, %c16, %c0_17] : memref<32x32x16xf32, #tpu.memory_space<vmem>>, vector<32x16x16xf32>
    %14 = arith.maximumf %12, %13 : vector<32x16x16xf32>
    %cst_18 = arith.constant 0.000000e+00 : f32
    %15 = vector.broadcast %cst_18 : f32 to vector<32x16x16xf32>
    %16 = arith.maximumf %14, %15 : vector<32x16x16xf32>
    %17 = vector.shape_cast %16 : vector<32x16x16xf32> to vector<512x16xf32>
    %18 = arith.truncf %17 : vector<512x16xf32> to vector<512x16xbf16>
    %c0_19 = arith.constant 0 : index
    %c0_20 = arith.constant 0 : index
    %19 = vector.load %arg4[%c0_19, %c0_20] : memref<512x16xbf16, #tpu.memory_space<vmem>>, vector<512x16xbf16>
    tpu.vector_store %arg4[%c0_19, %c0_20], %18 {strides = array<i32>} : memref<512x16xbf16, #tpu.memory_space<vmem>>, vector<512x16xbf16>,
    return
  }
  func.func @transform_0(%arg0: i32) -> (i32, i32) {
    %c0_i32 = arith.constant 0 : i32
    %c0_i32_0 = arith.constant 0 : i32
    return %arg0, %c0_i32 : i32, i32
  }
  func.func @transform_1(%arg0: i32) -> (i32, i32) {
    %c0_i32 = arith.constant 0 : i32
    %c0_i32_0 = arith.constant 0 : i32
    %c0_i32_1 = arith.constant 0 : i32
    return %c0_i32, %c0_i32_0 : i32, i32
  }
  func.func @transform_2(%arg0: i32) -> (i32, i32) {
    %c0_i32 = arith.constant 0 : i32
    %c0_i32_0 = arith.constant 0 : i32
    %c0_i32_1 = arith.constant 0 : i32
    return %c0_i32, %c0_i32_0 : i32, i32
  }
  func.func @transform_3(%arg0: i32) -> (i32, i32) {
    %c0_i32 = arith.constant 0 : i32
    %c0_i32_0 = arith.constant 0 : i32
    return %arg0, %c0_i32 : i32, i32
  }
}

module attributes {stable_mosaic.version = 11 : i64} {
  func.func @kernel(%arg0: i32, %arg1: memref<512x144xbf16, #tpu.memory_space<vmem>>, %arg2: memref<144x32xbf16, #tpu.memory_space<vmem>>, %arg3: memref<1x32xf32, #tpu.memory_space<vmem>>, %arg4: memref<128x32xbf16, #tpu.memory_space<vmem>>, %arg5: memref<512x32xf32, #tpu.memory_space<vmem>>, %arg6: memref<16x16x32xf32, #tpu.memory_space<vmem>>) attributes {dimension_semantics = [#tpu.dimension_semantics<parallel>], iteration_bounds = array<i64: 1>, scalar_prefetch = 0 : i64, scratch_operands = 2 : i64, tpu.core_type = #tpu.core_type<tc>, window_params = [{transform_indices = @transform_0, window_bounds = array<i64: 512, 144>}, {pipeline_mode = #tpu.pipeline_mode<synchronous>, transform_indices = @transform_1, window_bounds = array<i64: 144, 32>}, {pipeline_mode = #tpu.pipeline_mode<synchronous>, transform_indices = @transform_2, window_bounds = array<i64: 1, 32>}, {transform_indices = @transform_3, window_bounds = array<i64: 128, 32>}]} {
    %c0 = arith.constant 0 : index
    %c0_0 = arith.constant 0 : index
    %0 = vector.load %arg1[%c0, %c0_0] : memref<512x144xbf16, #tpu.memory_space<vmem>>, vector<512x144xbf16>
    %c0_1 = arith.constant 0 : index
    %c0_2 = arith.constant 0 : index
    %1 = vector.load %arg2[%c0_1, %c0_2] : memref<144x32xbf16, #tpu.memory_space<vmem>>, vector<144x32xbf16>
    %cst = arith.constant dense<0.000000e+00> : vector<512x32xf32>
    %2 = tpu.matmul %0, %1, %cst {dimension_numbers = #tpu.dot_dimension_numbers<[1], [0], [0], [1], [0, 0, 1, 1], [], []>} : vector<512x144xbf16>, vector<144x32xbf16>, vector<512x32xf32> -> vector<512x32xf32>
    %c0_3 = arith.constant 0 : index
    %c0_4 = arith.constant 0 : index
    %3 = vector.load %arg3[%c0_3, %c0_4] : memref<1x32xf32, #tpu.memory_space<vmem>>, vector<1x32xf32>
    %4 = vector.broadcast %3 : vector<1x32xf32> to vector<512x32xf32>
    %5 = arith.addf %2, %4 : vector<512x32xf32>
    %c0_5 = arith.constant 0 : index
    %c0_6 = arith.constant 0 : index
    %6 = vector.load %arg5[%c0_5, %c0_6] : memref<512x32xf32, #tpu.memory_space<vmem>>, vector<512x32xf32>
    tpu.vector_store %arg5[%c0_5, %c0_6], %5 {strides = array<i32>} : memref<512x32xf32, #tpu.memory_space<vmem>>, vector<512x32xf32>,
    %c0_7 = arith.constant 0 : index
    %c0_8 = arith.constant 0 : index
    %7 = tpu.strided_load %arg5[%c0_7, %c0_8] {strides = array<i32: 2, 1>} : memref<512x32xf32, #tpu.memory_space<vmem>>, vector<256x32xf32>
    %c1 = arith.constant 1 : index
    %c0_9 = arith.constant 0 : index
    %8 = tpu.strided_load %arg5[%c1, %c0_9] {strides = array<i32: 2, 1>} : memref<512x32xf32, #tpu.memory_space<vmem>>, vector<256x32xf32>
    %9 = arith.maximumf %7, %8 : vector<256x32xf32>
    %10 = vector.shape_cast %9 : vector<256x32xf32> to vector<16x16x32xf32>
    %c0_10 = arith.constant 0 : index
    %c0_11 = arith.constant 0 : index
    %c0_12 = arith.constant 0 : index
    %11 = vector.load %arg6[%c0_10, %c0_11, %c0_12] : memref<16x16x32xf32, #tpu.memory_space<vmem>>, vector<16x16x32xf32>
    tpu.vector_store %arg6[%c0_10, %c0_11, %c0_12], %10 {strides = array<i32>} : memref<16x16x32xf32, #tpu.memory_space<vmem>>, vector<16x16x32xf32>,
    %c0_13 = arith.constant 0 : index
    %c0_14 = arith.constant 0 : index
    %c0_15 = arith.constant 0 : index
    %12 = vector.load %arg6[%c0_13, %c0_14, %c0_15] : memref<16x16x32xf32, #tpu.memory_space<vmem>>, vector<16x8x32xf32>
    %c0_16 = arith.constant 0 : index
    %c8 = arith.constant 8 : index
    %c0_17 = arith.constant 0 : index
    %13 = vector.load %arg6[%c0_16, %c8, %c0_17] : memref<16x16x32xf32, #tpu.memory_space<vmem>>, vector<16x8x32xf32>
    %14 = arith.maximumf %12, %13 : vector<16x8x32xf32>
    %cst_18 = arith.constant 0.000000e+00 : f32
    %15 = vector.broadcast %cst_18 : f32 to vector<16x8x32xf32>
    %16 = arith.maximumf %14, %15 : vector<16x8x32xf32>
    %17 = vector.shape_cast %16 : vector<16x8x32xf32> to vector<128x32xf32>
    %18 = arith.truncf %17 : vector<128x32xf32> to vector<128x32xbf16>
    %c0_19 = arith.constant 0 : index
    %c0_20 = arith.constant 0 : index
    %19 = vector.load %arg4[%c0_19, %c0_20] : memref<128x32xbf16, #tpu.memory_space<vmem>>, vector<128x32xbf16>
    tpu.vector_store %arg4[%c0_19, %c0_20], %18 {strides = array<i32>} : memref<128x32xbf16, #tpu.memory_space<vmem>>, vector<128x32xbf16>,
    return
  }
  func.func @transform_0(%arg0: i32) -> (i32, i32) {
    %c0_i32 = arith.constant 0 : i32
    %c0_i32_0 = arith.constant 0 : i32
    return %arg0, %c0_i32 : i32, i32
  }
  func.func @transform_1(%arg0: i32) -> (i32, i32) {
    %c0_i32 = arith.constant 0 : i32
    %c0_i32_0 = arith.constant 0 : i32
    %c0_i32_1 = arith.constant 0 : i32
    return %c0_i32, %c0_i32_0 : i32, i32
  }
  func.func @transform_2(%arg0: i32) -> (i32, i32) {
    %c0_i32 = arith.constant 0 : i32
    %c0_i32_0 = arith.constant 0 : i32
    %c0_i32_1 = arith.constant 0 : i32
    return %c0_i32, %c0_i32_0 : i32, i32
  }
  func.func @transform_3(%arg0: i32) -> (i32, i32) {
    %c0_i32 = arith.constant 0 : i32
    %c0_i32_0 = arith.constant 0 : i32
    return %arg0, %c0_i32 : i32, i32
  }
}

module attributes {stable_mosaic.version = 11 : i64} {
  func.func @_mlp_kernel(%arg0: i32, %arg1: memref<8x2048xbf16, #tpu.memory_space<vmem>>, %arg2: memref<2048x64xbf16, #tpu.memory_space<vmem>>, %arg3: memref<1x64xf32, #tpu.memory_space<vmem>>, %arg4: memref<64x10xbf16, #tpu.memory_space<vmem>>, %arg5: memref<1x10xf32, #tpu.memory_space<vmem>>, %arg6: memref<8x10xf32, #tpu.memory_space<vmem>>) attributes {dimension_semantics = [#tpu.dimension_semantics<parallel>], iteration_bounds = array<i64: 1>, scalar_prefetch = 0 : i64, scratch_operands = 0 : i64, tpu.core_type = #tpu.core_type<tc>, window_params = [{transform_indices = @transform_0, window_bounds = array<i64: 8, 2048>}, {pipeline_mode = #tpu.pipeline_mode<synchronous>, transform_indices = @transform_1, window_bounds = array<i64: 2048, 64>}, {pipeline_mode = #tpu.pipeline_mode<synchronous>, transform_indices = @transform_2, window_bounds = array<i64: 1, 64>}, {pipeline_mode = #tpu.pipeline_mode<synchronous>, transform_indices = @transform_3, window_bounds = array<i64: 64, 10>}, {pipeline_mode = #tpu.pipeline_mode<synchronous>, transform_indices = @transform_4, window_bounds = array<i64: 1, 10>}, {transform_indices = @transform_5, window_bounds = array<i64: 8, 10>}]} {
    %c0 = arith.constant 0 : index
    %c0_0 = arith.constant 0 : index
    %0 = vector.load %arg1[%c0, %c0_0] : memref<8x2048xbf16, #tpu.memory_space<vmem>>, vector<8x2048xbf16>
    %c0_1 = arith.constant 0 : index
    %c0_2 = arith.constant 0 : index
    %1 = vector.load %arg2[%c0_1, %c0_2] : memref<2048x64xbf16, #tpu.memory_space<vmem>>, vector<2048x64xbf16>
    %cst = arith.constant dense<0.000000e+00> : vector<8x64xf32>
    %2 = tpu.matmul %0, %1, %cst {dimension_numbers = #tpu.dot_dimension_numbers<[1], [0], [0], [1], [0, 0, 1, 1], [], []>} : vector<8x2048xbf16>, vector<2048x64xbf16>, vector<8x64xf32> -> vector<8x64xf32>
    %c0_3 = arith.constant 0 : index
    %c0_4 = arith.constant 0 : index
    %3 = vector.load %arg3[%c0_3, %c0_4] : memref<1x64xf32, #tpu.memory_space<vmem>>, vector<1x64xf32>
    %4 = vector.broadcast %3 : vector<1x64xf32> to vector<8x64xf32>
    %5 = arith.addf %2, %4 : vector<8x64xf32>
    %cst_5 = arith.constant 0.000000e+00 : f32
    %6 = vector.broadcast %cst_5 : f32 to vector<8x64xf32>
    %7 = arith.maximumf %5, %6 : vector<8x64xf32>
    %8 = arith.truncf %7 : vector<8x64xf32> to vector<8x64xbf16>
    %c0_6 = arith.constant 0 : index
    %c0_7 = arith.constant 0 : index
    %9 = vector.load %arg4[%c0_6, %c0_7] : memref<64x10xbf16, #tpu.memory_space<vmem>>, vector<64x10xbf16>
    %cst_8 = arith.constant dense<0.000000e+00> : vector<8x10xf32>
    %10 = tpu.matmul %8, %9, %cst_8 {dimension_numbers = #tpu.dot_dimension_numbers<[1], [0], [0], [1], [0, 0, 1, 1], [], []>} : vector<8x64xbf16>, vector<64x10xbf16>, vector<8x10xf32> -> vector<8x10xf32>
    %c0_9 = arith.constant 0 : index
    %c0_10 = arith.constant 0 : index
    %11 = vector.load %arg5[%c0_9, %c0_10] : memref<1x10xf32, #tpu.memory_space<vmem>>, vector<1x10xf32>
    %12 = vector.broadcast %11 : vector<1x10xf32> to vector<8x10xf32>
    %13 = arith.addf %10, %12 : vector<8x10xf32>
    %c0_11 = arith.constant 0 : index
    %c0_12 = arith.constant 0 : index
    %14 = vector.load %arg6[%c0_11, %c0_12] : memref<8x10xf32, #tpu.memory_space<vmem>>, vector<8x10xf32>
    tpu.vector_store %arg6[%c0_11, %c0_12], %13 {strides = array<i32>} : memref<8x10xf32, #tpu.memory_space<vmem>>, vector<8x10xf32>,
    return
  }
  func.func @transform_0(%arg0: i32) -> (i32, i32) {
    %c0_i32 = arith.constant 0 : i32
    %c0_i32_0 = arith.constant 0 : i32
    return %arg0, %c0_i32 : i32, i32
  }
  func.func @transform_1(%arg0: i32) -> (i32, i32) {
    %c0_i32 = arith.constant 0 : i32
    %c0_i32_0 = arith.constant 0 : i32
    %c0_i32_1 = arith.constant 0 : i32
    return %c0_i32, %c0_i32_0 : i32, i32
  }
  func.func @transform_2(%arg0: i32) -> (i32, i32) {
    %c0_i32 = arith.constant 0 : i32
    %c0_i32_0 = arith.constant 0 : i32
    %c0_i32_1 = arith.constant 0 : i32
    return %c0_i32, %c0_i32_0 : i32, i32
  }
  func.func @transform_3(%arg0: i32) -> (i32, i32) {
    %c0_i32 = arith.constant 0 : i32
    %c0_i32_0 = arith.constant 0 : i32
    %c0_i32_1 = arith.constant 0 : i32
    return %c0_i32, %c0_i32_0 : i32, i32
  }
  func.func @transform_4(%arg0: i32) -> (i32, i32) {
    %c0_i32 = arith.constant 0 : i32
    %c0_i32_0 = arith.constant 0 : i32
    %c0_i32_1 = arith.constant 0 : i32
    return %c0_i32, %c0_i32_0 : i32, i32
  }
  func.func @transform_5(%arg0: i32) -> (i32, i32) {
    %c0_i32 = arith.constant 0 : i32
    %c0_i32_0 = arith.constant 0 : i32
    return %arg0, %c0_i32 : i32, i32
  }
}

</mosaic_0001>

<bundles_post_ra>
// kernel: simple_cnn_forward.3
= control target key start
LH: loop header
LB: loop body
LE: loop exit
PB: predicated region body
PF: predicated region fallthrough
CT: control target
= control target key end

     0   :  { %vm934_vm0 = vcmask 261120   ;;  %vm2376_vm1 = vcmask 130048   ;;  %vm3912_vm2 = vcmask 125952   ;;  %s6349_s1 = inlined_call_operand.vmem [shape: bf16[32,16], index: 1, kind: input, shape index: {}]   ;;  %s6350_s0 = inlined_call_operand.vmem [shape: bf16[2048,32], index: 0, kind: input, shape index: {}]   ;;  %s6351_s2 = inlined_call_operand.vmem [shape: f32[1,16], index: 2, kind: input, shape index: {}]   ;;  %s6352_s3 = inlined_call_operand.vmem [shape: bf16[512,16], index: 3, kind: output, shape index: {}]  }
   0x1   :  { %v4762_v0 = vld [vmem:[%s6349_s1] sm:$0xff]   ;;  %v4763_v1 = vld [vmem:[%s6349_s1 + $0x8] sm:$0xff]   ;;  %v4768_v6 = vld [vmem:[%s6350_s0 + $0x10] sm:$0xff]  }
   0x2   :  { %4498 = vmatprep.subr.bf16.mxu0 %v4762_v0  ;;  %4758 = vmatprep.subr.bf16.mxu1 %v4762_v0  ;;  %v4764_v2 = vld [vmem:[%s6350_s0] sm:$0xff]   ;;  %v4766_v4 = vld [vmem:[%s6350_s0 + $0x8] sm:$0xff]   ;;  %v4769_v7 = vld [vmem:[%s6350_s0 + $0x210] sm:$0xff]  }
   0x3   :  { %4499 = vmatpush3.bf16.msra.mxu0 %v4762_v0  ;;  %4760 = vmatpush3.bf16.msra.mxu1 %v4762_v0  ;;  %v4765_v3 = vld [vmem:[%s6350_s0 + $0x200] sm:$0xff]   ;;  %v4767_v5 = vld [vmem:[%s6350_s0 + $0x208] sm:$0xff]   ;;  %v4770_v8 = vld [vmem:[%s6350_s0 + $0x18] sm:$0xff]  }
   0x4   :  { %4500 = vmatprep.subr.bf16.mxu0 %v4763_v1  ;;  %4759 = vmatprep.subr.bf16.mxu1 %v4763_v1  ;;  %v4771_v9 = vld [vmem:[%s6350_s0 + $0x218] sm:$0xff]   ;;  %v4772_v10 = vld [vmem:[%s6350_s0 + $0x20] sm:$0xff]   ;;  %v4774_v12 = vld [vmem:[%s6350_s0 + $0x28] sm:$0xff]  }
   0x5   :  { %4502 = vmatprep.mubr.msk.bf16.mxu0 %vm934_vm0, %v4764_v2  ;;  %4630 = vmatprep.mubr.msk.bf16.mxu1 %vm934_vm0, %v4765_v3  ;;  %v4773_v11 = vld [vmem:[%s6350_s0 + $0x220] sm:$0xff]   ;;  %v4775_v13 = vld [vmem:[%s6350_s0 + $0x228] sm:$0xff]   ;;  %v4776_v14 = vld [vmem:[%s6350_s0 + $0x30] sm:$0xff]  }
   0x6   :  { %v4777_v15 = vld [vmem:[%s6350_s0 + $0x230] sm:$0xff]   ;;  %v4778_v16 = vld [vmem:[%s6350_s0 + $0x38] sm:$0xff]   ;;  %v4780_v18 = vld [vmem:[%s6350_s0 + $0x40] sm:$0xff]  }
   0x7   :  { %4501 = vmatpush3.bf16.msra.mxu0 %v4763_v1  ;;  %4761 = vmatpush3.bf16.msra.mxu1 %v4763_v1  ;;  %v4779_v17 = vld [vmem:[%s6350_s0 + $0x238] sm:$0xff]   ;;  %v4781_v19 = vld [vmem:[%s6350_s0 + $0x240] sm:$0xff]   ;;  %v4782_v20 = vld [vmem:[%s6350_s0 + $0x48] sm:$0xff]  }
   0x8   :  { %v4783_v21 = vld [vmem:[%s6350_s0 + $0x248] sm:$0xff]   ;;  %v4784_v22 = vld [vmem:[%s6350_s0 + $0x50] sm:$0xff]   ;;  %v4786_v24 = vld [vmem:[%s6350_s0 + $0x58] sm:$0xff]  }
   0x9   :  { %v4785_v23 = vld [vmem:[%s6350_s0 + $0x250] sm:$0xff]   ;;  %v4787_v25 = vld [vmem:[%s6350_s0 + $0x258] sm:$0xff]   ;;  %v4788_v26 = vld [vmem:[%s6350_s0 + $0x60] sm:$0xff]  }
   0xa   :  { %4503 = vmatmul.mubr.msk.bf16.vlgmr.msra.gmra.mrb[0].mxu0 %vm934_vm0, %v4766_v4  ;;  %4631 = vmatmul.mubr.msk.bf16.vlgmr.msra.gmra.mrb[0].mxu1 %vm934_vm0, %v4767_v5  ;;  %v4789_v27 = vld [vmem:[%s6350_s0 + $0x260] sm:$0xff]   ;;  %v4790_v28 = vld [vmem:[%s6350_s0 + $0x68] sm:$0xff]   ;;  %v4792_v30 = vld [vmem:[%s6350_s0 + $0x70] sm:$0xff]  }
   0xb   :  { %4506 = vmatprep.mubr.msk.bf16.mxu0 %vm934_vm0, %v4768_v6  ;;  %4634 = vmatprep.mubr.msk.bf16.mxu1 %vm934_vm0, %v4769_v7  ;;  %v4791_v29 = vld [vmem:[%s6350_s0 + $0x268] sm:$0xff]   ;;  %v4793_v31 = vld [vmem:[%s6350_s0 + $0x270] sm:$0xff]   ;;  %v4794_v32 = vld [vmem:[%s6350_s0 + $0x78] sm:$0xff]  }
   0xc   :  { %v4795_v33 = vld [vmem:[%s6350_s0 + $0x278] sm:$0xff]   ;;  %v4796_v34 = vld [vmem:[%s6350_s0 + $0x80] sm:$0xff]   ;;  %v4798_v36 = vld [vmem:[%s6350_s0 + $0x88] sm:$0xff]  }
   0xd   :  { %v4797_v35 = vld [vmem:[%s6350_s0 + $0x280] sm:$0xff]   ;;  %v4799_v37 = vld [vmem:[%s6350_s0 + $0x288] sm:$0xff]   ;;  %v4800_v38 = vld [vmem:[%s6350_s0 + $0x90] sm:$0xff]  }
   0xe   :  { %v4801_v39 = vld [vmem:[%s6350_s0 + $0x290] sm:$0xff]   ;;  %v4802_v40 = vld [vmem:[%s6350_s0 + $0x98] sm:$0xff]   ;;  %v4804_v42 = vld [vmem:[%s6350_s0 + $0xa0] sm:$0xff]  }
   0xf   :  { %v4803_v41 = vld [vmem:[%s6350_s0 + $0x298] sm:$0xff]   ;;  %v4805_v43 = vld [vmem:[%s6350_s0 + $0x2a0] sm:$0xff]   ;;  %v4806_v44 = vld [vmem:[%s6350_s0 + $0xa8] sm:$0xff]  }
  0x10   :  { %v4807_v45 = vld [vmem:[%s6350_s0 + $0x2a8] sm:$0xff]   ;;  %v4808_v46 = vld [vmem:[%s6350_s0 + $0xb0] sm:$0xff]   ;;  %v4810_v48 = vld [vmem:[%s6350_s0 + $0xb8] sm:$0xff]  }
  0x11   :  { %v4809_v47 = vld [vmem:[%s6350_s0 + $0x2b0] sm:$0xff]   ;;  %v4811_v49 = vld [vmem:[%s6350_s0 + $0x2b8] sm:$0xff]   ;;  %v4812_v50 = vld [vmem:[%s6350_s0 + $0xc0] sm:$0xff]  }
  0x12   :  { %4507 = vmatmul.mubr.msk.bf16.gmra.mrb[4].mxu0 %vm934_vm0, %v4770_v8  ;;  %4635 = vmatmul.mubr.msk.bf16.gmra.mrb[4].mxu1 %vm934_vm0, %v4771_v9  ;;  %v4813_v51 = vld [vmem:[%s6350_s0 + $0x2c0] sm:$0xff]   ;;  %v4814_v52 = vld [vmem:[%s6350_s0 + $0xc8] sm:$0xff]   ;;  %v4816_v54 = vld [vmem:[%s6350_s0 + $0xd0] sm:$0xff]  }
  0x13   :  { %4510 = vmatprep.mubr.msk.bf16.mxu0 %vm934_vm0, %v4772_v10  ;;  %4638 = vmatprep.mubr.msk.bf16.mxu1 %vm934_vm0, %v4773_v11  ;;  %v4815_v53 = vld [vmem:[%s6350_s0 + $0x2c8] sm:$0xff]   ;;  %v4817_v55 = vld [vmem:[%s6350_s0 + $0x2d0] sm:$0xff]   ;;  %v4818_v56 = vld [vmem:[%s6350_s0 + $0xd8] sm:$0xff]  }
  0x14   :  { %v4819_v57 = vld [vmem:[%s6350_s0 + $0x2d8] sm:$0xff]   ;;  %v4820_v58 = vld [vmem:[%s6350_s0 + $0xe0] sm:$0xff]   ;;  %v4822_v60 = vld [vmem:[%s6350_s0 + $0xe8] sm:$0xff]  }
  0x15   :  { %v4821_v59 = vld [vmem:[%s6350_s0 + $0x2e0] sm:$0xff]   ;;  %v4823_v61 = vld [vmem:[%s6350_s0 + $0x2e8] sm:$0xff]   ;;  %v4824_v62 = vld [vmem:[%s6350_s0 + $0xf0] sm:$0xff]  }
  0x16   :  { %v4825_v63 = vld [vmem:[%s6350_s0 + $0x2f0] sm:$0xff]   ;;  %v4826_v0 = vld [vmem:[%s6350_s0 + $0xf8] sm:$0xff]   ;;  %v4828_v2 = vld [vmem:[%s6350_s0 + $0x100] sm:$0xff]  }
  0x17   :  { %v4827_v1 = vld [vmem:[%s6350_s0 + $0x2f8] sm:$0xff]   ;;  %v4829_v3 = vld [vmem:[%s6350_s0 + $0x300] sm:$0xff]   ;;  %v4830_v4 = vld [vmem:[%s6350_s0 + $0x108] sm:$0xff]  }
  0x18   :  { %v4831_v5 = vld [vmem:[%s6350_s0 + $0x308] sm:$0xff]   ;;  %v4832_v6 = vld [vmem:[%s6350_s0 + $0x110] sm:$0xff]   ;;  %v4834_v8 = vld [vmem:[%s6350_s0 + $0x118] sm:$0xff]  }
  0x19   :  { %v4833_v7 = vld [vmem:[%s6350_s0 + $0x310] sm:$0xff]   ;;  %v4835_v9 = vld [vmem:[%s6350_s0 + $0x318] sm:$0xff]   ;;  %v4836_v10 = vld [vmem:[%s6350_s0 + $0x120] sm:$0xff]  }
  0x1a   :  { %4511 = vmatmul.mubr.msk.bf16.gmra.mrb[8].mxu0 %vm934_vm0, %v4774_v12  ;;  %4639 = vmatmul.mubr.msk.bf16.gmra.mrb[8].mxu1 %vm934_vm0, %v4775_v13  ;;  %v4837_v11 = vld [vmem:[%s6350_s0 + $0x320] sm:$0xff]   ;;  %v4838_v12 = vld [vmem:[%s6350_s0 + $0x128] sm:$0xff]  }
  0x1b   :  { %4514 = vmatprep.mubr.msk.bf16.mxu0 %vm934_vm0, %v4776_v14  ;;  %4642 = vmatprep.mubr.msk.bf16.mxu1 %vm934_vm0, %v4777_v15  ;;  %v4839_v13 = vld [vmem:[%s6350_s0 + $0x328] sm:$0xff]   ;;  %v4840_v14 = vld [vmem:[%s6350_s0 + $0x130] sm:$0xff]  }
  0x1c   :  { %v4841_v15 = vld [vmem:[%s6350_s0 + $0x330] sm:$0xff]  }
  0x22   :  { %4515 = vmatmul.mubr.msk.bf16.gmra.mrb[12].mxu0 %vm934_vm0, %v4778_v16  ;;  %4643 = vmatmul.mubr.msk.bf16.gmra.mrb[12].mxu1 %vm934_vm0, %v4779_v17  ;;  %v4842_v16 = vld [vmem:[%s6350_s0 + $0x138] sm:$0xff]  }
  0x23   :  { %4518 = vmatprep.mubr.msk.bf16.mxu0 %vm934_vm0, %v4780_v18  ;;  %4646 = vmatprep.mubr.msk.bf16.mxu1 %vm934_vm0, %v4781_v19  ;;  %v4843_v17 = vld [vmem:[%s6350_s0 + $0x338] sm:$0xff]   ;;  %v4844_v18 = vld [vmem:[%s6350_s0 + $0x140] sm:$0xff]  }
  0x24   :  { %v4845_v19 = vld [vmem:[%s6350_s0 + $0x340] sm:$0xff]  }
  0x2a   :  { %4519 = vmatmul.mubr.msk.bf16.gmra.mrb[16].mxu0 %vm934_vm0, %v4782_v20  ;;  %4647 = vmatmul.mubr.msk.bf16.gmra.mrb[16].mxu1 %vm934_vm0, %v4783_v21  ;;  %v4846_v20 = vld [vmem:[%s6350_s0 + $0x148] sm:$0xff]  }
  0x2b   :  { %4522 = vmatprep.mubr.msk.bf16.mxu0 %vm934_vm0, %v4784_v22  ;;  %4650 = vmatprep.mubr.msk.bf16.mxu1 %vm934_vm0, %v4785_v23  ;;  %v4847_v21 = vld [vmem:[%s6350_s0 + $0x348] sm:$0xff]   ;;  %v4848_v22 = vld [vmem:[%s6350_s0 + $0x150] sm:$0xff]  }
  0x2c   :  { %v4849_v23 = vld [vmem:[%s6350_s0 + $0x350] sm:$0xff]  }
  0x32   :  { %4523 = vmatmul.mubr.msk.bf16.gmra.mrb[20].mxu0 %vm934_vm0, %v4786_v24  ;;  %4651 = vmatmul.mubr.msk.bf16.gmra.mrb[20].mxu1 %vm934_vm0, %v4787_v25  ;;  %v4850_v24 = vld [vmem:[%s6350_s0 + $0x158] sm:$0xff]  }
  0x33   :  { %4526 = vmatprep.mubr.msk.bf16.mxu0 %vm934_vm0, %v4788_v26  ;;  %4654 = vmatprep.mubr.msk.bf16.mxu1 %vm934_vm0, %v4789_v27  ;;  %v4851_v25 = vld [vmem:[%s6350_s0 + $0x358] sm:$0xff]   ;;  %v4852_v26 = vld [vmem:[%s6350_s0 + $0x160] sm:$0xff]  }
  0x34   :  { %v4853_v27 = vld [vmem:[%s6350_s0 + $0x360] sm:$0xff]  }
  0x3a   :  { %4527 = vmatmul.mubr.msk.bf16.gmra.mrb[24].mxu0 %vm934_vm0, %v4790_v28  ;;  %4655 = vmatmul.mubr.msk.bf16.gmra.mrb[24].mxu1 %vm934_vm0, %v4791_v29  ;;  %v4854_v28 = vld [vmem:[%s6350_s0 + $0x168] sm:$0xff]  }
  0x3b   :  { %4530 = vmatprep.mubr.msk.bf16.mxu0 %vm934_vm0, %v4792_v30  ;;  %4658 = vmatprep.mubr.msk.bf16.mxu1 %vm934_vm0, %v4793_v31  ;;  %v4855_v29 = vld [vmem:[%s6350_s0 + $0x368] sm:$0xff]   ;;  %v4856_v30 = vld [vmem:[%s6350_s0 + $0x170] sm:$0xff]  }
  0x3c   :  { %v4857_v31 = vld [vmem:[%s6350_s0 + $0x370] sm:$0xff]  }
  0x42   :  { %4531 = vmatmul.mubr.msk.bf16.gmra.mrb[28].mxu0 %vm934_vm0, %v4794_v32  ;;  %4659 = vmatmul.mubr.msk.bf16.gmra.mrb[28].mxu1 %vm934_vm0, %v4795_v33  ;;  %v4858_v32 = vld [vmem:[%s6350_s0 + $0x178] sm:$0xff]  }
  0x43   :  { %4534 = vmatprep.mubr.msk.bf16.mxu0 %vm934_vm0, %v4796_v34  ;;  %4662 = vmatprep.mubr.msk.bf16.mxu1 %vm934_vm0, %v4797_v35  ;;  %v4859_v33 = vld [vmem:[%s6350_s0 + $0x378] sm:$0xff]   ;;  %v4860_v34 = vld [vmem:[%s6350_s0 + $0x180] sm:$0xff]  }
  0x44   :  { %v4861_v35 = vld [vmem:[%s6350_s0 + $0x380] sm:$0xff]  }
  0x4a   :  { %4535 = vmatmul.mubr.msk.bf16.gmra.mrb[32].mxu0 %vm934_vm0, %v4798_v36  ;;  %4663 = vmatmul.mubr.msk.bf16.gmra.mrb[32].mxu1 %vm934_vm0, %v4799_v37  ;;  %v4862_v36 = vld [vmem:[%s6350_s0 + $0x188] sm:$0xff]  }
  0x4b   :  { %4538 = vmatprep.mubr.msk.bf16.mxu0 %vm934_vm0, %v4800_v38  ;;  %4666 = vmatprep.mubr.msk.bf16.mxu1 %vm934_vm0, %v4801_v39  ;;  %v4863_v37 = vld [vmem:[%s6350_s0 + $0x388] sm:$0xff]   ;;  %v4864_v38 = vld [vmem:[%s6350_s0 + $0x190] sm:$0xff]  }
  0x4c   :  { %v4865_v39 = vld [vmem:[%s6350_s0 + $0x390] sm:$0xff]  }
  0x52   :  { %4539 = vmatmul.mubr.msk.bf16.gmra.mrb[36].mxu0 %vm934_vm0, %v4802_v40  ;;  %4667 = vmatmul.mubr.msk.bf16.gmra.mrb[36].mxu1 %vm934_vm0, %v4803_v41  ;;  %v4866_v40 = vld [vmem:[%s6350_s0 + $0x198] sm:$0xff]  }
  0x53   :  { %4542 = vmatprep.mubr.msk.bf16.mxu0 %vm934_vm0, %v4804_v42  ;;  %4670 = vmatprep.mubr.msk.bf16.mxu1 %vm934_vm0, %v4805_v43  ;;  %v4867_v41 = vld [vmem:[%s6350_s0 + $0x398] sm:$0xff]   ;;  %v4868_v42 = vld [vmem:[%s6350_s0 + $0x1a0] sm:$0xff]  }
  0x54   :  { %v4869_v43 = vld [vmem:[%s6350_s0 + $0x3a0] sm:$0xff]  }
  0x5a   :  { %4543 = vmatmul.mubr.msk.bf16.gmra.mrb[40].mxu0 %vm934_vm0, %v4806_v44  ;;  %4671 = vmatmul.mubr.msk.bf16.gmra.mrb[40].mxu1 %vm934_vm0, %v4807_v45  ;;  %v4870_v44 = vld [vmem:[%s6350_s0 + $0x1a8] sm:$0xff]  }
  0x5b   :  { %4546 = vmatprep.mubr.msk.bf16.mxu0 %vm934_vm0, %v4808_v46  ;;  %4674 = vmatprep.mubr.msk.bf16.mxu1 %vm934_vm0, %v4809_v47  ;;  %v4871_v45 = vld [vmem:[%s6350_s0 + $0x3a8] sm:$0xff]   ;;  %v4872_v46 = vld [vmem:[%s6350_s0 + $0x1b0] sm:$0xff]  }
  0x5c   :  { %v4873_v47 = vld [vmem:[%s6350_s0 + $0x3b0] sm:$0xff]  }
  0x62   :  { %4547 = vmatmul.mubr.msk.bf16.gmra.mrb[44].mxu0 %vm934_vm0, %v4810_v48  ;;  %4675 = vmatmul.mubr.msk.bf16.gmra.mrb[44].mxu1 %vm934_vm0, %v4811_v49  ;;  %v5362_v48 = vld [vmem:[%s6351_s2] ss:$0 sm:$0xff] }
  0x63   :  { %4550 = vmatprep.mubr.msk.bf16.mxu0 %vm934_vm0, %v4812_v50  ;;  %4678 = vmatprep.mubr.msk.bf16.mxu1 %vm934_vm0, %v4813_v51 }
  0x6a   :  { %4551 = vmatmul.mubr.msk.bf16.gmra.mrb[48].mxu0 %vm934_vm0, %v4814_v52  ;;  %4679 = vmatmul.mubr.msk.bf16.gmra.mrb[48].mxu1 %vm934_vm0, %v4815_v53 }
  0x6b   :  { %4554 = vmatprep.mubr.msk.bf16.mxu0 %vm934_vm0, %v4816_v54  ;;  %4682 = vmatprep.mubr.msk.bf16.mxu1 %vm934_vm0, %v4817_v55  ;;  %v4874_v55 = vld [vmem:[%s6350_s0 + $0x1b8] sm:$0xff]  }
  0x72   :  { %4555 = vmatmul.mubr.msk.bf16.gmra.mrb[52].mxu0 %vm934_vm0, %v4818_v56  ;;  %4683 = vmatmul.mubr.msk.bf16.gmra.mrb[52].mxu1 %vm934_vm0, %v4819_v57  ;;  %v4875_v56 = vld [vmem:[%s6350_s0 + $0x3b8] sm:$0xff]  }
  0x73   :  { %4558 = vmatprep.mubr.msk.bf16.mxu0 %vm934_vm0, %v4820_v58  ;;  %4686 = vmatprep.mubr.msk.bf16.mxu1 %vm934_vm0, %v4821_v59 }
  0x7a   :  { %4559 = vmatmul.mubr.msk.bf16.gmra.mrb[56].mxu0 %vm934_vm0, %v4822_v60  ;;  %4687 = vmatmul.mubr.msk.bf16.gmra.mrb[56].mxu1 %vm934_vm0, %v4823_v61  ;;  %v4876_v61 = vld [vmem:[%s6350_s0 + $0x1c0] sm:$0xff]  }
  0x7b   :  { %4562 = vmatprep.mubr.msk.bf16.mxu0 %vm934_vm0, %v4824_v62  ;;  %4690 = vmatprep.mubr.msk.bf16.mxu1 %vm934_vm0, %v4825_v63  ;;  %v4877_v62 = vld [vmem:[%s6350_s0 + $0x3c0] sm:$0xff]  }
  0x82   :  { %4563 = vmatmul.mubr.msk.bf16.gmra.mrb[60].mxu0 %vm934_vm0, %v4826_v0  ;;  %4691 = vmatmul.mubr.msk.bf16.gmra.mrb[60].mxu1 %vm934_vm0, %v4827_v1 }
  0x83   :  { %4566 = vmatprep.mubr.msk.bf16.mxu0 %vm934_vm0, %v4828_v2  ;;  %4694 = vmatprep.mubr.msk.bf16.mxu1 %vm934_vm0, %v4829_v3 }
  0x8a   :  { %4567 = vmatmul.mubr.msk.bf16.gmra.mrb[64].mxu0 %vm934_vm0, %v4830_v4  ;;  %4695 = vmatmul.mubr.msk.bf16.gmra.mrb[64].mxu1 %vm934_vm0, %v4831_v5 }
  0x8b   :  { %4570 = vmatprep.mubr.msk.bf16.mxu0 %vm934_vm0, %v4832_v6  ;;  %4698 = vmatprep.mubr.msk.bf16.mxu1 %vm934_vm0, %v4833_v7 }
  0x92   :  { %4571 = vmatmul.mubr.msk.bf16.gmra.mrb[68].mxu0 %vm934_vm0, %v4834_v8  ;;  %4699 = vmatmul.mubr.msk.bf16.gmra.mrb[68].mxu1 %vm934_vm0, %v4835_v9 }
  0x93   :  { %4574 = vmatprep.mubr.msk.bf16.mxu0 %vm934_vm0, %v4836_v10  ;;  %4702 = vmatprep.mubr.msk.bf16.mxu1 %vm934_vm0, %v4837_v11  ;;  %v4878_v11 = vld [vmem:[%s6350_s0 + $0x1c8] sm:$0xff]  }
  0x9a   :  { %4575 = vmatmul.mubr.msk.bf16.gmra.mrb[72].mxu0 %vm934_vm0, %v4838_v12  ;;  %4703 = vmatmul.mubr.msk.bf16.gmra.mrb[72].mxu1 %vm934_vm0, %v4839_v13  ;;  %v4879_v12 = vld [vmem:[%s6350_s0 + $0x3c8] sm:$0xff]  }
  0x9b   :  { %4578 = vmatprep.mubr.msk.bf16.mxu0 %vm934_vm0, %v4840_v14  ;;  %4706 = vmatprep.mubr.msk.bf16.mxu1 %vm934_vm0, %v4841_v15 }
  0xa2   :  { %4579 = vmatmul.mubr.msk.bf16.gmra.mrb[76].mxu0 %vm934_vm0, %v4842_v16  ;;  %4707 = vmatmul.mubr.msk.bf16.gmra.mrb[76].mxu1 %vm934_vm0, %v4843_v17  ;;  %v4880_v17 = vld [vmem:[%s6350_s0 + $0x1d0] sm:$0xff]  }
  0xa3   :  { %4582 = vmatprep.mubr.msk.bf16.mxu0 %vm934_vm0, %v4844_v18  ;;  %4710 = vmatprep.mubr.msk.bf16.mxu1 %vm934_vm0, %v4845_v19  ;;  %v4881_v18 = vld [vmem:[%s6350_s0 + $0x3d0] sm:$0xff]  }
  0xaa   :  { %4583 = vmatmul.mubr.msk.bf16.gmra.mrb[80].mxu0 %vm934_vm0, %v4846_v20  ;;  %4711 = vmatmul.mubr.msk.bf16.gmra.mrb[80].mxu1 %vm934_vm0, %v4847_v21 }
  0xab   :  { %4586 = vmatprep.mubr.msk.bf16.mxu0 %vm934_vm0, %v4848_v22  ;;  %4714 = vmatprep.mubr.msk.bf16.mxu1 %vm934_vm0, %v4849_v23 }
  0xb2   :  { %4587 = vmatmul.mubr.msk.bf16.gmra.mrb[84].mxu0 %vm934_vm0, %v4850_v24  ;;  %4715 = vmatmul.mubr.msk.bf16.gmra.mrb[84].mxu1 %vm934_vm0, %v4851_v25 }
  0xb3   :  { %4590 = vmatprep.mubr.msk.bf16.mxu0 %vm934_vm0, %v4852_v26  ;;  %4718 = vmatprep.mubr.msk.bf16.mxu1 %vm934_vm0, %v4853_v27 }
  0xba   :  { %4591 = vmatmul.mubr.msk.bf16.gmra.mrb[88].mxu0 %vm934_vm0, %v4854_v28  ;;  %4719 = vmatmul.mubr.msk.bf16.gmra.mrb[88].mxu1 %vm934_vm0, %v4855_v29 }
  0xbb   :  { %4594 = vmatprep.mubr.msk.bf16.mxu0 %vm934_vm0, %v4856_v30  ;;  %4722 = vmatprep.mubr.msk.bf16.mxu1 %vm934_vm0, %v4857_v31 }
  0xc2   :  { %4595 = vmatmul.mubr.msk.bf16.gmra.mrb[92].mxu0 %vm934_vm0, %v4858_v32  ;;  %4723 = vmatmul.mubr.msk.bf16.gmra.mrb[92].mxu1 %vm934_vm0, %v4859_v33 }
  0xc3   :  { %4598 = vmatprep.mubr.msk.bf16.mxu0 %vm934_vm0, %v4860_v34  ;;  %4726 = vmatprep.mubr.msk.bf16.mxu1 %vm934_vm0, %v4861_v35 }
  0xca   :  { %4599 = vmatmul.mubr.msk.bf16.gmra.mrb[96].mxu0 %vm934_vm0, %v4862_v36  ;;  %4727 = vmatmul.mubr.msk.bf16.gmra.mrb[96].mxu1 %vm934_vm0, %v4863_v37 }
  0xcb   :  { %4602 = vmatprep.mubr.msk.bf16.mxu0 %vm934_vm0, %v4864_v38  ;;  %4730 = vmatprep.mubr.msk.bf16.mxu1 %vm934_vm0, %v4865_v39 }
  0xd2   :  { %4603 = vmatmul.mubr.msk.bf16.gmra.mrb[100].mxu0 %vm934_vm0, %v4866_v40  ;;  %4731 = vmatmul.mubr.msk.bf16.gmra.mrb[100].mxu1 %vm934_vm0, %v4867_v41 }
  0xd3   :  { %4606 = vmatprep.mubr.msk.bf16.mxu0 %vm934_vm0, %v4868_v42  ;;  %4734 = vmatprep.mubr.msk.bf16.mxu1 %vm934_vm0, %v4869_v43  ;;  %v4882_v43 = vld [vmem:[%s6350_s0 + $0x1d8] sm:$0xff]  }
  0xda   :  { %4607 = vmatmul.mubr.msk.bf16.gmra.mrb[104].mxu0 %vm934_vm0, %v4870_v44  ;;  %4735 = vmatmul.mubr.msk.bf16.gmra.mrb[104].mxu1 %vm934_vm0, %v4871_v45  ;;  %v4883_v44 = vld [vmem:[%s6350_s0 + $0x3d8] sm:$0xff]  }
  0xdb   :  { %4610 = vmatprep.mubr.msk.bf16.mxu0 %vm934_vm0, %v4872_v46  ;;  %4738 = vmatprep.mubr.msk.bf16.mxu1 %vm934_vm0, %v4873_v47 }
  0xdd   :  { %v4504_v49 = vpop.f32.mrb[0].mxu0  ;;  %v4632_v50 = vpop.f32.mrb[0].mxu1 }
  0xde   :  { %v1362_v51 = vadd.f32 %v4504_v49, %v5362_v48  ;;  %v1874_v52 = vadd.f32 %v4632_v50, %v5362_v48  ;;  %v1353_v53 = vpop.f32.mrb[1].mxu0  ;;  %v1865_v54 = vpop.f32.mrb[1].mxu1  ;;  %v4884_v50 = vld [vmem:[%s6350_s0 + $0x1e0] sm:$0xff]  }
  0xdf   :  { %v1354_v57 = vadd.f32 %v5362_v48, %v1353_v53  ;;  %v1866_v58 = vadd.f32 %v5362_v48, %v1865_v54  ;;  %v4505_v59 = vpop.f32.mrb[2].mxu0  ;;  %v4633_v60 = vpop.f32.mrb[2].mxu1 }
  0xe0   :  { %2379 = vst.msk [vmem:[#allocation2 + $0x10] sm:$0xff] %vm2376_vm1, %v1362_v51  ;;  %2507 = vst.msk [vmem:[#allocation2 + $0x410] sm:$0xff] %vm2376_vm1, %v1874_v52  ;;  %v1365_v63 = vadd.f32 %v4505_v59, %v5362_v48  ;;  %v1877_v0 = vadd.f32 %v4633_v60, %v5362_v48  ;;  %v1356_v1 = vpop.f32.mrb[3].mxu0  ;;  %v1868_v2 = vpop.f32.mrb[3].mxu1  ;;  %v4885_v51 = vld [vmem:[%s6350_s0 + $0x3e0] sm:$0xff]  }
  0xe1   :  { %2377 = vst.msk [vmem:[#allocation2] sm:$0xff] %vm2376_vm1, %v1354_v57  ;;  %2505 = vst.msk [vmem:[#allocation2 + $0x400] sm:$0xff] %vm2376_vm1, %v1866_v58  ;;  %v1357_v3 = vadd.f32 %v5362_v48, %v1356_v1  ;;  %v1869_v4 = vadd.f32 %v5362_v48, %v1868_v2 }
  0xe2   :  { %2380 = vst.msk [vmem:[#allocation2 + $0x18] sm:$0xff] %vm2376_vm1, %v1365_v63  ;;  %2508 = vst.msk [vmem:[#allocation2 + $0x418] sm:$0xff] %vm2376_vm1, %v1877_v0  ;;  %4611 = vmatmul.mubr.msk.bf16.gmra.mrb[108].mxu0 %vm934_vm0, %v4874_v55  ;;  %4739 = vmatmul.mubr.msk.bf16.gmra.mrb[108].mxu1 %vm934_vm0, %v4875_v56 }
  0xe3   :  { %2378 = vst.msk [vmem:[#allocation2 + $0x8] sm:$0xff] %vm2376_vm1, %v1357_v3  ;;  %2506 = vst.msk [vmem:[#allocation2 + $0x408] sm:$0xff] %vm2376_vm1, %v1869_v4  ;;  %4614 = vmatprep.mubr.msk.bf16.mxu0 %vm934_vm0, %v4876_v61  ;;  %4742 = vmatprep.mubr.msk.bf16.mxu1 %vm934_vm0, %v4877_v62 }
  0xe5   :  { %v4508_v5 = vpop.f32.mrb[4].mxu0  ;;  %v4636_v6 = vpop.f32.mrb[4].mxu1 }
  0xe6   :  { %v1378_v7 = vadd.f32 %v4508_v5, %v5362_v48  ;;  %v1890_v8 = vadd.f32 %v4636_v6, %v5362_v48  ;;  %v1369_v9 = vpop.f32.mrb[5].mxu0  ;;  %v1881_v10 = vpop.f32.mrb[5].mxu1 }
  0xe7   :  { %v1370_v13 = vadd.f32 %v5362_v48, %v1369_v9  ;;  %v1882_v14 = vadd.f32 %v5362_v48, %v1881_v10  ;;  %v4509_v15 = vpop.f32.mrb[6].mxu0  ;;  %v4637_v16 = vpop.f32.mrb[6].mxu1 }
  0xe8   :  { %2383 = vst.msk [vmem:[#allocation2 + $0x30] sm:$0xff] %vm2376_vm1, %v1378_v7  ;;  %2511 = vst.msk [vmem:[#allocation2 + $0x430] sm:$0xff] %vm2376_vm1, %v1890_v8  ;;  %v1381_v19 = vadd.f32 %v4509_v15, %v5362_v48  ;;  %v1893_v20 = vadd.f32 %v4637_v16, %v5362_v48  ;;  %v1372_v21 = vpop.f32.mrb[7].mxu0  ;;  %v1884_v22 = vpop.f32.mrb[7].mxu1 }
  0xe9   :  { %v2635_v23 = vld [vmem:[#allocation2 + $0x10] ss:$2 sm:$0xff]  ;;  %v2891_v24 = vld [vmem:[#allocation2 + $0x11] ss:$2 sm:$0xff]  ;;  %2381 = vst.msk [vmem:[#allocation2 + $0x20] sm:$0xff] %vm2376_vm1, %v1370_v13  ;;  %2509 = vst.msk [vmem:[#allocation2 + $0x420] sm:$0xff] %vm2376_vm1, %v1882_v14  ;;  %v1373_v26 = vadd.f32 %v5362_v48, %v1372_v21  ;;  %v1885_v27 = vadd.f32 %v5362_v48, %v1884_v22 }
  0xea   :  { %v2763_v25 = vld [vmem:[#allocation2 + $0x410] ss:$2 sm:$0xff]  ;;  %v3145_v28 = vmax.f32 %v2635_v23, %v2891_v24  ;;  %v3019_v29 = vld [vmem:[#allocation2 + $0x411] ss:$2 sm:$0xff]  ;;  %v2633_v30 = vld [vmem:[#allocation2] ss:$2 sm:$0xff]  ;;  %4615 = vmatmul.mubr.msk.bf16.gmra.mrb[112].mxu0 %vm934_vm0, %v4878_v11  ;;  %4743 = vmatmul.mubr.msk.bf16.gmra.mrb[112].mxu1 %vm934_vm0, %v4879_v12 }
  0xeb   :  { %v2889_v31 = vld [vmem:[#allocation2 + $0x1] ss:$2 sm:$0xff]  ;;  %2384 = vst.msk [vmem:[#allocation2 + $0x38] sm:$0xff] %vm2376_vm1, %v1381_v19  ;;  %2512 = vst.msk [vmem:[#allocation2 + $0x438] sm:$0xff] %vm2376_vm1, %v1893_v20  ;;  %v3209_v32 = vmax.f32 %v2763_v25, %v3019_v29  ;;  %v2761_v34 = vld [vmem:[#allocation2 + $0x400] ss:$2 sm:$0xff]  ;;  %4618 = vmatprep.mubr.msk.bf16.mxu0 %vm934_vm0, %v4880_v17  ;;  %4746 = vmatprep.mubr.msk.bf16.mxu1 %vm934_vm0, %v4881_v18 }
  0xec   :  { %v3144_v33 = vmax.f32 %v2633_v30, %v2889_v31  ;;  %v3017_v35 = vld [vmem:[#allocation2 + $0x401] ss:$2 sm:$0xff]  ;;  %2382 = vst.msk [vmem:[#allocation2 + $0x28] sm:$0xff] %vm2376_vm1, %v1373_v26  ;;  %2510 = vst.msk [vmem:[#allocation2 + $0x428] sm:$0xff] %vm2376_vm1, %v1885_v27  ;;  %v4888_v18 = vld [vmem:[%s6350_s0 + $0x1f0] sm:$0xff]  }
  0xed   :  { %3273 = vst.msk [vmem:[#allocation3 + $0x8] sm:$0xff] %vm2376_vm1, %v3145_v28  ;;  %v3208_v36 = vmax.f32 %v2761_v34, %v3017_v35  ;;  %3337 = vst.msk [vmem:[#allocation3 + $0x208] sm:$0xff] %vm2376_vm1, %v3209_v32  ;;  %v4512_v37 = vpop.f32.mrb[8].mxu0  ;;  %v4640_v38 = vpop.f32.mrb[8].mxu1  ;;  %v4886_v12 = vld [vmem:[%s6350_s0 + $0x1e8] sm:$0xff]   ;;  %v4889_v19 = vld [vmem:[%s6350_s0 + $0x3f0] sm:$0xff]  }
  0xee   :  { %3272 = vst.msk [vmem:[#allocation3] sm:$0xff] %vm2376_vm1, %v3144_v33  ;;  %v1394_v39 = vadd.f32 %v4512_v37, %v5362_v48  ;;  %v1906_v40 = vadd.f32 %v4640_v38, %v5362_v48  ;;  %v1385_v41 = vpop.f32.mrb[9].mxu0  ;;  %v1897_v42 = vpop.f32.mrb[9].mxu1  ;;  %v4887_v13 = vld [vmem:[%s6350_s0 + $0x3e8] sm:$0xff]  }
  0xef   :  { %3336 = vst.msk [vmem:[#allocation3 + $0x200] sm:$0xff] %vm2376_vm1, %v3208_v36  ;;  %v1386_v45 = vadd.f32 %v5362_v48, %v1385_v41  ;;  %v1898_v46 = vadd.f32 %v5362_v48, %v1897_v42  ;;  %v4513_v47 = vpop.f32.mrb[10].mxu0  ;;  %v4641_v49 = vpop.f32.mrb[10].mxu1 }
  0xf0   :  { %2387 = vst.msk [vmem:[#allocation2 + $0x50] sm:$0xff] %vm2376_vm1, %v1394_v39  ;;  %2515 = vst.msk [vmem:[#allocation2 + $0x450] sm:$0xff] %vm2376_vm1, %v1906_v40  ;;  %v1397_v52 = vadd.f32 %v4513_v47, %v5362_v48  ;;  %v1909_v53 = vadd.f32 %v4641_v49, %v5362_v48  ;;  %v1388_v54 = vpop.f32.mrb[11].mxu0  ;;  %v1900_v55 = vpop.f32.mrb[11].mxu1 }
  0xf1   :  { %2385 = vst.msk [vmem:[#allocation2 + $0x40] sm:$0xff] %vm2376_vm1, %v1386_v45  ;;  %2513 = vst.msk [vmem:[#allocation2 + $0x440] sm:$0xff] %vm2376_vm1, %v1898_v46  ;;  %v1389_v59 = vadd.f32 %v5362_v48, %v1388_v54  ;;  %v1901_v60 = vadd.f32 %v5362_v48, %v1900_v55 }
  0xf2   :  { %v2639_v56 = vld [vmem:[#allocation2 + $0x30] ss:$2 sm:$0xff]  ;;  %v2895_v57 = vld [vmem:[#allocation2 + $0x31] ss:$2 sm:$0xff]  ;;  %2388 = vst.msk [vmem:[#allocation2 + $0x58] sm:$0xff] %vm2376_vm1, %v1397_v52  ;;  %2516 = vst.msk [vmem:[#allocation2 + $0x458] sm:$0xff] %vm2376_vm1, %v1909_v53  ;;  %4619 = vmatmul.mubr.msk.bf16.gmra.mrb[116].mxu0 %vm934_vm0, %v4882_v43  ;;  %4747 = vmatmul.mubr.msk.bf16.gmra.mrb[116].mxu1 %vm934_vm0, %v4883_v44 }
  0xf3   :  { %v2767_v58 = vld [vmem:[#allocation2 + $0x430] ss:$2 sm:$0xff]  ;;  %v3147_v61 = vmax.f32 %v2639_v56, %v2895_v57  ;;  %v3023_v62 = vld [vmem:[#allocation2 + $0x431] ss:$2 sm:$0xff]  ;;  %v2637_v63 = vld [vmem:[#allocation2 + $0x20] ss:$2 sm:$0xff]  ;;  %4622 = vmatprep.mubr.msk.bf16.mxu0 %vm934_vm0, %v4884_v50  ;;  %4750 = vmatprep.mubr.msk.bf16.mxu1 %vm934_vm0, %v4885_v51 }
  0xf4   :  { %v2893_v0 = vld [vmem:[#allocation2 + $0x21] ss:$2 sm:$0xff]  ;;  %v3211_v1 = vmax.f32 %v2767_v58, %v3023_v62  ;;  %v2765_v3 = vld [vmem:[#allocation2 + $0x420] ss:$2 sm:$0xff]  ;;  %2386 = vst.msk [vmem:[#allocation2 + $0x48] sm:$0xff] %vm2376_vm1, %v1389_v59  ;;  %2514 = vst.msk [vmem:[#allocation2 + $0x448] sm:$0xff] %vm2376_vm1, %v1901_v60 }
  0xf5   :  { %v3146_v2 = vmax.f32 %v2637_v63, %v2893_v0  ;;  %v3021_v4 = vld [vmem:[#allocation2 + $0x421] ss:$2 sm:$0xff]  ;;  %3275 = vst.msk [vmem:[#allocation3 + $0x18] sm:$0xff] %vm2376_vm1, %v3147_v61  ;;  %v4516_v6 = vpop.f32.mrb[12].mxu0  ;;  %v4644_v7 = vpop.f32.mrb[12].mxu1  ;;  %v4890_v58 = vld [vmem:[%s6350_s0 + $0x1f8] sm:$0xff]  }
  0xf6   :  { %v3210_v5 = vmax.f32 %v2765_v3, %v3021_v4  ;;  %3339 = vst.msk [vmem:[#allocation3 + $0x218] sm:$0xff] %vm2376_vm1, %v3211_v1  ;;  %v1410_v8 = vadd.f32 %v4516_v6, %v5362_v48  ;;  %v1922_v9 = vadd.f32 %v4644_v7, %v5362_v48  ;;  %v1401_v10 = vpop.f32.mrb[13].mxu0  ;;  %v1913_v11 = vpop.f32.mrb[13].mxu1  ;;  %v3401_v24 = vld [vmem:[#allocation3 + $0x8] sm:$0xff]  ;;  %v3400_v40 = vld [vmem:[#allocation3] sm:$0xff]  ;;  %v4891_v59 = vld [vmem:[%s6350_s0 + $0x3f8] sm:$0xff]  }
  0xf7   :  { %3274 = vst.msk [vmem:[#allocation3 + $0x10] sm:$0xff] %vm2376_vm1, %v3146_v2  ;;  %v1402_v14 = vadd.f32 %v5362_v48, %v1401_v10  ;;  %v1914_v15 = vadd.f32 %v5362_v48, %v1913_v11  ;;  %v4517_v16 = vpop.f32.mrb[14].mxu0  ;;  %v4645_v17 = vpop.f32.mrb[14].mxu1  ;;  %v3433_v30 = vld [vmem:[#allocation3 + $0x208] sm:$0xff]  ;;  %v3432_v45 = vld [vmem:[#allocation3 + $0x200] sm:$0xff] }
  0xf8   :  { %3338 = vst.msk [vmem:[#allocation3 + $0x210] sm:$0xff] %vm2376_vm1, %v3210_v5  ;;  %2391 = vst.msk [vmem:[#allocation2 + $0x70] sm:$0xff] %vm2376_vm1, %v1410_v8  ;;  %v1413_v20 = vadd.f32 %v4517_v16, %v5362_v48  ;;  %v1925_v21 = vadd.f32 %v4645_v17, %v5362_v48  ;;  %v1404_v22 = vpop.f32.mrb[15].mxu0  ;;  %v1916_v23 = vpop.f32.mrb[15].mxu1 }
  0xf9   :  { %2519 = vst.msk [vmem:[#allocation2 + $0x470] sm:$0xff] %vm2376_vm1, %v1922_v9  ;;  %v2643_v25 = vld [vmem:[#allocation2 + $0x50] ss:$2 sm:$0xff]  ;;  %v2899_v26 = vld [vmem:[#allocation2 + $0x51] ss:$2 sm:$0xff]  ;;  %2389 = vst.msk [vmem:[#allocation2 + $0x60] sm:$0xff] %vm2376_vm1, %v1402_v14  ;;  %v1405_v28 = vadd.f32 %v5362_v48, %v1404_v22  ;;  %v1917_v29 = vadd.f32 %v5362_v48, %v1916_v23 }
  0xfa   :  { %v2771_v27 = vld [vmem:[#allocation2 + $0x450] ss:$2 sm:$0xff]  ;;  %2517 = vst.msk [vmem:[#allocation2 + $0x460] sm:$0xff] %vm2376_vm1, %v1914_v15  ;;  %v3149_v31 = vmax.f32 %v2643_v25, %v2899_v26  ;;  %v3027_v32 = vld [vmem:[#allocation2 + $0x451] ss:$2 sm:$0xff]  ;;  %2392 = vst.msk [vmem:[#allocation2 + $0x78] sm:$0xff] %vm2376_vm1, %v1413_v20  ;;  %4623 = vmatmul.mubr.msk.bf16.gmra.mrb[120].mxu0 %vm934_vm0, %v4886_v12  ;;  %4751 = vmatmul.mubr.msk.bf16.gmra.mrb[120].mxu1 %vm934_vm0, %v4887_v13 }
  0xfb   :  { %v2641_v33 = vld [vmem:[#allocation2 + $0x40] ss:$2 sm:$0xff]  ;;  %v2897_v34 = vld [vmem:[#allocation2 + $0x41] ss:$2 sm:$0xff]  ;;  %2520 = vst.msk [vmem:[#allocation2 + $0x478] sm:$0xff] %vm2376_vm1, %v1925_v21  ;;  %v3213_v36 = vmax.f32 %v2771_v27, %v3027_v32  ;;  %2390 = vst.msk [vmem:[#allocation2 + $0x68] sm:$0xff] %vm2376_vm1, %v1405_v28  ;;  %4626 = vmatprep.mubr.msk.bf16.mxu0 %vm934_vm0, %v4888_v18  ;;  %4754 = vmatprep.mubr.msk.bf16.mxu1 %vm934_vm0, %v4889_v19 }
  0xfc   :  { %v3465_v35 = vld [vmem:[#allocation3 + $0x18] sm:$0xff]  ;;  %v3148_v37 = vmax.f32 %v2641_v33, %v2897_v34  ;;  %v2769_v38 = vld [vmem:[#allocation2 + $0x440] ss:$2 sm:$0xff]  ;;  %v3025_v39 = vld [vmem:[#allocation2 + $0x441] ss:$2 sm:$0xff]  ;;  %2518 = vst.msk [vmem:[#allocation2 + $0x468] sm:$0xff] %vm2376_vm1, %v1917_v29 }
  0xfd   :  { %v3529_v41 = vmax.f32 %v3401_v24, %v3465_v35  ;;  %v3497_v42 = vld [vmem:[#allocation3 + $0x218] sm:$0xff]  ;;  %3277 = vst.msk [vmem:[#allocation3 + $0x28] sm:$0xff] %vm2376_vm1, %v3149_v31  ;;  %v3212_v44 = vmax.f32 %v2769_v38, %v3025_v39  ;;  %3341 = vst.msk [vmem:[#allocation3 + $0x228] sm:$0xff] %vm2376_vm1, %v3213_v36  ;;  %v4520_v50 = vpop.f32.mrb[16].mxu0  ;;  %v4648_v51 = vpop.f32.mrb[16].mxu1 }
  0xfe   :  { %v3464_v43 = vld [vmem:[#allocation3 + $0x10] sm:$0xff]  ;;  %v3561_v46 = vmax.f32 %v3433_v30, %v3497_v42  ;;  %3276 = vst.msk [vmem:[#allocation3 + $0x20] sm:$0xff] %vm2376_vm1, %v3148_v37  ;;  %v1426_v54 = vadd.f32 %v4520_v50, %v5362_v48  ;;  %v1938_v55 = vadd.f32 %v4648_v51, %v5362_v48  ;;  %v1417_v56 = vpop.f32.mrb[17].mxu0  ;;  %v1929_v57 = vpop.f32.mrb[17].mxu1 }
  0xff   :  { %v3528_v47 = vmax.f32 %v3400_v40, %v3464_v43  ;;  %v3496_v49 = vld [vmem:[#allocation3 + $0x210] sm:$0xff]  ;;  %v3593_v52 = vmax.f32 %v3529_v41, 0.0  ;;  %3340 = vst.msk [vmem:[#allocation3 + $0x220] sm:$0xff] %vm2376_vm1, %v3212_v44  ;;  %v1418_v62 = vadd.f32 %v5362_v48, %v1417_v56  ;;  %v1930_v63 = vadd.f32 %v5362_v48, %v1929_v57  ;;  %v4521_v0 = vpop.f32.mrb[18].mxu0  ;;  %v4649_v1 = vpop.f32.mrb[18].mxu1 }
 0x100   :  { %v3560_v53 = vmax.f32 %v3432_v45, %v3496_v49  ;;  %v3625_v60 = vmax.f32 %v3561_v46, 0.0  ;;  %2395 = vst.msk [vmem:[#allocation2 + $0x90] sm:$0xff] %vm2376_vm1, %v1426_v54  ;;  %2523 = vst.msk [vmem:[#allocation2 + $0x490] sm:$0xff] %vm2376_vm1, %v1938_v55  ;;  %v1429_v4 = vadd.f32 %v4521_v0, %v5362_v48  ;;  %v1941_v5 = vadd.f32 %v4649_v1, %v5362_v48  ;;  %v1420_v6 = vpop.f32.mrb[19].mxu0  ;;  %v1932_v7 = vpop.f32.mrb[19].mxu1 }
 0x101   :  { %v3592_v61 = vmax.f32 %v3528_v47, 0.0  ;;  %v4305_v2 = vpack.c.bf16 %v3593_v52, %v3593_v52  ;;  %v2647_v10 = vld [vmem:[#allocation2 + $0x70] ss:$2 sm:$0xff]  ;;  %v2903_v11 = vld [vmem:[#allocation2 + $0x71] ss:$2 sm:$0xff]  ;;  %2393 = vst.msk [vmem:[#allocation2 + $0x80] sm:$0xff] %vm2376_vm1, %v1418_v62  ;;  %v1421_v13 = vadd.f32 %v5362_v48, %v1420_v6  ;;  %v1933_v14 = vadd.f32 %v5362_v48, %v1932_v7 }
 0x102   :  { %v3624_v3 = vmax.f32 %v3560_v53, 0.0  ;;  %v4337_v8 = vpack.c.bf16 %v3625_v60, %v3625_v60  ;;  %v2775_v12 = vld [vmem:[#allocation2 + $0x470] ss:$2 sm:$0xff]  ;;  %2521 = vst.msk [vmem:[#allocation2 + $0x480] sm:$0xff] %vm2376_vm1, %v1930_v63  ;;  %v3151_v16 = vmax.f32 %v2647_v10, %v2903_v11  ;;  %v3031_v17 = vld [vmem:[#allocation2 + $0x471] ss:$2 sm:$0xff]  ;;  %4627 = vmatmul.mubr.msk.bf16.gmra.mrb[124].mxu0 %vm934_vm0, %v4890_v58  ;;  %4755 = vmatmul.mubr.msk.bf16.gmra.mrb[124].mxu1 %vm934_vm0, %v4891_v59 }
 0x103   :  { %v4304_v9 = vpack.c.bf16 %v3592_v61, %v3592_v61  ;;  %3914 = vst.msk [vmem:[%s6352_s3 + $0x4] sm:$0xf] %vm3912_vm2, %v4305_v2  ;;  %v2645_v18 = vld [vmem:[#allocation2 + $0x60] ss:$2 sm:$0xff]  ;;  %v2901_v19 = vld [vmem:[#allocation2 + $0x61] ss:$2 sm:$0xff]  ;;  %v3215_v20 = vmax.f32 %v2775_v12, %v3031_v17 }
 0x104   :  { %v4336_v15 = vpack.c.bf16 %v3624_v3, %v3624_v3  ;;  %2396 = vst.msk [vmem:[#allocation2 + $0x98] sm:$0xff] %vm2376_vm1, %v1429_v4  ;;  %2524 = vst.msk [vmem:[#allocation2 + $0x498] sm:$0xff] %vm2376_vm1, %v1941_v5  ;;  %v3150_v21 = vmax.f32 %v2645_v18, %v2901_v19  ;;  %v2773_v22 = vld [vmem:[#allocation2 + $0x460] ss:$2 sm:$0xff]  ;;  %v3029_v23 = vld [vmem:[#allocation2 + $0x461] ss:$2 sm:$0xff] }
 0x105   :  { %3946 = vst.msk [vmem:[%s6352_s3 + $0x84] sm:$0xf] %vm3912_vm2, %v4337_v8  ;;  %3913 = vst.msk [vmem:[%s6352_s3] sm:$0xf] %vm3912_vm2, %v4304_v9  ;;  %v3214_v24 = vmax.f32 %v2773_v22, %v3029_v23  ;;  %v4524_v25 = vpop.f32.mrb[20].mxu0  ;;  %v4652_v26 = vpop.f32.mrb[20].mxu1 }
 0x106   :  { %2394 = vst.msk [vmem:[#allocation2 + $0x88] sm:$0xff] %vm2376_vm1, %v1421_v13  ;;  %2522 = vst.msk [vmem:[#allocation2 + $0x488] sm:$0xff] %vm2376_vm1, %v1933_v14  ;;  %v1442_v27 = vadd.f32 %v4524_v25, %v5362_v48  ;;  %v1954_v28 = vadd.f32 %v4652_v26, %v5362_v48  ;;  %v1433_v29 = vpop.f32.mrb[21].mxu0  ;;  %v1945_v30 = vpop.f32.mrb[21].mxu1  ;;  %v3403_v39 = vld [vmem:[#allocation3 + $0x28] sm:$0xff]  ;;  %v3402_v56 = vld [vmem:[#allocation3 + $0x20] sm:$0xff] }
 0x107   :  { %3945 = vst.msk [vmem:[%s6352_s3 + $0x80] sm:$0xf] %vm3912_vm2, %v4336_v15  ;;  %v1434_v31 = vadd.f32 %v5362_v48, %v1433_v29  ;;  %v1946_v32 = vadd.f32 %v5362_v48, %v1945_v30  ;;  %v4525_v33 = vpop.f32.mrb[22].mxu0  ;;  %v4653_v34 = vpop.f32.mrb[22].mxu1  ;;  %v3435_v45 = vld [vmem:[#allocation3 + $0x228] sm:$0xff]  ;;  %v3434_v61 = vld [vmem:[#allocation3 + $0x220] sm:$0xff] }
 0x108   :  { %3279 = vst.msk [vmem:[#allocation3 + $0x38] sm:$0xff] %vm2376_vm1, %v3151_v16  ;;  %3343 = vst.msk [vmem:[#allocation3 + $0x238] sm:$0xff] %vm2376_vm1, %v3215_v20  ;;  %v1445_v35 = vadd.f32 %v4525_v33, %v5362_v48  ;;  %v1957_v36 = vadd.f32 %v4653_v34, %v5362_v48  ;;  %v1436_v37 = vpop.f32.mrb[23].mxu0  ;;  %v1948_v38 = vpop.f32.mrb[23].mxu1 }
 0x109   :  { %3278 = vst.msk [vmem:[#allocation3 + $0x30] sm:$0xff] %vm2376_vm1, %v3150_v21  ;;  %3342 = vst.msk [vmem:[#allocation3 + $0x230] sm:$0xff] %vm2376_vm1, %v3214_v24  ;;  %v1437_v43 = vadd.f32 %v5362_v48, %v1436_v37  ;;  %v1949_v44 = vadd.f32 %v5362_v48, %v1948_v38 }
 0x10a   :  { %2399 = vst.msk [vmem:[#allocation2 + $0xb0] sm:$0xff] %vm2376_vm1, %v1442_v27  ;;  %2527 = vst.msk [vmem:[#allocation2 + $0x4b0] sm:$0xff] %vm2376_vm1, %v1954_v28 }
 0x10b   :  { %v2651_v40 = vld [vmem:[#allocation2 + $0x90] ss:$2 sm:$0xff]  ;;  %v2907_v41 = vld [vmem:[#allocation2 + $0x91] ss:$2 sm:$0xff]  ;;  %2397 = vst.msk [vmem:[#allocation2 + $0xa0] sm:$0xff] %vm2376_vm1, %v1434_v31  ;;  %2525 = vst.msk [vmem:[#allocation2 + $0x4a0] sm:$0xff] %vm2376_vm1, %v1946_v32 }
 0x10c   :  { %v2779_v42 = vld [vmem:[#allocation2 + $0x490] ss:$2 sm:$0xff]  ;;  %v3153_v46 = vmax.f32 %v2651_v40, %v2907_v41  ;;  %v3035_v47 = vld [vmem:[#allocation2 + $0x491] ss:$2 sm:$0xff]  ;;  %2400 = vst.msk [vmem:[#allocation2 + $0xb8] sm:$0xff] %vm2376_vm1, %v1445_v35  ;;  %2528 = vst.msk [vmem:[#allocation2 + $0x4b8] sm:$0xff] %vm2376_vm1, %v1957_v36 }
 0x10d   :  { %v2649_v49 = vld [vmem:[#allocation2 + $0x80] ss:$2 sm:$0xff]  ;;  %v2905_v50 = vld [vmem:[#allocation2 + $0x81] ss:$2 sm:$0xff]  ;;  %v3217_v52 = vmax.f32 %v2779_v42, %v3035_v47  ;;  %2398 = vst.msk [vmem:[#allocation2 + $0xa8] sm:$0xff] %vm2376_vm1, %v1437_v43  ;;  %2526 = vst.msk [vmem:[#allocation2 + $0x4a8] sm:$0xff] %vm2376_vm1, %v1949_v44 }
 0x10e   :  { %v3152_v53 = vmax.f32 %v2649_v49, %v2905_v50  ;;  %v2777_v54 = vld [vmem:[#allocation2 + $0x480] ss:$2 sm:$0xff]  ;;  %v3033_v55 = vld [vmem:[#allocation2 + $0x481] ss:$2 sm:$0xff]  ;;  %3281 = vst.msk [vmem:[#allocation3 + $0x48] sm:$0xff] %vm2376_vm1, %v3153_v46  ;;  %v4528_v1 = vpop.f32.mrb[24].mxu0 }
 0x10f   :  { %v3467_v51 = vld [vmem:[#allocation3 + $0x38] sm:$0xff]  ;;  %v3216_v60 = vmax.f32 %v2777_v54, %v3033_v55  ;;  %3345 = vst.msk [vmem:[#allocation3 + $0x248] sm:$0xff] %vm2376_vm1, %v3217_v52  ;;  %v4656_v2 = vpop.f32.mrb[24].mxu1  ;;  %v1458_v5 = vadd.f32 %v4528_v1, %v5362_v48  ;;  %v1449_v7 = vpop.f32.mrb[25].mxu0 }
 0x110   :  { %v3531_v57 = vmax.f32 %v3403_v39, %v3467_v51  ;;  %v3499_v58 = vld [vmem:[#allocation3 + $0x238] sm:$0xff]  ;;  %v3466_v59 = vld [vmem:[#allocation3 + $0x30] sm:$0xff]  ;;  %3280 = vst.msk [vmem:[#allocation3 + $0x40] sm:$0xff] %vm2376_vm1, %v3152_v53  ;;  %v1970_v6 = vadd.f32 %v4656_v2, %v5362_v48  ;;  %v1961_v8 = vpop.f32.mrb[25].mxu1  ;;  %v1450_v11 = vadd.f32 %v5362_v48, %v1449_v7  ;;  %v4529_v13 = vpop.f32.mrb[26].mxu0 }
 0x111   :  { %v3563_v62 = vmax.f32 %v3435_v45, %v3499_v58  ;;  %v3530_v63 = vmax.f32 %v3402_v56, %v3466_v59  ;;  %v3498_v0 = vld [vmem:[#allocation3 + $0x230] sm:$0xff]  ;;  %3344 = vst.msk [vmem:[#allocation3 + $0x240] sm:$0xff] %vm2376_vm1, %v3216_v60  ;;  %v1962_v12 = vadd.f32 %v5362_v48, %v1961_v8  ;;  %v4657_v14 = vpop.f32.mrb[26].mxu1  ;;  %2403 = vst.msk [vmem:[#allocation2 + $0xd0] sm:$0xff] %vm2376_vm1, %v1458_v5  ;;  %v1452_v19 = vpop.f32.mrb[27].mxu0 }
 0x112   :  { %v3595_v3 = vmax.f32 %v3531_v57, 0.0  ;;  %v3562_v4 = vmax.f32 %v3434_v61, %v3498_v0  ;;  %2531 = vst.msk [vmem:[#allocation2 + $0x4d0] sm:$0xff] %vm2376_vm1, %v1970_v6  ;;  %v1461_v17 = vadd.f32 %v4529_v13, %v5362_v48  ;;  %v1973_v18 = vadd.f32 %v4657_v14, %v5362_v48  ;;  %v1964_v20 = vpop.f32.mrb[27].mxu1  ;;  %2401 = vst.msk [vmem:[#allocation2 + $0xc0] sm:$0xff] %vm2376_vm1, %v1450_v11 }
 0x113   :  { %v3627_v9 = vmax.f32 %v3563_v62, 0.0  ;;  %v3594_v10 = vmax.f32 %v3530_v63, 0.0  ;;  %v2655_v23 = vld [vmem:[#allocation2 + $0xb0] ss:$2 sm:$0xff]  ;;  %v2911_v24 = vld [vmem:[#allocation2 + $0xb1] ss:$2 sm:$0xff]  ;;  %v1453_v26 = vadd.f32 %v5362_v48, %v1452_v19  ;;  %v1965_v27 = vadd.f32 %v5362_v48, %v1964_v20 }
 0x114   :  { %v4307_v15 = vpack.c.bf16 %v3595_v3, %v3595_v3  ;;  %v3626_v16 = vmax.f32 %v3562_v4, 0.0  ;;  %v2783_v25 = vld [vmem:[#allocation2 + $0x4b0] ss:$2 sm:$0xff]  ;;  %2529 = vst.msk [vmem:[#allocation2 + $0x4c0] sm:$0xff] %vm2376_vm1, %v1962_v12  ;;  %v3155_v29 = vmax.f32 %v2655_v23, %v2911_v24  ;;  %v3039_v30 = vld [vmem:[#allocation2 + $0x4b1] ss:$2 sm:$0xff] }
 0x115   :  { %v4339_v21 = vpack.c.bf16 %v3627_v9, %v3627_v9  ;;  %v4306_v22 = vpack.c.bf16 %v3594_v10, %v3594_v10  ;;  %v2653_v31 = vld [vmem:[#allocation2 + $0xa0] ss:$2 sm:$0xff]  ;;  %v2909_v32 = vld [vmem:[#allocation2 + $0xa1] ss:$2 sm:$0xff]  ;;  %2404 = vst.msk [vmem:[#allocation2 + $0xd8] sm:$0xff] %vm2376_vm1, %v1461_v17  ;;  %2532 = vst.msk [vmem:[#allocation2 + $0x4d8] sm:$0xff] %vm2376_vm1, %v1973_v18  ;;  %v3219_v33 = vmax.f32 %v2783_v25, %v3039_v30 }
 0x116   :  { %3916 = vst.msk [vmem:[%s6352_s3 + $0xc] sm:$0xf] %vm3912_vm2, %v4307_v15  ;;  %v4338_v28 = vpack.c.bf16 %v3626_v16, %v3626_v16  ;;  %v3154_v34 = vmax.f32 %v2653_v31, %v2909_v32  ;;  %v2781_v35 = vld [vmem:[#allocation2 + $0x4a0] ss:$2 sm:$0xff]  ;;  %v3037_v36 = vld [vmem:[#allocation2 + $0x4a1] ss:$2 sm:$0xff] }
 0x117   :  { %3948 = vst.msk [vmem:[%s6352_s3 + $0x8c] sm:$0xf] %vm3912_vm2, %v4339_v21  ;;  %3915 = vst.msk [vmem:[%s6352_s3 + $0x8] sm:$0xf] %vm3912_vm2, %v4306_v22  ;;  %v3218_v37 = vmax.f32 %v2781_v35, %v3037_v36  ;;  %v4532_v38 = vpop.f32.mrb[28].mxu0  ;;  %v4660_v39 = vpop.f32.mrb[28].mxu1 }
 0x118   :  { %2402 = vst.msk [vmem:[#allocation2 + $0xc8] sm:$0xff] %vm2376_vm1, %v1453_v26  ;;  %2530 = vst.msk [vmem:[#allocation2 + $0x4c8] sm:$0xff] %vm2376_vm1, %v1965_v27  ;;  %v1474_v40 = vadd.f32 %v4532_v38, %v5362_v48  ;;  %v1986_v41 = vadd.f32 %v4660_v39, %v5362_v48  ;;  %v1465_v42 = vpop.f32.mrb[29].mxu0  ;;  %v1977_v43 = vpop.f32.mrb[29].mxu1  ;;  %v3405_v53 = vld [vmem:[#allocation3 + $0x48] sm:$0xff]  ;;  %v3404_v5 = vld [vmem:[#allocation3 + $0x40] sm:$0xff] }
 0x119   :  { %3947 = vst.msk [vmem:[%s6352_s3 + $0x88] sm:$0xf] %vm3912_vm2, %v4338_v28  ;;  %v1466_v44 = vadd.f32 %v5362_v48, %v1465_v42  ;;  %v1978_v45 = vadd.f32 %v5362_v48, %v1977_v43  ;;  %v4533_v46 = vpop.f32.mrb[30].mxu0  ;;  %v4661_v47 = vpop.f32.mrb[30].mxu1  ;;  %v3437_v59 = vld [vmem:[#allocation3 + $0x248] sm:$0xff]  ;;  %v3436_v10 = vld [vmem:[#allocation3 + $0x240] sm:$0xff] }
 0x11a   :  { %3283 = vst.msk [vmem:[#allocation3 + $0x58] sm:$0xff] %vm2376_vm1, %v3155_v29  ;;  %3347 = vst.msk [vmem:[#allocation3 + $0x258] sm:$0xff] %vm2376_vm1, %v3219_v33  ;;  %v1477_v49 = vadd.f32 %v4533_v46, %v5362_v48  ;;  %v1989_v50 = vadd.f32 %v4661_v47, %v5362_v48  ;;  %v1468_v51 = vpop.f32.mrb[31].mxu0  ;;  %v1980_v52 = vpop.f32.mrb[31].mxu1 }
 0x11b   :  { %3282 = vst.msk [vmem:[#allocation3 + $0x50] sm:$0xff] %vm2376_vm1, %v3154_v34  ;;  %3346 = vst.msk [vmem:[#allocation3 + $0x250] sm:$0xff] %vm2376_vm1, %v3218_v37  ;;  %v1469_v57 = vadd.f32 %v5362_v48, %v1468_v51  ;;  %v1981_v58 = vadd.f32 %v5362_v48, %v1980_v52 }
 0x11c   :  { %2407 = vst.msk [vmem:[#allocation2 + $0xf0] sm:$0xff] %vm2376_vm1, %v1474_v40  ;;  %2535 = vst.msk [vmem:[#allocation2 + $0x4f0] sm:$0xff] %vm2376_vm1, %v1986_v41  ;;  %v2659_v54 = vld [vmem:[#allocation2 + $0xd0] ss:$2 sm:$0xff]  ;;  %v2915_v55 = vld [vmem:[#allocation2 + $0xd1] ss:$2 sm:$0xff] }
 0x11d   :  { %v2787_v56 = vld [vmem:[#allocation2 + $0x4d0] ss:$2 sm:$0xff]  ;;  %2405 = vst.msk [vmem:[#allocation2 + $0xe0] sm:$0xff] %vm2376_vm1, %v1466_v44  ;;  %2533 = vst.msk [vmem:[#allocation2 + $0x4e0] sm:$0xff] %vm2376_vm1, %v1978_v45  ;;  %v3157_v60 = vmax.f32 %v2659_v54, %v2915_v55  ;;  %v3043_v61 = vld [vmem:[#allocation2 + $0x4d1] ss:$2 sm:$0xff] }
 0x11e   :  { %2408 = vst.msk [vmem:[#allocation2 + $0xf8] sm:$0xff] %vm2376_vm1, %v1477_v49  ;;  %2536 = vst.msk [vmem:[#allocation2 + $0x4f8] sm:$0xff] %vm2376_vm1, %v1989_v50  ;;  %v3221_v1 = vmax.f32 %v2787_v56, %v3043_v61  ;;  %v4536_v14 = vpop.f32.mrb[32].mxu0  ;;  %v4664_v15 = vpop.f32.mrb[32].mxu1 }
 0x11f   :  { %v2657_v62 = vld [vmem:[#allocation2 + $0xc0] ss:$2 sm:$0xff]  ;;  %v2913_v63 = vld [vmem:[#allocation2 + $0xc1] ss:$2 sm:$0xff]  ;;  %2406 = vst.msk [vmem:[#allocation2 + $0xe8] sm:$0xff] %vm2376_vm1, %v1469_v57  ;;  %2534 = vst.msk [vmem:[#allocation2 + $0x4e8] sm:$0xff] %vm2376_vm1, %v1981_v58  ;;  %v1490_v18 = vadd.f32 %v4536_v14, %v5362_v48  ;;  %v2002_v19 = vadd.f32 %v4664_v15, %v5362_v48 }
 0x120   :  { %v3156_v2 = vmax.f32 %v2657_v62, %v2913_v63  ;;  %v2785_v3 = vld [vmem:[#allocation2 + $0x4c0] ss:$2 sm:$0xff]  ;;  %v3041_v4 = vld [vmem:[#allocation2 + $0x4c1] ss:$2 sm:$0xff]  ;;  %3285 = vst.msk [vmem:[#allocation3 + $0x68] sm:$0xff] %vm2376_vm1, %v3157_v60  ;;  %3349 = vst.msk [vmem:[#allocation3 + $0x268] sm:$0xff] %vm2376_vm1, %v3221_v1 }
 0x121   :  { %v3469_v0 = vld [vmem:[#allocation3 + $0x58] sm:$0xff]  ;;  %v3220_v9 = vmax.f32 %v2785_v3, %v3041_v4  ;;  %v1481_v20 = vpop.f32.mrb[33].mxu0  ;;  %v1993_v21 = vpop.f32.mrb[33].mxu1  ;;  %2411 = vst.msk [vmem:[#allocation2 + $0x110] sm:$0xff] %vm2376_vm1, %v1490_v18  ;;  %2539 = vst.msk [vmem:[#allocation2 + $0x510] sm:$0xff] %vm2376_vm1, %v2002_v19 }
 0x122   :  { %v3533_v6 = vmax.f32 %v3405_v53, %v3469_v0  ;;  %v3501_v7 = vld [vmem:[#allocation3 + $0x258] sm:$0xff]  ;;  %v3468_v8 = vld [vmem:[#allocation3 + $0x50] sm:$0xff]  ;;  %3284 = vst.msk [vmem:[#allocation3 + $0x60] sm:$0xff] %vm2376_vm1, %v3156_v2  ;;  %v1482_v24 = vadd.f32 %v5362_v48, %v1481_v20  ;;  %v1994_v25 = vadd.f32 %v5362_v48, %v1993_v21  ;;  %v4537_v26 = vpop.f32.mrb[34].mxu0  ;;  %v4665_v27 = vpop.f32.mrb[34].mxu1 }
 0x123   :  { %v3565_v11 = vmax.f32 %v3437_v59, %v3501_v7  ;;  %v3532_v12 = vmax.f32 %v3404_v5, %v3468_v8  ;;  %v3500_v13 = vld [vmem:[#allocation3 + $0x250] sm:$0xff]  ;;  %3348 = vst.msk [vmem:[#allocation3 + $0x260] sm:$0xff] %vm2376_vm1, %v3220_v9  ;;  %v1493_v30 = vadd.f32 %v4537_v26, %v5362_v48  ;;  %v2005_v31 = vadd.f32 %v4665_v27, %v5362_v48  ;;  %v1484_v32 = vpop.f32.mrb[35].mxu0  ;;  %v1996_v33 = vpop.f32.mrb[35].mxu1 }
 0x124   :  { %v3597_v16 = vmax.f32 %v3533_v6, 0.0  ;;  %v3564_v17 = vmax.f32 %v3436_v10, %v3500_v13  ;;  %2409 = vst.msk [vmem:[#allocation2 + $0x100] sm:$0xff] %vm2376_vm1, %v1482_v24  ;;  %2537 = vst.msk [vmem:[#allocation2 + $0x500] sm:$0xff] %vm2376_vm1, %v1994_v25  ;;  %v1485_v39 = vadd.f32 %v5362_v48, %v1484_v32  ;;  %v1997_v40 = vadd.f32 %v5362_v48, %v1996_v33 }
 0x125   :  { %v3629_v22 = vmax.f32 %v3565_v11, 0.0  ;;  %v3596_v23 = vmax.f32 %v3532_v12, 0.0  ;;  %v2663_v36 = vld [vmem:[#allocation2 + $0xf0] ss:$2 sm:$0xff]  ;;  %v2919_v37 = vld [vmem:[#allocation2 + $0xf1] ss:$2 sm:$0xff] }
 0x126   :  { %v4309_v28 = vpack.c.bf16 %v3597_v16, %v3597_v16  ;;  %v3628_v29 = vmax.f32 %v3564_v17, 0.0  ;;  %v2791_v38 = vld [vmem:[#allocation2 + $0x4f0] ss:$2 sm:$0xff]  ;;  %v3159_v42 = vmax.f32 %v2663_v36, %v2919_v37  ;;  %v3047_v43 = vld [vmem:[#allocation2 + $0x4f1] ss:$2 sm:$0xff]  ;;  %2412 = vst.msk [vmem:[#allocation2 + $0x118] sm:$0xff] %vm2376_vm1, %v1493_v30 }
 0x127   :  { %v4341_v34 = vpack.c.bf16 %v3629_v22, %v3629_v22  ;;  %v4308_v35 = vpack.c.bf16 %v3596_v23, %v3596_v23  ;;  %v2661_v44 = vld [vmem:[#allocation2 + $0xe0] ss:$2 sm:$0xff]  ;;  %v2917_v45 = vld [vmem:[#allocation2 + $0xe1] ss:$2 sm:$0xff]  ;;  %2540 = vst.msk [vmem:[#allocation2 + $0x518] sm:$0xff] %vm2376_vm1, %v2005_v31  ;;  %v3223_v46 = vmax.f32 %v2791_v38, %v3047_v43  ;;  %2410 = vst.msk [vmem:[#allocation2 + $0x108] sm:$0xff] %vm2376_vm1, %v1485_v39 }
 0x128   :  { %3918 = vst.msk [vmem:[%s6352_s3 + $0x14] sm:$0xf] %vm3912_vm2, %v4309_v28  ;;  %v4340_v41 = vpack.c.bf16 %v3628_v29, %v3628_v29  ;;  %v3158_v47 = vmax.f32 %v2661_v44, %v2917_v45  ;;  %v2789_v49 = vld [vmem:[#allocation2 + $0x4e0] ss:$2 sm:$0xff]  ;;  %v3045_v50 = vld [vmem:[#allocation2 + $0x4e1] ss:$2 sm:$0xff] }
 0x129   :  { %3950 = vst.msk [vmem:[%s6352_s3 + $0x94] sm:$0xf] %vm3912_vm2, %v4341_v34  ;;  %3917 = vst.msk [vmem:[%s6352_s3 + $0x10] sm:$0xf] %vm3912_vm2, %v4308_v35  ;;  %v3222_v51 = vmax.f32 %v2789_v49, %v3045_v50  ;;  %v4540_v52 = vpop.f32.mrb[36].mxu0  ;;  %v4668_v53 = vpop.f32.mrb[36].mxu1 }
 0x12a   :  { %2538 = vst.msk [vmem:[#allocation2 + $0x508] sm:$0xff] %vm2376_vm1, %v1997_v40  ;;  %3287 = vst.msk [vmem:[#allocation3 + $0x78] sm:$0xff] %vm2376_vm1, %v3159_v42  ;;  %v1506_v54 = vadd.f32 %v4540_v52, %v5362_v48  ;;  %v2018_v55 = vadd.f32 %v4668_v53, %v5362_v48  ;;  %v1497_v56 = vpop.f32.mrb[37].mxu0  ;;  %v2009_v57 = vpop.f32.mrb[37].mxu1  ;;  %v3407_v2 = vld [vmem:[#allocation3 + $0x68] sm:$0xff]  ;;  %v3406_v18 = vld [vmem:[#allocation3 + $0x60] sm:$0xff] }
 0x12b   :  { %3949 = vst.msk [vmem:[%s6352_s3 + $0x90] sm:$0xf] %vm3912_vm2, %v4340_v41  ;;  %v1498_v58 = vadd.f32 %v5362_v48, %v1497_v56  ;;  %v2010_v59 = vadd.f32 %v5362_v48, %v2009_v57  ;;  %v4541_v60 = vpop.f32.mrb[38].mxu0  ;;  %v4669_v61 = vpop.f32.mrb[38].mxu1  ;;  %v3439_v8 = vld [vmem:[#allocation3 + $0x268] sm:$0xff]  ;;  %v3438_v22 = vld [vmem:[#allocation3 + $0x260] sm:$0xff] }
 0x12c   :  { %3351 = vst.msk [vmem:[#allocation3 + $0x278] sm:$0xff] %vm2376_vm1, %v3223_v46  ;;  %3286 = vst.msk [vmem:[#allocation3 + $0x70] sm:$0xff] %vm2376_vm1, %v3158_v47  ;;  %v1509_v62 = vadd.f32 %v4541_v60, %v5362_v48  ;;  %v2021_v63 = vadd.f32 %v4669_v61, %v5362_v48  ;;  %v1500_v0 = vpop.f32.mrb[39].mxu0  ;;  %v2012_v1 = vpop.f32.mrb[39].mxu1  ;;  %v5685_v30 = vld [vmem:[%s6351_s2] ss:$0 sm:$0xff] }
 0x12d   :  { %3350 = vst.msk [vmem:[#allocation3 + $0x270] sm:$0xff] %vm2376_vm1, %v3222_v51  ;;  %2415 = vst.msk [vmem:[#allocation2 + $0x130] sm:$0xff] %vm2376_vm1, %v1506_v54  ;;  %v2667_v3 = vld [vmem:[#allocation2 + $0x110] ss:$2 sm:$0xff]  ;;  %v2923_v4 = vld [vmem:[#allocation2 + $0x111] ss:$2 sm:$0xff]  ;;  %v1501_v6 = vadd.f32 %v5362_v48, %v1500_v0  ;;  %v2013_v7 = vadd.f32 %v5362_v48, %v2012_v1 }
 0x12e   :  { %2543 = vst.msk [vmem:[#allocation2 + $0x530] sm:$0xff] %vm2376_vm1, %v2018_v55  ;;  %v2795_v5 = vld [vmem:[#allocation2 + $0x510] ss:$2 sm:$0xff]  ;;  %2413 = vst.msk [vmem:[#allocation2 + $0x120] sm:$0xff] %vm2376_vm1, %v1498_v58  ;;  %v3161_v9 = vmax.f32 %v2667_v3, %v2923_v4  ;;  %v3051_v10 = vld [vmem:[#allocation2 + $0x511] ss:$2 sm:$0xff] }
 0x12f   :  { %2541 = vst.msk [vmem:[#allocation2 + $0x520] sm:$0xff] %vm2376_vm1, %v2010_v59  ;;  %v2665_v11 = vld [vmem:[#allocation2 + $0x100] ss:$2 sm:$0xff]  ;;  %v2921_v12 = vld [vmem:[#allocation2 + $0x101] ss:$2 sm:$0xff]  ;;  %2416 = vst.msk [vmem:[#allocation2 + $0x138] sm:$0xff] %vm2376_vm1, %v1509_v62  ;;  %v3225_v14 = vmax.f32 %v2795_v5, %v3051_v10 }
 0x130   :  { %2544 = vst.msk [vmem:[#allocation2 + $0x538] sm:$0xff] %vm2376_vm1, %v2021_v63  ;;  %v3160_v15 = vmax.f32 %v2665_v11, %v2921_v12  ;;  %2414 = vst.msk [vmem:[#allocation2 + $0x128] sm:$0xff] %vm2376_vm1, %v1501_v6  ;;  %v4544_v26 = vpop.f32.mrb[40].mxu0  ;;  %v4672_v27 = vpop.f32.mrb[40].mxu1 }
 0x131   :  { %v3471_v13 = vld [vmem:[#allocation3 + $0x78] sm:$0xff]  ;;  %v2793_v16 = vld [vmem:[#allocation2 + $0x500] ss:$2 sm:$0xff]  ;;  %v3049_v17 = vld [vmem:[#allocation2 + $0x501] ss:$2 sm:$0xff]  ;;  %2542 = vst.msk [vmem:[#allocation2 + $0x528] sm:$0xff] %vm2376_vm1, %v2013_v7  ;;  %v1522_v31 = vadd.f32 %v5685_v30, %v4544_v26  ;;  %v2034_v32 = vadd.f32 %v5685_v30, %v4672_v27 }
 0x132   :  { %v3535_v48 = vmax.f32 %v3407_v2, %v3471_v13  ;;  %3289 = vst.msk [vmem:[#allocation3 + $0x88] sm:$0xff] %vm2376_vm1, %v3161_v9  ;;  %v3224_v21 = vmax.f32 %v2793_v16, %v3049_v17  ;;  %3353 = vst.msk [vmem:[#allocation3 + $0x288] sm:$0xff] %vm2376_vm1, %v3225_v14  ;;  %v1513_v33 = vpop.f32.mrb[41].mxu0  ;;  %v2025_v34 = vpop.f32.mrb[41].mxu1 }
 0x133   :  { %v3503_v19 = vld [vmem:[#allocation3 + $0x278] sm:$0xff]  ;;  %v3470_v20 = vld [vmem:[#allocation3 + $0x70] sm:$0xff]  ;;  %3288 = vst.msk [vmem:[#allocation3 + $0x80] sm:$0xff] %vm2376_vm1, %v3160_v15  ;;  %v1514_v37 = vadd.f32 %v5685_v30, %v1513_v33  ;;  %v2026_v38 = vadd.f32 %v5685_v30, %v2025_v34  ;;  %v4545_v39 = vpop.f32.mrb[42].mxu0  ;;  %v4673_v40 = vpop.f32.mrb[42].mxu1  ;;  %2419 = vst.msk [vmem:[#allocation2 + $0x150] sm:$0xff] %vm2376_vm1, %v1522_v31 }
 0x134   :  { %v3567_v23 = vmax.f32 %v3439_v8, %v3503_v19  ;;  %v3534_v24 = vmax.f32 %v3406_v18, %v3470_v20  ;;  %v3502_v25 = vld [vmem:[#allocation3 + $0x270] sm:$0xff]  ;;  %v3599_v28 = vmax.f32 %v3535_v48, 0.0  ;;  %3352 = vst.msk [vmem:[#allocation3 + $0x280] sm:$0xff] %vm2376_vm1, %v3224_v21  ;;  %2547 = vst.msk [vmem:[#allocation2 + $0x550] sm:$0xff] %vm2376_vm1, %v2034_v32  ;;  %v1525_v43 = vadd.f32 %v5685_v30, %v4545_v39  ;;  %v1516_v45 = vpop.f32.mrb[43].mxu0  ;;  %v2028_v46 = vpop.f32.mrb[43].mxu1 }
 0x135   :  { %v3566_v29 = vmax.f32 %v3438_v22, %v3502_v25  ;;  %v2037_v44 = vadd.f32 %v5685_v30, %v4673_v40  ;;  %2417 = vst.msk [vmem:[#allocation2 + $0x140] sm:$0xff] %vm2376_vm1, %v1514_v37  ;;  %2545 = vst.msk [vmem:[#allocation2 + $0x540] sm:$0xff] %vm2376_vm1, %v2026_v38  ;;  %v1517_v53 = vadd.f32 %v5685_v30, %v1516_v45  ;;  %v4548_v1 = vpop.f32.mrb[44].mxu0  ;;  %v4676_v2 = vpop.f32.mrb[44].mxu1 }
 0x136   :  { %v3631_v35 = vmax.f32 %v3567_v23, 0.0  ;;  %v3598_v36 = vmax.f32 %v3534_v24, 0.0  ;;  %v4311_v41 = vpack.c.bf16 %v3599_v28, %v3599_v28  ;;  %v2671_v50 = vld [vmem:[#allocation2 + $0x130] ss:$2 sm:$0xff]  ;;  %v2927_v51 = vld [vmem:[#allocation2 + $0x131] ss:$2 sm:$0xff]  ;;  %v2029_v54 = vadd.f32 %v5685_v30, %v2028_v46 }
 0x137   :  { %v3630_v42 = vmax.f32 %v3566_v29, 0.0  ;;  %v2799_v52 = vld [vmem:[#allocation2 + $0x530] ss:$2 sm:$0xff]  ;;  %v3163_v56 = vmax.f32 %v2671_v50, %v2927_v51  ;;  %v3055_v57 = vld [vmem:[#allocation2 + $0x531] ss:$2 sm:$0xff]  ;;  %2420 = vst.msk [vmem:[#allocation2 + $0x158] sm:$0xff] %vm2376_vm1, %v1525_v43  ;;  %v1538_v3 = vadd.f32 %v5685_v30, %v4548_v1  ;;  %v2050_v4 = vadd.f32 %v5685_v30, %v4676_v2 }
 0x138   :  { %v4343_v47 = vpack.c.bf16 %v3631_v35, %v3631_v35  ;;  %v4310_v49 = vpack.c.bf16 %v3598_v36, %v3598_v36  ;;  %3920 = vst.msk [vmem:[%s6352_s3 + $0x1c] sm:$0xf] %vm3912_vm2, %v4311_v41  ;;  %v2669_v58 = vld [vmem:[#allocation2 + $0x120] ss:$2 sm:$0xff]  ;;  %v2925_v59 = vld [vmem:[#allocation2 + $0x121] ss:$2 sm:$0xff]  ;;  %v3227_v60 = vmax.f32 %v2799_v52, %v3055_v57 }
 0x139   :  { %v4342_v55 = vpack.c.bf16 %v3630_v42, %v3630_v42  ;;  %2548 = vst.msk [vmem:[#allocation2 + $0x558] sm:$0xff] %vm2376_vm1, %v2037_v44  ;;  %v3162_v61 = vmax.f32 %v2669_v58, %v2925_v59  ;;  %v2797_v62 = vld [vmem:[#allocation2 + $0x520] ss:$2 sm:$0xff]  ;;  %v3053_v63 = vld [vmem:[#allocation2 + $0x521] ss:$2 sm:$0xff]  ;;  %2418 = vst.msk [vmem:[#allocation2 + $0x148] sm:$0xff] %vm2376_vm1, %v1517_v53 }
 0x13a   :  { %3952 = vst.msk [vmem:[%s6352_s3 + $0x9c] sm:$0xf] %vm3912_vm2, %v4343_v47  ;;  %3919 = vst.msk [vmem:[%s6352_s3 + $0x18] sm:$0xf] %vm3912_vm2, %v4310_v49  ;;  %v3226_v0 = vmax.f32 %v2797_v62, %v3053_v63  ;;  %v1529_v5 = vpop.f32.mrb[45].mxu0  ;;  %v2041_v6 = vpop.f32.mrb[45].mxu1 }
 0x13b   :  { %2546 = vst.msk [vmem:[#allocation2 + $0x548] sm:$0xff] %vm2376_vm1, %v2029_v54  ;;  %3291 = vst.msk [vmem:[#allocation3 + $0x98] sm:$0xff] %vm2376_vm1, %v3163_v56  ;;  %v1530_v7 = vadd.f32 %v5685_v30, %v1529_v5  ;;  %v2042_v8 = vadd.f32 %v5685_v30, %v2041_v6  ;;  %v4549_v9 = vpop.f32.mrb[46].mxu0  ;;  %v4677_v10 = vpop.f32.mrb[46].mxu1  ;;  %v3409_v15 = vld [vmem:[#allocation3 + $0x88] sm:$0xff]  ;;  %v3408_v31 = vld [vmem:[#allocation3 + $0x80] sm:$0xff] }
 0x13c   :  { %3951 = vst.msk [vmem:[%s6352_s3 + $0x98] sm:$0xf] %vm3912_vm2, %v4342_v55  ;;  %v1541_v11 = vadd.f32 %v5685_v30, %v4549_v9  ;;  %v2053_v12 = vadd.f32 %v5685_v30, %v4677_v10  ;;  %v1532_v13 = vpop.f32.mrb[47].mxu0  ;;  %v2044_v14 = vpop.f32.mrb[47].mxu1  ;;  %v3441_v20 = vld [vmem:[#allocation3 + $0x288] sm:$0xff]  ;;  %v3440_v36 = vld [vmem:[#allocation3 + $0x280] sm:$0xff] }
 0x13d   :  { %3355 = vst.msk [vmem:[#allocation3 + $0x298] sm:$0xff] %vm2376_vm1, %v3227_v60  ;;  %3290 = vst.msk [vmem:[#allocation3 + $0x90] sm:$0xff] %vm2376_vm1, %v3162_v61  ;;  %v1533_v48 = vadd.f32 %v5685_v30, %v1532_v13  ;;  %v2045_v19 = vadd.f32 %v5685_v30, %v2044_v14  ;;  %v4552_v40 = vpop.f32.mrb[48].mxu0  ;;  %v4680_v41 = vpop.f32.mrb[48].mxu1 }
 0x13e   :  { %3354 = vst.msk [vmem:[#allocation3 + $0x290] sm:$0xff] %vm2376_vm1, %v3226_v0  ;;  %2423 = vst.msk [vmem:[#allocation2 + $0x170] sm:$0xff] %vm2376_vm1, %v1538_v3  ;;  %v2675_v16 = vld [vmem:[#allocation2 + $0x150] ss:$2 sm:$0xff]  ;;  %v2931_v17 = vld [vmem:[#allocation2 + $0x151] ss:$2 sm:$0xff]  ;;  %v1554_v44 = vadd.f32 %v5685_v30, %v4552_v40  ;;  %v2066_v45 = vadd.f32 %v5685_v30, %v4680_v41 }
 0x13f   :  { %2551 = vst.msk [vmem:[#allocation2 + $0x570] sm:$0xff] %vm2376_vm1, %v2050_v4  ;;  %2421 = vst.msk [vmem:[#allocation2 + $0x160] sm:$0xff] %vm2376_vm1, %v1530_v7  ;;  %v3165_v21 = vmax.f32 %v2675_v16, %v2931_v17  ;;  %v1545_v46 = vpop.f32.mrb[49].mxu0  ;;  %v2057_v47 = vpop.f32.mrb[49].mxu1 }
 0x140   :  { %v2803_v18 = vld [vmem:[#allocation2 + $0x550] ss:$2 sm:$0xff]  ;;  %2549 = vst.msk [vmem:[#allocation2 + $0x560] sm:$0xff] %vm2376_vm1, %v2042_v8  ;;  %v3059_v22 = vld [vmem:[#allocation2 + $0x551] ss:$2 sm:$0xff]  ;;  %2424 = vst.msk [vmem:[#allocation2 + $0x178] sm:$0xff] %vm2376_vm1, %v1541_v11  ;;  %v1546_v51 = vadd.f32 %v5685_v30, %v1545_v46  ;;  %v2058_v52 = vadd.f32 %v5685_v30, %v2057_v47 }
 0x141   :  { %v2673_v23 = vld [vmem:[#allocation2 + $0x140] ss:$2 sm:$0xff]  ;;  %v2929_v24 = vld [vmem:[#allocation2 + $0x141] ss:$2 sm:$0xff]  ;;  %2552 = vst.msk [vmem:[#allocation2 + $0x578] sm:$0xff] %vm2376_vm1, %v2053_v12  ;;  %v3229_v26 = vmax.f32 %v2803_v18, %v3059_v22  ;;  %2422 = vst.msk [vmem:[#allocation2 + $0x168] sm:$0xff] %vm2376_vm1, %v1533_v48 }
 0x142   :  { %v3473_v25 = vld [vmem:[#allocation3 + $0x98] sm:$0xff]  ;;  %v3164_v27 = vmax.f32 %v2673_v23, %v2929_v24  ;;  %v2801_v28 = vld [vmem:[#allocation2 + $0x540] ss:$2 sm:$0xff]  ;;  %v3057_v29 = vld [vmem:[#allocation2 + $0x541] ss:$2 sm:$0xff]  ;;  %2550 = vst.msk [vmem:[#allocation2 + $0x568] sm:$0xff] %vm2376_vm1, %v2045_v19 }
 0x143   :  { %v3537_v32 = vmax.f32 %v3409_v15, %v3473_v25  ;;  %3293 = vst.msk [vmem:[#allocation3 + $0xa8] sm:$0xff] %vm2376_vm1, %v3165_v21  ;;  %v3228_v35 = vmax.f32 %v2801_v28, %v3057_v29  ;;  %3357 = vst.msk [vmem:[#allocation3 + $0x2a8] sm:$0xff] %vm2376_vm1, %v3229_v26  ;;  %v4553_v53 = vpop.f32.mrb[50].mxu0  ;;  %v4681_v54 = vpop.f32.mrb[50].mxu1 }
 0x144   :  { %v3505_v33 = vld [vmem:[#allocation3 + $0x298] sm:$0xff]  ;;  %v3472_v34 = vld [vmem:[#allocation3 + $0x90] sm:$0xff]  ;;  %3292 = vst.msk [vmem:[#allocation3 + $0xa0] sm:$0xff] %vm2376_vm1, %v3164_v27  ;;  %2427 = vst.msk [vmem:[#allocation2 + $0x190] sm:$0xff] %vm2376_vm1, %v1554_v44  ;;  %v1557_v57 = vadd.f32 %v5685_v30, %v4553_v53  ;;  %v2069_v58 = vadd.f32 %v5685_v30, %v4681_v54  ;;  %v1548_v59 = vpop.f32.mrb[51].mxu0  ;;  %v2060_v60 = vpop.f32.mrb[51].mxu1 }
 0x145   :  { %v3569_v37 = vmax.f32 %v3441_v20, %v3505_v33  ;;  %v3536_v38 = vmax.f32 %v3408_v31, %v3472_v34  ;;  %v3504_v39 = vld [vmem:[#allocation3 + $0x290] sm:$0xff]  ;;  %v3601_v42 = vmax.f32 %v3537_v32, 0.0  ;;  %3356 = vst.msk [vmem:[#allocation3 + $0x2a0] sm:$0xff] %vm2376_vm1, %v3228_v35  ;;  %2555 = vst.msk [vmem:[#allocation2 + $0x590] sm:$0xff] %vm2376_vm1, %v2066_v45  ;;  %v1549_v2 = vadd.f32 %v5685_v30, %v1548_v59  ;;  %v4556_v14 = vpop.f32.mrb[52].mxu0  ;;  %v4684_v15 = vpop.f32.mrb[52].mxu1 }
 0x146   :  { %v3568_v43 = vmax.f32 %v3440_v36, %v3504_v39  ;;  %2425 = vst.msk [vmem:[#allocation2 + $0x180] sm:$0xff] %vm2376_vm1, %v1546_v51  ;;  %2553 = vst.msk [vmem:[#allocation2 + $0x580] sm:$0xff] %vm2376_vm1, %v2058_v52  ;;  %v2061_v3 = vadd.f32 %v5685_v30, %v2060_v60  ;;  %v1570_v16 = vadd.f32 %v5685_v30, %v4556_v14  ;;  %v1561_v18 = vpop.f32.mrb[53].mxu0  ;;  %v2073_v48 = vpop.f32.mrb[53].mxu1 }
 0x147   :  { %v3633_v49 = vmax.f32 %v3569_v37, 0.0  ;;  %v3600_v50 = vmax.f32 %v3536_v38, 0.0  ;;  %v4313_v55 = vpack.c.bf16 %v3601_v42, %v3601_v42  ;;  %v2679_v63 = vld [vmem:[#allocation2 + $0x170] ss:$2 sm:$0xff]  ;;  %v2935_v0 = vld [vmem:[#allocation2 + $0x171] ss:$2 sm:$0xff]  ;;  %v2082_v17 = vadd.f32 %v5685_v30, %v4684_v15 }
 0x148   :  { %v3632_v56 = vmax.f32 %v3568_v43, 0.0  ;;  %v2807_v1 = vld [vmem:[#allocation2 + $0x570] ss:$2 sm:$0xff]  ;;  %v3167_v5 = vmax.f32 %v2679_v63, %v2935_v0  ;;  %v3063_v6 = vld [vmem:[#allocation2 + $0x571] ss:$2 sm:$0xff]  ;;  %2428 = vst.msk [vmem:[#allocation2 + $0x198] sm:$0xff] %vm2376_vm1, %v1557_v57  ;;  %v1562_v19 = vadd.f32 %v5685_v30, %v1561_v18  ;;  %v2074_v20 = vadd.f32 %v5685_v30, %v2073_v48 }
 0x149   :  { %v4345_v61 = vpack.c.bf16 %v3633_v49, %v3633_v49  ;;  %v4312_v62 = vpack.c.bf16 %v3600_v50, %v3600_v50  ;;  %3922 = vst.msk [vmem:[%s6352_s3 + $0x24] sm:$0xf] %vm3912_vm2, %v4313_v55  ;;  %v2677_v7 = vld [vmem:[#allocation2 + $0x160] ss:$2 sm:$0xff]  ;;  %v2933_v8 = vld [vmem:[#allocation2 + $0x161] ss:$2 sm:$0xff]  ;;  %v3231_v9 = vmax.f32 %v2807_v1, %v3063_v6 }
 0x14a   :  { %v4344_v4 = vpack.c.bf16 %v3632_v56, %v3632_v56  ;;  %2556 = vst.msk [vmem:[#allocation2 + $0x598] sm:$0xff] %vm2376_vm1, %v2069_v58  ;;  %v3166_v10 = vmax.f32 %v2677_v7, %v2933_v8  ;;  %v2805_v11 = vld [vmem:[#allocation2 + $0x560] ss:$2 sm:$0xff]  ;;  %v3061_v12 = vld [vmem:[#allocation2 + $0x561] ss:$2 sm:$0xff]  ;;  %2426 = vst.msk [vmem:[#allocation2 + $0x188] sm:$0xff] %vm2376_vm1, %v1549_v2 }
 0x14b   :  { %3954 = vst.msk [vmem:[%s6352_s3 + $0xa4] sm:$0xf] %vm3912_vm2, %v4345_v61  ;;  %3921 = vst.msk [vmem:[%s6352_s3 + $0x20] sm:$0xf] %vm3912_vm2, %v4312_v62  ;;  %v3230_v13 = vmax.f32 %v2805_v11, %v3061_v12  ;;  %v4557_v21 = vpop.f32.mrb[54].mxu0  ;;  %v4685_v22 = vpop.f32.mrb[54].mxu1 }
 0x14c   :  { %2554 = vst.msk [vmem:[#allocation2 + $0x588] sm:$0xff] %vm2376_vm1, %v2061_v3  ;;  %3295 = vst.msk [vmem:[#allocation3 + $0xb8] sm:$0xff] %vm2376_vm1, %v3167_v5  ;;  %v1573_v23 = vadd.f32 %v5685_v30, %v4557_v21  ;;  %v2085_v24 = vadd.f32 %v5685_v30, %v4685_v22  ;;  %v1564_v25 = vpop.f32.mrb[55].mxu0  ;;  %v2076_v26 = vpop.f32.mrb[55].mxu1  ;;  %v3411_v27 = vld [vmem:[#allocation3 + $0xa8] sm:$0xff]  ;;  %v3410_v44 = vld [vmem:[#allocation3 + $0xa0] sm:$0xff] }
 0x14d   :  { %3953 = vst.msk [vmem:[%s6352_s3 + $0xa0] sm:$0xf] %vm3912_vm2, %v4344_v4  ;;  %v1565_v32 = vadd.f32 %v5685_v30, %v1564_v25  ;;  %v2077_v33 = vadd.f32 %v5685_v30, %v2076_v26  ;;  %v3443_v34 = vld [vmem:[#allocation3 + $0x2a8] sm:$0xff]  ;;  %v3442_v50 = vld [vmem:[#allocation3 + $0x2a0] sm:$0xff]  ;;  %v4560_v54 = vpop.f32.mrb[56].mxu0  ;;  %v4688_v55 = vpop.f32.mrb[56].mxu1 }
 0x14e   :  { %3359 = vst.msk [vmem:[#allocation3 + $0x2b8] sm:$0xff] %vm2376_vm1, %v3231_v9  ;;  %3294 = vst.msk [vmem:[#allocation3 + $0xb0] sm:$0xff] %vm2376_vm1, %v3166_v10  ;;  %v1586_v58 = vadd.f32 %v5685_v30, %v4560_v54  ;;  %v2098_v59 = vadd.f32 %v5685_v30, %v4688_v55  ;;  %v1577_v60 = vpop.f32.mrb[57].mxu0  ;;  %v2089_v61 = vpop.f32.mrb[57].mxu1 }
 0x14f   :  { %3358 = vst.msk [vmem:[#allocation3 + $0x2b0] sm:$0xff] %vm2376_vm1, %v3230_v13  ;;  %2431 = vst.msk [vmem:[#allocation2 + $0x1b0] sm:$0xff] %vm2376_vm1, %v1570_v16  ;;  %v2683_v28 = vld [vmem:[#allocation2 + $0x190] ss:$2 sm:$0xff]  ;;  %v2939_v29 = vld [vmem:[#allocation2 + $0x191] ss:$2 sm:$0xff]  ;;  %v1578_v0 = vadd.f32 %v5685_v30, %v1577_v60  ;;  %v2090_v1 = vadd.f32 %v5685_v30, %v2089_v61 }
 0x150   :  { %2559 = vst.msk [vmem:[#allocation2 + $0x5b0] sm:$0xff] %vm2376_vm1, %v2082_v17  ;;  %2429 = vst.msk [vmem:[#allocation2 + $0x1a0] sm:$0xff] %vm2376_vm1, %v1562_v19  ;;  %v3169_v35 = vmax.f32 %v2683_v28, %v2939_v29  ;;  %v4561_v2 = vpop.f32.mrb[58].mxu0  ;;  %v4689_v3 = vpop.f32.mrb[58].mxu1 }
 0x151   :  { %v2811_v31 = vld [vmem:[#allocation2 + $0x590] ss:$2 sm:$0xff]  ;;  %2557 = vst.msk [vmem:[#allocation2 + $0x5a0] sm:$0xff] %vm2376_vm1, %v2074_v20  ;;  %v3067_v36 = vld [vmem:[#allocation2 + $0x591] ss:$2 sm:$0xff]  ;;  %2432 = vst.msk [vmem:[#allocation2 + $0x1b8] sm:$0xff] %vm2376_vm1, %v1573_v23  ;;  %v1589_v6 = vadd.f32 %v5685_v30, %v4561_v2  ;;  %v2101_v7 = vadd.f32 %v5685_v30, %v4689_v3 }
 0x152   :  { %v2681_v37 = vld [vmem:[#allocation2 + $0x180] ss:$2 sm:$0xff]  ;;  %v2937_v38 = vld [vmem:[#allocation2 + $0x181] ss:$2 sm:$0xff]  ;;  %2560 = vst.msk [vmem:[#allocation2 + $0x5b8] sm:$0xff] %vm2376_vm1, %v2085_v24  ;;  %v3233_v40 = vmax.f32 %v2811_v31, %v3067_v36  ;;  %2430 = vst.msk [vmem:[#allocation2 + $0x1a8] sm:$0xff] %vm2376_vm1, %v1565_v32 }
 0x153   :  { %v3475_v39 = vld [vmem:[#allocation3 + $0xb8] sm:$0xff]  ;;  %v3168_v41 = vmax.f32 %v2681_v37, %v2937_v38  ;;  %v2809_v42 = vld [vmem:[#allocation2 + $0x580] ss:$2 sm:$0xff]  ;;  %v3065_v43 = vld [vmem:[#allocation2 + $0x581] ss:$2 sm:$0xff]  ;;  %2558 = vst.msk [vmem:[#allocation2 + $0x5a8] sm:$0xff] %vm2376_vm1, %v2077_v33 }
 0x154   :  { %v3539_v45 = vmax.f32 %v3411_v27, %v3475_v39  ;;  %3297 = vst.msk [vmem:[#allocation3 + $0xc8] sm:$0xff] %vm2376_vm1, %v3169_v35  ;;  %v3232_v49 = vmax.f32 %v2809_v42, %v3065_v43  ;;  %3361 = vst.msk [vmem:[#allocation3 + $0x2c8] sm:$0xff] %vm2376_vm1, %v3233_v40  ;;  %v1580_v8 = vpop.f32.mrb[59].mxu0  ;;  %v2092_v9 = vpop.f32.mrb[59].mxu1 }
 0x155   :  { %v3507_v46 = vld [vmem:[#allocation3 + $0x2b8] sm:$0xff]  ;;  %v3474_v47 = vld [vmem:[#allocation3 + $0xb0] sm:$0xff]  ;;  %3296 = vst.msk [vmem:[#allocation3 + $0xc0] sm:$0xff] %vm2376_vm1, %v3168_v41  ;;  %2435 = vst.msk [vmem:[#allocation2 + $0x1d0] sm:$0xff] %vm2376_vm1, %v1586_v58  ;;  %v1581_v15 = vadd.f32 %v5685_v30, %v1580_v8  ;;  %v2093_v16 = vadd.f32 %v5685_v30, %v2092_v9  ;;  %v4564_v26 = vpop.f32.mrb[60].mxu0  ;;  %v4692_v27 = vpop.f32.mrb[60].mxu1 }
 0x156   :  { %v3571_v51 = vmax.f32 %v3443_v34, %v3507_v46  ;;  %v3538_v52 = vmax.f32 %v3410_v44, %v3474_v47  ;;  %v3506_v53 = vld [vmem:[#allocation3 + $0x2b0] sm:$0xff]  ;;  %v3603_v56 = vmax.f32 %v3539_v45, 0.0  ;;  %3360 = vst.msk [vmem:[#allocation3 + $0x2c0] sm:$0xff] %vm2376_vm1, %v3232_v49  ;;  %2563 = vst.msk [vmem:[#allocation2 + $0x5d0] sm:$0xff] %vm2376_vm1, %v2098_v59  ;;  %v1602_v28 = vadd.f32 %v5685_v30, %v4564_v26  ;;  %v1593_v31 = vpop.f32.mrb[61].mxu0  ;;  %v2105_v32 = vpop.f32.mrb[61].mxu1 }
 0x157   :  { %v3570_v57 = vmax.f32 %v3442_v50, %v3506_v53  ;;  %2433 = vst.msk [vmem:[#allocation2 + $0x1c0] sm:$0xff] %vm2376_vm1, %v1578_v0  ;;  %2561 = vst.msk [vmem:[#allocation2 + $0x5c0] sm:$0xff] %vm2376_vm1, %v2090_v1  ;;  %v2114_v29 = vadd.f32 %v5685_v30, %v4692_v27  ;;  %v1594_v33 = vadd.f32 %v5685_v30, %v1593_v31  ;;  %v4565_v35 = vpop.f32.mrb[62].mxu0  ;;  %v4693_v36 = vpop.f32.mrb[62].mxu1 }
 0x158   :  { %v3635_v62 = vmax.f32 %v3571_v51, 0.0  ;;  %v3602_v63 = vmax.f32 %v3538_v52, 0.0  ;;  %v4315_v4 = vpack.c.bf16 %v3603_v56, %v3603_v56  ;;  %v2687_v12 = vld [vmem:[#allocation2 + $0x1b0] ss:$2 sm:$0xff]  ;;  %v2943_v13 = vld [vmem:[#allocation2 + $0x1b1] ss:$2 sm:$0xff]  ;;  %v2106_v34 = vadd.f32 %v5685_v30, %v2105_v32 }
 0x159   :  { %v3634_v5 = vmax.f32 %v3570_v57, 0.0  ;;  %v2815_v14 = vld [vmem:[#allocation2 + $0x5b0] ss:$2 sm:$0xff]  ;;  %v3171_v18 = vmax.f32 %v2687_v12, %v2943_v13  ;;  %v3071_v48 = vld [vmem:[#allocation2 + $0x5b1] ss:$2 sm:$0xff]  ;;  %2436 = vst.msk [vmem:[#allocation2 + $0x1d8] sm:$0xff] %vm2376_vm1, %v1589_v6  ;;  %v1605_v37 = vadd.f32 %v5685_v30, %v4565_v35  ;;  %v2117_v38 = vadd.f32 %v5685_v30, %v4693_v36 }
 0x15a   :  { %v4347_v10 = vpack.c.bf16 %v3635_v62, %v3635_v62  ;;  %v4314_v11 = vpack.c.bf16 %v3602_v63, %v3602_v63  ;;  %3924 = vst.msk [vmem:[%s6352_s3 + $0x2c] sm:$0xf] %vm3912_vm2, %v4315_v4  ;;  %v2685_v19 = vld [vmem:[#allocation2 + $0x1a0] ss:$2 sm:$0xff]  ;;  %v2941_v20 = vld [vmem:[#allocation2 + $0x1a1] ss:$2 sm:$0xff]  ;;  %v3235_v21 = vmax.f32 %v2815_v14, %v3071_v48 }
 0x15b   :  { %v4346_v17 = vpack.c.bf16 %v3634_v5, %v3634_v5  ;;  %2564 = vst.msk [vmem:[#allocation2 + $0x5d8] sm:$0xff] %vm2376_vm1, %v2101_v7  ;;  %v3170_v22 = vmax.f32 %v2685_v19, %v2941_v20  ;;  %v2813_v23 = vld [vmem:[#allocation2 + $0x5a0] ss:$2 sm:$0xff]  ;;  %v3069_v24 = vld [vmem:[#allocation2 + $0x5a1] ss:$2 sm:$0xff]  ;;  %2434 = vst.msk [vmem:[#allocation2 + $0x1c8] sm:$0xff] %vm2376_vm1, %v1581_v15 }
 0x15c   :  { %3956 = vst.msk [vmem:[%s6352_s3 + $0xac] sm:$0xf] %vm3912_vm2, %v4347_v10  ;;  %3923 = vst.msk [vmem:[%s6352_s3 + $0x28] sm:$0xf] %vm3912_vm2, %v4314_v11  ;;  %v3234_v25 = vmax.f32 %v2813_v23, %v3069_v24  ;;  %v1596_v39 = vpop.f32.mrb[63].mxu0  ;;  %v2108_v40 = vpop.f32.mrb[63].mxu1 }
 0x15d   :  { %2562 = vst.msk [vmem:[#allocation2 + $0x5c8] sm:$0xff] %vm2376_vm1, %v2093_v16  ;;  %3299 = vst.msk [vmem:[#allocation3 + $0xd8] sm:$0xff] %vm2376_vm1, %v3171_v18  ;;  %v3413_v41 = vld [vmem:[#allocation3 + $0xc8] sm:$0xff]  ;;  %v1597_v45 = vadd.f32 %v5685_v30, %v1596_v39  ;;  %v2109_v46 = vadd.f32 %v5685_v30, %v2108_v40  ;;  %v3412_v58 = vld [vmem:[#allocation3 + $0xc0] sm:$0xff]  ;;  %v4568_v3 = vpop.f32.mrb[64].mxu0  ;;  %v4696_v4 = vpop.f32.mrb[64].mxu1 }
 0x15e   :  { %3955 = vst.msk [vmem:[%s6352_s3 + $0xa8] sm:$0xf] %vm3912_vm2, %v4346_v17  ;;  %v3445_v47 = vld [vmem:[#allocation3 + $0x2c8] sm:$0xff]  ;;  %v3444_v63 = vld [vmem:[#allocation3 + $0x2c0] sm:$0xff]  ;;  %v1618_v7 = vadd.f32 %v5685_v30, %v4568_v3  ;;  %v2130_v8 = vadd.f32 %v5685_v30, %v4696_v4  ;;  %v1609_v9 = vpop.f32.mrb[65].mxu0  ;;  %v2121_v10 = vpop.f32.mrb[65].mxu1 }
 0x15f   :  { %3363 = vst.msk [vmem:[#allocation3 + $0x2d8] sm:$0xff] %vm2376_vm1, %v3235_v21  ;;  %3298 = vst.msk [vmem:[#allocation3 + $0xd0] sm:$0xff] %vm2376_vm1, %v3170_v22  ;;  %v1610_v13 = vadd.f32 %v5685_v30, %v1609_v9  ;;  %v2122_v14 = vadd.f32 %v5685_v30, %v2121_v10  ;;  %v4569_v15 = vpop.f32.mrb[66].mxu0  ;;  %v4697_v16 = vpop.f32.mrb[66].mxu1 }
 0x160   :  { %3362 = vst.msk [vmem:[#allocation3 + $0x2d0] sm:$0xff] %vm2376_vm1, %v3234_v25  ;;  %2439 = vst.msk [vmem:[#allocation2 + $0x1f0] sm:$0xff] %vm2376_vm1, %v1602_v28  ;;  %v2691_v42 = vld [vmem:[#allocation2 + $0x1d0] ss:$2 sm:$0xff]  ;;  %v2947_v43 = vld [vmem:[#allocation2 + $0x1d1] ss:$2 sm:$0xff]  ;;  %v1621_v48 = vadd.f32 %v5685_v30, %v4569_v15  ;;  %v2133_v19 = vadd.f32 %v5685_v30, %v4697_v16 }
 0x161   :  { %2567 = vst.msk [vmem:[#allocation2 + $0x5f0] sm:$0xff] %vm2376_vm1, %v2114_v29  ;;  %2437 = vst.msk [vmem:[#allocation2 + $0x1e0] sm:$0xff] %vm2376_vm1, %v1594_v33  ;;  %v3173_v49 = vmax.f32 %v2691_v42, %v2947_v43  ;;  %v1612_v20 = vpop.f32.mrb[67].mxu0  ;;  %v2124_v21 = vpop.f32.mrb[67].mxu1 }
 0x162   :  { %v2819_v44 = vld [vmem:[#allocation2 + $0x5d0] ss:$2 sm:$0xff]  ;;  %2565 = vst.msk [vmem:[#allocation2 + $0x5e0] sm:$0xff] %vm2376_vm1, %v2106_v34  ;;  %v3075_v50 = vld [vmem:[#allocation2 + $0x5d1] ss:$2 sm:$0xff]  ;;  %2440 = vst.msk [vmem:[#allocation2 + $0x1f8] sm:$0xff] %vm2376_vm1, %v1605_v37  ;;  %v1613_v27 = vadd.f32 %v5685_v30, %v1612_v20  ;;  %v2125_v28 = vadd.f32 %v5685_v30, %v2124_v21 }
 0x163   :  { %v2689_v51 = vld [vmem:[#allocation2 + $0x1c0] ss:$2 sm:$0xff]  ;;  %v2945_v52 = vld [vmem:[#allocation2 + $0x1c1] ss:$2 sm:$0xff]  ;;  %2568 = vst.msk [vmem:[#allocation2 + $0x5f8] sm:$0xff] %vm2376_vm1, %v2117_v38  ;;  %v3237_v54 = vmax.f32 %v2819_v44, %v3075_v50  ;;  %2438 = vst.msk [vmem:[#allocation2 + $0x1e8] sm:$0xff] %vm2376_vm1, %v1597_v45 }
 0x164   :  { %v3477_v53 = vld [vmem:[#allocation3 + $0xd8] sm:$0xff]  ;;  %v3172_v55 = vmax.f32 %v2689_v51, %v2945_v52  ;;  %v2817_v56 = vld [vmem:[#allocation2 + $0x5c0] ss:$2 sm:$0xff]  ;;  %v3073_v57 = vld [vmem:[#allocation2 + $0x5c1] ss:$2 sm:$0xff]  ;;  %2566 = vst.msk [vmem:[#allocation2 + $0x5e8] sm:$0xff] %vm2376_vm1, %v2109_v46 }
 0x165   :  { %v3541_v59 = vmax.f32 %v3413_v41, %v3477_v53  ;;  %3301 = vst.msk [vmem:[#allocation3 + $0xe8] sm:$0xff] %vm2376_vm1, %v3173_v49  ;;  %v3236_v62 = vmax.f32 %v2817_v56, %v3073_v57  ;;  %3365 = vst.msk [vmem:[#allocation3 + $0x2e8] sm:$0xff] %vm2376_vm1, %v3237_v54  ;;  %v4572_v40 = vpop.f32.mrb[68].mxu0  ;;  %v4700_v41 = vpop.f32.mrb[68].mxu1 }
 0x166   :  { %v3509_v60 = vld [vmem:[#allocation3 + $0x2d8] sm:$0xff]  ;;  %v3476_v61 = vld [vmem:[#allocation3 + $0xd0] sm:$0xff]  ;;  %3300 = vst.msk [vmem:[#allocation3 + $0xe0] sm:$0xff] %vm2376_vm1, %v3172_v55  ;;  %2443 = vst.msk [vmem:[#allocation2 + $0x210] sm:$0xff] %vm2376_vm1, %v1618_v7  ;;  %v1634_v42 = vadd.f32 %v5685_v30, %v4572_v40  ;;  %v2146_v43 = vadd.f32 %v5685_v30, %v4700_v41  ;;  %v1625_v44 = vpop.f32.mrb[69].mxu0  ;;  %v2137_v45 = vpop.f32.mrb[69].mxu1 }
 0x167   :  { %v3573_v0 = vmax.f32 %v3445_v47, %v3509_v60  ;;  %v3540_v1 = vmax.f32 %v3412_v58, %v3476_v61  ;;  %v3508_v2 = vld [vmem:[#allocation3 + $0x2d0] sm:$0xff]  ;;  %v3605_v5 = vmax.f32 %v3541_v59, 0.0  ;;  %3364 = vst.msk [vmem:[#allocation3 + $0x2e0] sm:$0xff] %vm2376_vm1, %v3236_v62  ;;  %2571 = vst.msk [vmem:[#allocation2 + $0x610] sm:$0xff] %vm2376_vm1, %v2130_v8  ;;  %v1626_v46 = vadd.f32 %v5685_v30, %v1625_v44  ;;  %v4573_v49 = vpop.f32.mrb[70].mxu0  ;;  %v4701_v50 = vpop.f32.mrb[70].mxu1 }
 0x168   :  { %v3572_v6 = vmax.f32 %v3444_v63, %v3508_v2  ;;  %2441 = vst.msk [vmem:[#allocation2 + $0x200] sm:$0xff] %vm2376_vm1, %v1610_v13  ;;  %2569 = vst.msk [vmem:[#allocation2 + $0x600] sm:$0xff] %vm2376_vm1, %v2122_v14  ;;  %v2138_v47 = vadd.f32 %v5685_v30, %v2137_v45  ;;  %v1637_v51 = vadd.f32 %v5685_v30, %v4573_v49  ;;  %v1628_v53 = vpop.f32.mrb[71].mxu0  ;;  %v2140_v54 = vpop.f32.mrb[71].mxu1 }
 0x169   :  { %v3637_v11 = vmax.f32 %v3573_v0, 0.0  ;;  %v3604_v12 = vmax.f32 %v3540_v1, 0.0  ;;  %v4317_v17 = vpack.c.bf16 %v3605_v5, %v3605_v5  ;;  %v2695_v24 = vld [vmem:[#allocation2 + $0x1f0] ss:$2 sm:$0xff]  ;;  %v2951_v25 = vld [vmem:[#allocation2 + $0x1f1] ss:$2 sm:$0xff]  ;;  %v2149_v52 = vadd.f32 %v5685_v30, %v4701_v50 }
 0x16a   :  { %v3636_v18 = vmax.f32 %v3572_v6, 0.0  ;;  %v2823_v26 = vld [vmem:[#allocation2 + $0x5f0] ss:$2 sm:$0xff]  ;;  %v3175_v31 = vmax.f32 %v2695_v24, %v2951_v25  ;;  %v3079_v32 = vld [vmem:[#allocation2 + $0x5f1] ss:$2 sm:$0xff]  ;;  %2444 = vst.msk [vmem:[#allocation2 + $0x218] sm:$0xff] %vm2376_vm1, %v1621_v48  ;;  %v1629_v59 = vadd.f32 %v5685_v30, %v1628_v53  ;;  %v2141_v60 = vadd.f32 %v5685_v30, %v2140_v54 }
 0x16b   :  { %v4349_v22 = vpack.c.bf16 %v3637_v11, %v3637_v11  ;;  %v4316_v23 = vpack.c.bf16 %v3604_v12, %v3604_v12  ;;  %3926 = vst.msk [vmem:[%s6352_s3 + $0x34] sm:$0xf] %vm3912_vm2, %v4317_v17  ;;  %v2693_v33 = vld [vmem:[#allocation2 + $0x1e0] ss:$2 sm:$0xff]  ;;  %v2949_v34 = vld [vmem:[#allocation2 + $0x1e1] ss:$2 sm:$0xff]  ;;  %v3239_v35 = vmax.f32 %v2823_v26, %v3079_v32 }
 0x16c   :  { %v4348_v29 = vpack.c.bf16 %v3636_v18, %v3636_v18  ;;  %2572 = vst.msk [vmem:[#allocation2 + $0x618] sm:$0xff] %vm2376_vm1, %v2133_v19  ;;  %v3174_v36 = vmax.f32 %v2693_v33, %v2949_v34  ;;  %v2821_v37 = vld [vmem:[#allocation2 + $0x5e0] ss:$2 sm:$0xff]  ;;  %v3077_v38 = vld [vmem:[#allocation2 + $0x5e1] ss:$2 sm:$0xff]  ;;  %2442 = vst.msk [vmem:[#allocation2 + $0x208] sm:$0xff] %vm2376_vm1, %v1613_v27 }
 0x16d   :  { %3958 = vst.msk [vmem:[%s6352_s3 + $0xb4] sm:$0xf] %vm3912_vm2, %v4349_v22  ;;  %3925 = vst.msk [vmem:[%s6352_s3 + $0x30] sm:$0xf] %vm3912_vm2, %v4316_v23  ;;  %v3238_v39 = vmax.f32 %v2821_v37, %v3077_v38  ;;  %v3415_v55 = vld [vmem:[#allocation3 + $0xe8] sm:$0xff]  ;;  %v3414_v7 = vld [vmem:[#allocation3 + $0xe0] sm:$0xff] }
 0x16e   :  { %2570 = vst.msk [vmem:[#allocation2 + $0x608] sm:$0xff] %vm2376_vm1, %v2125_v28  ;;  %3303 = vst.msk [vmem:[#allocation3 + $0xf8] sm:$0xff] %vm2376_vm1, %v3175_v31  ;;  %v3447_v61 = vld [vmem:[#allocation3 + $0x2e8] sm:$0xff]  ;;  %v3446_v12 = vld [vmem:[#allocation3 + $0x2e0] sm:$0xff]  ;;  %v4576_v16 = vpop.f32.mrb[72].mxu0  ;;  %v4704_v17 = vpop.f32.mrb[72].mxu1 }
 0x16f   :  { %3957 = vst.msk [vmem:[%s6352_s3 + $0xb0] sm:$0xf] %vm3912_vm2, %v4348_v29  ;;  %v1650_v19 = vadd.f32 %v5685_v30, %v4576_v16  ;;  %v2162_v20 = vadd.f32 %v5685_v30, %v4704_v17  ;;  %v1641_v21 = vpop.f32.mrb[73].mxu0  ;;  %v2153_v22 = vpop.f32.mrb[73].mxu1 }
 0x170   :  { %3367 = vst.msk [vmem:[#allocation3 + $0x2f8] sm:$0xff] %vm2376_vm1, %v3239_v35  ;;  %3302 = vst.msk [vmem:[#allocation3 + $0xf0] sm:$0xff] %vm2376_vm1, %v3174_v36  ;;  %v1642_v25 = vadd.f32 %v5685_v30, %v1641_v21  ;;  %v2154_v26 = vadd.f32 %v5685_v30, %v2153_v22  ;;  %v4577_v27 = vpop.f32.mrb[74].mxu0  ;;  %v4705_v28 = vpop.f32.mrb[74].mxu1 }
 0x171   :  { %3366 = vst.msk [vmem:[#allocation3 + $0x2f0] sm:$0xff] %vm2376_vm1, %v3238_v39  ;;  %2447 = vst.msk [vmem:[#allocation2 + $0x230] sm:$0xff] %vm2376_vm1, %v1634_v42  ;;  %v2699_v56 = vld [vmem:[#allocation2 + $0x210] ss:$2 sm:$0xff]  ;;  %v2955_v57 = vld [vmem:[#allocation2 + $0x211] ss:$2 sm:$0xff]  ;;  %v1653_v32 = vadd.f32 %v5685_v30, %v4577_v27  ;;  %v2165_v33 = vadd.f32 %v5685_v30, %v4705_v28 }
 0x172   :  { %2575 = vst.msk [vmem:[#allocation2 + $0x630] sm:$0xff] %vm2376_vm1, %v2146_v43  ;;  %2445 = vst.msk [vmem:[#allocation2 + $0x220] sm:$0xff] %vm2376_vm1, %v1626_v46  ;;  %v3177_v62 = vmax.f32 %v2699_v56, %v2955_v57  ;;  %v1644_v34 = vpop.f32.mrb[75].mxu0  ;;  %v2156_v35 = vpop.f32.mrb[75].mxu1 }
 0x173   :  { %v2827_v58 = vld [vmem:[#allocation2 + $0x610] ss:$2 sm:$0xff]  ;;  %2573 = vst.msk [vmem:[#allocation2 + $0x620] sm:$0xff] %vm2376_vm1, %v2138_v47  ;;  %v3083_v63 = vld [vmem:[#allocation2 + $0x611] ss:$2 sm:$0xff]  ;;  %2448 = vst.msk [vmem:[#allocation2 + $0x238] sm:$0xff] %vm2376_vm1, %v1637_v51  ;;  %v1645_v41 = vadd.f32 %v5685_v30, %v1644_v34  ;;  %v2157_v42 = vadd.f32 %v5685_v30, %v2156_v35 }
 0x174   :  { %v2697_v0 = vld [vmem:[#allocation2 + $0x200] ss:$2 sm:$0xff]  ;;  %v2953_v1 = vld [vmem:[#allocation2 + $0x201] ss:$2 sm:$0xff]  ;;  %2576 = vst.msk [vmem:[#allocation2 + $0x638] sm:$0xff] %vm2376_vm1, %v2149_v52  ;;  %v3241_v3 = vmax.f32 %v2827_v58, %v3083_v63  ;;  %2446 = vst.msk [vmem:[#allocation2 + $0x228] sm:$0xff] %vm2376_vm1, %v1629_v59 }
 0x175   :  { %v3479_v2 = vld [vmem:[#allocation3 + $0xf8] sm:$0xff]  ;;  %v3176_v4 = vmax.f32 %v2697_v0, %v2953_v1  ;;  %v2825_v5 = vld [vmem:[#allocation2 + $0x600] ss:$2 sm:$0xff]  ;;  %v3081_v6 = vld [vmem:[#allocation2 + $0x601] ss:$2 sm:$0xff]  ;;  %2574 = vst.msk [vmem:[#allocation2 + $0x628] sm:$0xff] %vm2376_vm1, %v2141_v60 }
 0x176   :  { %v3543_v8 = vmax.f32 %v3415_v55, %v3479_v2  ;;  %3305 = vst.msk [vmem:[#allocation3 + $0x108] sm:$0xff] %vm2376_vm1, %v3177_v62  ;;  %v3240_v11 = vmax.f32 %v2825_v5, %v3081_v6  ;;  %3369 = vst.msk [vmem:[#allocation3 + $0x308] sm:$0xff] %vm2376_vm1, %v3241_v3  ;;  %v4580_v54 = vpop.f32.mrb[76].mxu0  ;;  %v4708_v55 = vpop.f32.mrb[76].mxu1 }
 0x177   :  { %v3511_v9 = vld [vmem:[#allocation3 + $0x2f8] sm:$0xff]  ;;  %v3478_v10 = vld [vmem:[#allocation3 + $0xf0] sm:$0xff]  ;;  %3304 = vst.msk [vmem:[#allocation3 + $0x100] sm:$0xff] %vm2376_vm1, %v3176_v4  ;;  %2451 = vst.msk [vmem:[#allocation2 + $0x250] sm:$0xff] %vm2376_vm1, %v1650_v19  ;;  %v1666_v56 = vadd.f32 %v5685_v30, %v4580_v54  ;;  %v2178_v57 = vadd.f32 %v5685_v30, %v4708_v55  ;;  %v1657_v58 = vpop.f32.mrb[77].mxu0  ;;  %v2169_v59 = vpop.f32.mrb[77].mxu1 }
 0x178   :  { %v3575_v13 = vmax.f32 %v3447_v61, %v3511_v9  ;;  %v3542_v14 = vmax.f32 %v3414_v7, %v3478_v10  ;;  %v3510_v15 = vld [vmem:[#allocation3 + $0x2f0] sm:$0xff]  ;;  %v3607_v18 = vmax.f32 %v3543_v8, 0.0  ;;  %3368 = vst.msk [vmem:[#allocation3 + $0x300] sm:$0xff] %vm2376_vm1, %v3240_v11  ;;  %2579 = vst.msk [vmem:[#allocation2 + $0x650] sm:$0xff] %vm2376_vm1, %v2162_v20  ;;  %v1658_v60 = vadd.f32 %v5685_v30, %v1657_v58  ;;  %v4581_v62 = vpop.f32.mrb[78].mxu0  ;;  %v4709_v63 = vpop.f32.mrb[78].mxu1 }
 0x179   :  { %v3574_v48 = vmax.f32 %v3446_v12, %v3510_v15  ;;  %2449 = vst.msk [vmem:[#allocation2 + $0x240] sm:$0xff] %vm2376_vm1, %v1642_v25  ;;  %2577 = vst.msk [vmem:[#allocation2 + $0x640] sm:$0xff] %vm2376_vm1, %v2154_v26  ;;  %v2170_v61 = vadd.f32 %v5685_v30, %v2169_v59  ;;  %v1669_v0 = vadd.f32 %v5685_v30, %v4581_v62  ;;  %v1660_v2 = vpop.f32.mrb[79].mxu0  ;;  %v2172_v3 = vpop.f32.mrb[79].mxu1 }
 0x17a   :  { %v3639_v23 = vmax.f32 %v3575_v13, 0.0  ;;  %v3606_v24 = vmax.f32 %v3542_v14, 0.0  ;;  %v4319_v29 = vpack.c.bf16 %v3607_v18, %v3607_v18  ;;  %v2703_v38 = vld [vmem:[#allocation2 + $0x230] ss:$2 sm:$0xff]  ;;  %v2959_v39 = vld [vmem:[#allocation2 + $0x231] ss:$2 sm:$0xff]  ;;  %v2181_v1 = vadd.f32 %v5685_v30, %v4709_v63 }
 0x17b   :  { %v3638_v31 = vmax.f32 %v3574_v48, 0.0  ;;  %v2831_v40 = vld [vmem:[#allocation2 + $0x630] ss:$2 sm:$0xff]  ;;  %v3179_v44 = vmax.f32 %v2703_v38, %v2959_v39  ;;  %v3087_v45 = vld [vmem:[#allocation2 + $0x631] ss:$2 sm:$0xff]  ;;  %2452 = vst.msk [vmem:[#allocation2 + $0x258] sm:$0xff] %vm2376_vm1, %v1653_v32  ;;  %v1661_v8 = vadd.f32 %v5685_v30, %v1660_v2  ;;  %v2173_v9 = vadd.f32 %v5685_v30, %v2172_v3 }
 0x17c   :  { %v4351_v36 = vpack.c.bf16 %v3639_v23, %v3639_v23  ;;  %v4318_v37 = vpack.c.bf16 %v3606_v24, %v3606_v24  ;;  %3928 = vst.msk [vmem:[%s6352_s3 + $0x3c] sm:$0xf] %vm3912_vm2, %v4319_v29  ;;  %v2701_v46 = vld [vmem:[#allocation2 + $0x220] ss:$2 sm:$0xff]  ;;  %v2957_v47 = vld [vmem:[#allocation2 + $0x221] ss:$2 sm:$0xff]  ;;  %v3243_v49 = vmax.f32 %v2831_v40, %v3087_v45 }
 0x17d   :  { %v4350_v43 = vpack.c.bf16 %v3638_v31, %v3638_v31  ;;  %2580 = vst.msk [vmem:[#allocation2 + $0x658] sm:$0xff] %vm2376_vm1, %v2165_v33  ;;  %v3178_v50 = vmax.f32 %v2701_v46, %v2957_v47  ;;  %v2829_v51 = vld [vmem:[#allocation2 + $0x620] ss:$2 sm:$0xff]  ;;  %v3085_v52 = vld [vmem:[#allocation2 + $0x621] ss:$2 sm:$0xff]  ;;  %2450 = vst.msk [vmem:[#allocation2 + $0x248] sm:$0xff] %vm2376_vm1, %v1645_v41 }
 0x17e   :  { %3960 = vst.msk [vmem:[%s6352_s3 + $0xbc] sm:$0xf] %vm3912_vm2, %v4351_v36  ;;  %3927 = vst.msk [vmem:[%s6352_s3 + $0x38] sm:$0xf] %vm3912_vm2, %v4318_v37  ;;  %v3242_v53 = vmax.f32 %v2829_v51, %v3085_v52  ;;  %v3417_v4 = vld [vmem:[#allocation3 + $0x108] sm:$0xff]  ;;  %v3416_v19 = vld [vmem:[#allocation3 + $0x100] sm:$0xff] }
 0x17f   :  { %2578 = vst.msk [vmem:[#allocation2 + $0x648] sm:$0xff] %vm2376_vm1, %v2157_v42  ;;  %3307 = vst.msk [vmem:[#allocation3 + $0x118] sm:$0xff] %vm2376_vm1, %v3179_v44  ;;  %v3449_v10 = vld [vmem:[#allocation3 + $0x308] sm:$0xff]  ;;  %v3448_v23 = vld [vmem:[#allocation3 + $0x300] sm:$0xff]  ;;  %v4584_v27 = vpop.f32.mrb[80].mxu0  ;;  %v4712_v28 = vpop.f32.mrb[80].mxu1 }
 0x180   :  { %3959 = vst.msk [vmem:[%s6352_s3 + $0xb8] sm:$0xf] %vm3912_vm2, %v4350_v43  ;;  %v5970_v32 = vld [vmem:[%s6351_s2] ss:$0 sm:$0xff]  ;;  %v1673_v35 = vpop.f32.mrb[81].mxu0  ;;  %v2185_v36 = vpop.f32.mrb[81].mxu1 }
 0x181   :  { %3371 = vst.msk [vmem:[#allocation3 + $0x318] sm:$0xff] %vm2376_vm1, %v3243_v49  ;;  %3306 = vst.msk [vmem:[#allocation3 + $0x110] sm:$0xff] %vm2376_vm1, %v3178_v50  ;;  %v1682_v33 = vadd.f32 %v5970_v32, %v4584_v27  ;;  %v2194_v34 = vadd.f32 %v5970_v32, %v4712_v28  ;;  %v1674_v39 = vadd.f32 %v5970_v32, %v1673_v35  ;;  %v4585_v41 = vpop.f32.mrb[82].mxu0  ;;  %v4713_v42 = vpop.f32.mrb[82].mxu1 }
 0x182   :  { %3370 = vst.msk [vmem:[#allocation3 + $0x310] sm:$0xff] %vm2376_vm1, %v3242_v53  ;;  %2455 = vst.msk [vmem:[#allocation2 + $0x270] sm:$0xff] %vm2376_vm1, %v1666_v56  ;;  %v2707_v5 = vld [vmem:[#allocation2 + $0x250] ss:$2 sm:$0xff]  ;;  %v2963_v6 = vld [vmem:[#allocation2 + $0x251] ss:$2 sm:$0xff]  ;;  %v2186_v40 = vadd.f32 %v5970_v32, %v2185_v36  ;;  %v1685_v45 = vadd.f32 %v5970_v32, %v4585_v41  ;;  %v2197_v46 = vadd.f32 %v5970_v32, %v4713_v42 }
 0x183   :  { %2583 = vst.msk [vmem:[#allocation2 + $0x670] sm:$0xff] %vm2376_vm1, %v2178_v57  ;;  %2453 = vst.msk [vmem:[#allocation2 + $0x260] sm:$0xff] %vm2376_vm1, %v1658_v60  ;;  %v3181_v11 = vmax.f32 %v2707_v5, %v2963_v6  ;;  %v1676_v47 = vpop.f32.mrb[83].mxu0  ;;  %v2188_v49 = vpop.f32.mrb[83].mxu1 }
 0x184   :  { %v2835_v7 = vld [vmem:[#allocation2 + $0x650] ss:$2 sm:$0xff]  ;;  %2581 = vst.msk [vmem:[#allocation2 + $0x660] sm:$0xff] %vm2376_vm1, %v2170_v61  ;;  %v3091_v12 = vld [vmem:[#allocation2 + $0x651] ss:$2 sm:$0xff]  ;;  %2456 = vst.msk [vmem:[#allocation2 + $0x278] sm:$0xff] %vm2376_vm1, %v1669_v0  ;;  %v1677_v55 = vadd.f32 %v5970_v32, %v1676_v47  ;;  %v2189_v56 = vadd.f32 %v5970_v32, %v2188_v49 }
 0x185   :  { %v2705_v13 = vld [vmem:[#allocation2 + $0x240] ss:$2 sm:$0xff]  ;;  %v2961_v14 = vld [vmem:[#allocation2 + $0x241] ss:$2 sm:$0xff]  ;;  %2584 = vst.msk [vmem:[#allocation2 + $0x678] sm:$0xff] %vm2376_vm1, %v2181_v1  ;;  %v3245_v16 = vmax.f32 %v2835_v7, %v3091_v12  ;;  %2454 = vst.msk [vmem:[#allocation2 + $0x268] sm:$0xff] %vm2376_vm1, %v1661_v8 }
 0x186   :  { %v3481_v15 = vld [vmem:[#allocation3 + $0x118] sm:$0xff]  ;;  %v3180_v17 = vmax.f32 %v2705_v13, %v2961_v14  ;;  %v2833_v18 = vld [vmem:[#allocation2 + $0x640] ss:$2 sm:$0xff]  ;;  %v3089_v48 = vld [vmem:[#allocation2 + $0x641] ss:$2 sm:$0xff]  ;;  %2582 = vst.msk [vmem:[#allocation2 + $0x668] sm:$0xff] %vm2376_vm1, %v2173_v9 }
 0x187   :  { %v3545_v30 = vmax.f32 %v3417_v4, %v3481_v15  ;;  %3309 = vst.msk [vmem:[#allocation3 + $0x128] sm:$0xff] %vm2376_vm1, %v3181_v11  ;;  %v3244_v22 = vmax.f32 %v2833_v18, %v3089_v48  ;;  %3373 = vst.msk [vmem:[#allocation3 + $0x328] sm:$0xff] %vm2376_vm1, %v3245_v16  ;;  %v4588_v3 = vpop.f32.mrb[84].mxu0  ;;  %v4716_v4 = vpop.f32.mrb[84].mxu1 }
 0x188   :  { %v3513_v20 = vld [vmem:[#allocation3 + $0x318] sm:$0xff]  ;;  %v3480_v21 = vld [vmem:[#allocation3 + $0x110] sm:$0xff]  ;;  %3308 = vst.msk [vmem:[#allocation3 + $0x120] sm:$0xff] %vm2376_vm1, %v3180_v17  ;;  %2459 = vst.msk [vmem:[#allocation2 + $0x290] sm:$0xff] %vm2376_vm1, %v1682_v33  ;;  %v1698_v5 = vadd.f32 %v5970_v32, %v4588_v3  ;;  %v2210_v6 = vadd.f32 %v5970_v32, %v4716_v4  ;;  %v1689_v7 = vpop.f32.mrb[85].mxu0  ;;  %v2201_v8 = vpop.f32.mrb[85].mxu1 }
 0x189   :  { %v3577_v24 = vmax.f32 %v3449_v10, %v3513_v20  ;;  %v3544_v25 = vmax.f32 %v3416_v19, %v3480_v21  ;;  %v3512_v26 = vld [vmem:[#allocation3 + $0x310] sm:$0xff]  ;;  %v3609_v29 = vmax.f32 %v3545_v30, 0.0  ;;  %3372 = vst.msk [vmem:[#allocation3 + $0x320] sm:$0xff] %vm2376_vm1, %v3244_v22  ;;  %2587 = vst.msk [vmem:[#allocation2 + $0x690] sm:$0xff] %vm2376_vm1, %v2194_v34  ;;  %v1690_v9 = vadd.f32 %v5970_v32, %v1689_v7  ;;  %v4589_v11 = vpop.f32.mrb[86].mxu0  ;;  %v4717_v12 = vpop.f32.mrb[86].mxu1 }
 0x18a   :  { %v3576_v31 = vmax.f32 %v3448_v23, %v3512_v26  ;;  %2457 = vst.msk [vmem:[#allocation2 + $0x280] sm:$0xff] %vm2376_vm1, %v1674_v39  ;;  %2585 = vst.msk [vmem:[#allocation2 + $0x680] sm:$0xff] %vm2376_vm1, %v2186_v40  ;;  %v2202_v10 = vadd.f32 %v5970_v32, %v2201_v8  ;;  %v1701_v13 = vadd.f32 %v5970_v32, %v4589_v11  ;;  %v1692_v15 = vpop.f32.mrb[87].mxu0  ;;  %v2204_v16 = vpop.f32.mrb[87].mxu1 }
 0x18b   :  { %v3641_v37 = vmax.f32 %v3577_v24, 0.0  ;;  %v3608_v38 = vmax.f32 %v3544_v25, 0.0  ;;  %v4321_v43 = vpack.c.bf16 %v3609_v29, %v3609_v29  ;;  %v2711_v52 = vld [vmem:[#allocation2 + $0x270] ss:$2 sm:$0xff]  ;;  %v2967_v53 = vld [vmem:[#allocation2 + $0x271] ss:$2 sm:$0xff]  ;;  %v2213_v14 = vadd.f32 %v5970_v32, %v4717_v12 }
 0x18c   :  { %v3640_v44 = vmax.f32 %v3576_v31, 0.0  ;;  %v2839_v54 = vld [vmem:[#allocation2 + $0x670] ss:$2 sm:$0xff]  ;;  %v3183_v58 = vmax.f32 %v2711_v52, %v2967_v53  ;;  %v3095_v59 = vld [vmem:[#allocation2 + $0x671] ss:$2 sm:$0xff]  ;;  %2460 = vst.msk [vmem:[#allocation2 + $0x298] sm:$0xff] %vm2376_vm1, %v1685_v45  ;;  %v1693_v30 = vadd.f32 %v5970_v32, %v1692_v15  ;;  %v2205_v20 = vadd.f32 %v5970_v32, %v2204_v16 }
 0x18d   :  { %v4353_v50 = vpack.c.bf16 %v3641_v37, %v3641_v37  ;;  %v4320_v51 = vpack.c.bf16 %v3608_v38, %v3608_v38  ;;  %3930 = vst.msk [vmem:[%s6352_s3 + $0x44] sm:$0xf] %vm3912_vm2, %v4321_v43  ;;  %v2709_v60 = vld [vmem:[#allocation2 + $0x260] ss:$2 sm:$0xff]  ;;  %v2965_v61 = vld [vmem:[#allocation2 + $0x261] ss:$2 sm:$0xff]  ;;  %v3247_v62 = vmax.f32 %v2839_v54, %v3095_v59 }
 0x18e   :  { %v4352_v57 = vpack.c.bf16 %v3640_v44, %v3640_v44  ;;  %2588 = vst.msk [vmem:[#allocation2 + $0x698] sm:$0xff] %vm2376_vm1, %v2197_v46  ;;  %v3182_v63 = vmax.f32 %v2709_v60, %v2965_v61  ;;  %v2837_v0 = vld [vmem:[#allocation2 + $0x660] ss:$2 sm:$0xff]  ;;  %v3093_v1 = vld [vmem:[#allocation2 + $0x661] ss:$2 sm:$0xff]  ;;  %2458 = vst.msk [vmem:[#allocation2 + $0x288] sm:$0xff] %vm2376_vm1, %v1677_v55 }
 0x18f   :  { %3962 = vst.msk [vmem:[%s6352_s3 + $0xc4] sm:$0xf] %vm3912_vm2, %v4353_v50  ;;  %3929 = vst.msk [vmem:[%s6352_s3 + $0x40] sm:$0xf] %vm3912_vm2, %v4320_v51  ;;  %v3246_v2 = vmax.f32 %v2837_v0, %v3093_v1  ;;  %v3419_v17 = vld [vmem:[#allocation3 + $0x128] sm:$0xff]  ;;  %v3418_v33 = vld [vmem:[#allocation3 + $0x120] sm:$0xff] }
 0x190   :  { %2586 = vst.msk [vmem:[#allocation2 + $0x688] sm:$0xff] %vm2376_vm1, %v2189_v56  ;;  %3311 = vst.msk [vmem:[#allocation3 + $0x138] sm:$0xff] %vm2376_vm1, %v3183_v58  ;;  %v3451_v21 = vld [vmem:[#allocation3 + $0x328] sm:$0xff]  ;;  %v3450_v38 = vld [vmem:[#allocation3 + $0x320] sm:$0xff]  ;;  %v4592_v42 = vpop.f32.mrb[88].mxu0  ;;  %v4720_v43 = vpop.f32.mrb[88].mxu1 }
 0x191   :  { %3961 = vst.msk [vmem:[%s6352_s3 + $0xc0] sm:$0xf] %vm3912_vm2, %v4352_v57  ;;  %v1714_v46 = vadd.f32 %v5970_v32, %v4592_v42  ;;  %v2226_v47 = vadd.f32 %v5970_v32, %v4720_v43  ;;  %v1705_v49 = vpop.f32.mrb[89].mxu0  ;;  %v2217_v50 = vpop.f32.mrb[89].mxu1 }
 0x192   :  { %3375 = vst.msk [vmem:[#allocation3 + $0x338] sm:$0xff] %vm2376_vm1, %v3247_v62  ;;  %3310 = vst.msk [vmem:[#allocation3 + $0x130] sm:$0xff] %vm2376_vm1, %v3182_v63  ;;  %v1706_v53 = vadd.f32 %v5970_v32, %v1705_v49  ;;  %v2218_v54 = vadd.f32 %v5970_v32, %v2217_v50  ;;  %v4593_v55 = vpop.f32.mrb[90].mxu0  ;;  %v4721_v56 = vpop.f32.mrb[90].mxu1 }
 0x193   :  { %3374 = vst.msk [vmem:[#allocation3 + $0x330] sm:$0xff] %vm2376_vm1, %v3246_v2  ;;  %2463 = vst.msk [vmem:[#allocation2 + $0x2b0] sm:$0xff] %vm2376_vm1, %v1698_v5  ;;  %v2715_v18 = vld [vmem:[#allocation2 + $0x290] ss:$2 sm:$0xff]  ;;  %v2971_v48 = vld [vmem:[#allocation2 + $0x291] ss:$2 sm:$0xff]  ;;  %v1717_v59 = vadd.f32 %v5970_v32, %v4593_v55  ;;  %v2229_v60 = vadd.f32 %v5970_v32, %v4721_v56 }
 0x194   :  { %2591 = vst.msk [vmem:[#allocation2 + $0x6b0] sm:$0xff] %vm2376_vm1, %v2210_v6  ;;  %2461 = vst.msk [vmem:[#allocation2 + $0x2a0] sm:$0xff] %vm2376_vm1, %v1690_v9  ;;  %v3185_v22 = vmax.f32 %v2715_v18, %v2971_v48  ;;  %v1708_v61 = vpop.f32.mrb[91].mxu0  ;;  %v2220_v62 = vpop.f32.mrb[91].mxu1 }
 0x195   :  { %v2843_v19 = vld [vmem:[#allocation2 + $0x690] ss:$2 sm:$0xff]  ;;  %2589 = vst.msk [vmem:[#allocation2 + $0x6a0] sm:$0xff] %vm2376_vm1, %v2202_v10  ;;  %v3099_v23 = vld [vmem:[#allocation2 + $0x691] ss:$2 sm:$0xff]  ;;  %2464 = vst.msk [vmem:[#allocation2 + $0x2b8] sm:$0xff] %vm2376_vm1, %v1701_v13  ;;  %v1709_v4 = vadd.f32 %v5970_v32, %v1708_v61  ;;  %v2221_v5 = vadd.f32 %v5970_v32, %v2220_v62 }
 0x196   :  { %v2713_v24 = vld [vmem:[#allocation2 + $0x280] ss:$2 sm:$0xff]  ;;  %v2969_v25 = vld [vmem:[#allocation2 + $0x281] ss:$2 sm:$0xff]  ;;  %2592 = vst.msk [vmem:[#allocation2 + $0x6b8] sm:$0xff] %vm2376_vm1, %v2213_v14  ;;  %v3249_v27 = vmax.f32 %v2843_v19, %v3099_v23  ;;  %2462 = vst.msk [vmem:[#allocation2 + $0x2a8] sm:$0xff] %vm2376_vm1, %v1693_v30 }
 0x197   :  { %v3483_v26 = vld [vmem:[#allocation3 + $0x138] sm:$0xff]  ;;  %v3184_v28 = vmax.f32 %v2713_v24, %v2969_v25  ;;  %v2841_v29 = vld [vmem:[#allocation2 + $0x680] ss:$2 sm:$0xff]  ;;  %v3097_v31 = vld [vmem:[#allocation2 + $0x681] ss:$2 sm:$0xff]  ;;  %2590 = vst.msk [vmem:[#allocation2 + $0x6a8] sm:$0xff] %vm2376_vm1, %v2205_v20 }
 0x198   :  { %v3547_v34 = vmax.f32 %v3419_v17, %v3483_v26  ;;  %3313 = vst.msk [vmem:[#allocation3 + $0x148] sm:$0xff] %vm2376_vm1, %v3185_v22  ;;  %v3248_v37 = vmax.f32 %v2841_v29, %v3097_v31  ;;  %3377 = vst.msk [vmem:[#allocation3 + $0x348] sm:$0xff] %vm2376_vm1, %v3249_v27  ;;  %v4596_v16 = vpop.f32.mrb[92].mxu0  ;;  %v4724_v17 = vpop.f32.mrb[92].mxu1 }
 0x199   :  { %v3515_v35 = vld [vmem:[#allocation3 + $0x338] sm:$0xff]  ;;  %v3482_v36 = vld [vmem:[#allocation3 + $0x130] sm:$0xff]  ;;  %3312 = vst.msk [vmem:[#allocation3 + $0x140] sm:$0xff] %vm2376_vm1, %v3184_v28  ;;  %2467 = vst.msk [vmem:[#allocation2 + $0x2d0] sm:$0xff] %vm2376_vm1, %v1714_v46  ;;  %v1730_v18 = vadd.f32 %v5970_v32, %v4596_v16  ;;  %v2242_v48 = vadd.f32 %v5970_v32, %v4724_v17  ;;  %v1721_v19 = vpop.f32.mrb[93].mxu0  ;;  %v2233_v30 = vpop.f32.mrb[93].mxu1 }
 0x19a   :  { %v3579_v39 = vmax.f32 %v3451_v21, %v3515_v35  ;;  %v3546_v40 = vmax.f32 %v3418_v33, %v3482_v36  ;;  %v3514_v41 = vld [vmem:[#allocation3 + $0x330] sm:$0xff]  ;;  %v3611_v44 = vmax.f32 %v3547_v34, 0.0  ;;  %3376 = vst.msk [vmem:[#allocation3 + $0x340] sm:$0xff] %vm2376_vm1, %v3248_v37  ;;  %2595 = vst.msk [vmem:[#allocation2 + $0x6d0] sm:$0xff] %vm2376_vm1, %v2226_v47  ;;  %v1722_v20 = vadd.f32 %v5970_v32, %v1721_v19  ;;  %v4597_v22 = vpop.f32.mrb[94].mxu0  ;;  %v4725_v23 = vpop.f32.mrb[94].mxu1 }
 0x19b   :  { %v3578_v45 = vmax.f32 %v3450_v38, %v3514_v41  ;;  %2465 = vst.msk [vmem:[#allocation2 + $0x2c0] sm:$0xff] %vm2376_vm1, %v1706_v53  ;;  %2593 = vst.msk [vmem:[#allocation2 + $0x6c0] sm:$0xff] %vm2376_vm1, %v2218_v54  ;;  %v2234_v21 = vadd.f32 %v5970_v32, %v2233_v30  ;;  %v1733_v24 = vadd.f32 %v5970_v32, %v4597_v22  ;;  %v1724_v26 = vpop.f32.mrb[95].mxu0  ;;  %v2236_v27 = vpop.f32.mrb[95].mxu1 }
 0x19c   :  { %v3643_v51 = vmax.f32 %v3579_v39, 0.0  ;;  %v3610_v52 = vmax.f32 %v3546_v40, 0.0  ;;  %v4323_v57 = vpack.c.bf16 %v3611_v44, %v3611_v44  ;;  %v2719_v1 = vld [vmem:[#allocation2 + $0x2b0] ss:$2 sm:$0xff]  ;;  %v2975_v2 = vld [vmem:[#allocation2 + $0x2b1] ss:$2 sm:$0xff]  ;;  %v2245_v25 = vadd.f32 %v5970_v32, %v4725_v23 }
 0x19d   :  { %v3642_v58 = vmax.f32 %v3578_v45, 0.0  ;;  %v2847_v3 = vld [vmem:[#allocation2 + $0x6b0] ss:$2 sm:$0xff]  ;;  %v3187_v7 = vmax.f32 %v2719_v1, %v2975_v2  ;;  %v3103_v8 = vld [vmem:[#allocation2 + $0x6b1] ss:$2 sm:$0xff]  ;;  %2468 = vst.msk [vmem:[#allocation2 + $0x2d8] sm:$0xff] %vm2376_vm1, %v1717_v59  ;;  %v1725_v34 = vadd.f32 %v5970_v32, %v1724_v26  ;;  %v2237_v35 = vadd.f32 %v5970_v32, %v2236_v27 }
 0x19e   :  { %v4355_v63 = vpack.c.bf16 %v3643_v51, %v3643_v51  ;;  %v4322_v0 = vpack.c.bf16 %v3610_v52, %v3610_v52  ;;  %3932 = vst.msk [vmem:[%s6352_s3 + $0x4c] sm:$0xf] %vm3912_vm2, %v4323_v57  ;;  %v2717_v9 = vld [vmem:[#allocation2 + $0x2a0] ss:$2 sm:$0xff]  ;;  %v2973_v10 = vld [vmem:[#allocation2 + $0x2a1] ss:$2 sm:$0xff]  ;;  %v3251_v11 = vmax.f32 %v2847_v3, %v3103_v8 }
 0x19f   :  { %v4354_v6 = vpack.c.bf16 %v3642_v58, %v3642_v58  ;;  %2596 = vst.msk [vmem:[#allocation2 + $0x6d8] sm:$0xff] %vm2376_vm1, %v2229_v60  ;;  %v3186_v12 = vmax.f32 %v2717_v9, %v2973_v10  ;;  %v2845_v13 = vld [vmem:[#allocation2 + $0x6a0] ss:$2 sm:$0xff]  ;;  %v3101_v14 = vld [vmem:[#allocation2 + $0x6a1] ss:$2 sm:$0xff]  ;;  %2466 = vst.msk [vmem:[#allocation2 + $0x2c8] sm:$0xff] %vm2376_vm1, %v1709_v4 }
 0x1a0   :  { %3964 = vst.msk [vmem:[%s6352_s3 + $0xcc] sm:$0xf] %vm3912_vm2, %v4355_v63  ;;  %3931 = vst.msk [vmem:[%s6352_s3 + $0x48] sm:$0xf] %vm3912_vm2, %v4322_v0  ;;  %v3250_v15 = vmax.f32 %v2845_v13, %v3101_v14  ;;  %v3421_v28 = vld [vmem:[#allocation3 + $0x148] sm:$0xff]  ;;  %v3420_v46 = vld [vmem:[#allocation3 + $0x140] sm:$0xff] }
 0x1a1   :  { %2594 = vst.msk [vmem:[#allocation2 + $0x6c8] sm:$0xff] %vm2376_vm1, %v2221_v5  ;;  %3315 = vst.msk [vmem:[#allocation3 + $0x158] sm:$0xff] %vm2376_vm1, %v3187_v7  ;;  %v3453_v36 = vld [vmem:[#allocation3 + $0x348] sm:$0xff]  ;;  %v3452_v52 = vld [vmem:[#allocation3 + $0x340] sm:$0xff]  ;;  %v4600_v56 = vpop.f32.mrb[96].mxu0  ;;  %v4728_v57 = vpop.f32.mrb[96].mxu1 }
 0x1a2   :  { %3963 = vst.msk [vmem:[%s6352_s3 + $0xc8] sm:$0xf] %vm3912_vm2, %v4354_v6  ;;  %v1746_v60 = vadd.f32 %v5970_v32, %v4600_v56  ;;  %v2258_v61 = vadd.f32 %v5970_v32, %v4728_v57  ;;  %v1737_v62 = vpop.f32.mrb[97].mxu0  ;;  %v2249_v63 = vpop.f32.mrb[97].mxu1 }
 0x1a3   :  { %3379 = vst.msk [vmem:[#allocation3 + $0x358] sm:$0xff] %vm2376_vm1, %v3251_v11  ;;  %3314 = vst.msk [vmem:[#allocation3 + $0x150] sm:$0xff] %vm2376_vm1, %v3186_v12  ;;  %v1738_v2 = vadd.f32 %v5970_v32, %v1737_v62  ;;  %v2250_v3 = vadd.f32 %v5970_v32, %v2249_v63  ;;  %v4601_v4 = vpop.f32.mrb[98].mxu0  ;;  %v4729_v5 = vpop.f32.mrb[98].mxu1 }
 0x1a4   :  { %3378 = vst.msk [vmem:[#allocation3 + $0x350] sm:$0xff] %vm2376_vm1, %v3250_v15  ;;  %2471 = vst.msk [vmem:[#allocation2 + $0x2f0] sm:$0xff] %vm2376_vm1, %v1730_v18  ;;  %v2723_v29 = vld [vmem:[#allocation2 + $0x2d0] ss:$2 sm:$0xff]  ;;  %v2979_v31 = vld [vmem:[#allocation2 + $0x2d1] ss:$2 sm:$0xff]  ;;  %v1749_v8 = vadd.f32 %v5970_v32, %v4601_v4  ;;  %v2261_v9 = vadd.f32 %v5970_v32, %v4729_v5 }
 0x1a5   :  { %2599 = vst.msk [vmem:[#allocation2 + $0x6f0] sm:$0xff] %vm2376_vm1, %v2242_v48  ;;  %2469 = vst.msk [vmem:[#allocation2 + $0x2e0] sm:$0xff] %vm2376_vm1, %v1722_v20  ;;  %v3189_v37 = vmax.f32 %v2723_v29, %v2979_v31  ;;  %v1740_v10 = vpop.f32.mrb[99].mxu0  ;;  %v2252_v11 = vpop.f32.mrb[99].mxu1 }
 0x1a6   :  { %v2851_v33 = vld [vmem:[#allocation2 + $0x6d0] ss:$2 sm:$0xff]  ;;  %2597 = vst.msk [vmem:[#allocation2 + $0x6e0] sm:$0xff] %vm2376_vm1, %v2234_v21  ;;  %v3107_v38 = vld [vmem:[#allocation2 + $0x6d1] ss:$2 sm:$0xff]  ;;  %2472 = vst.msk [vmem:[#allocation2 + $0x2f8] sm:$0xff] %vm2376_vm1, %v1733_v24  ;;  %v1741_v17 = vadd.f32 %v5970_v32, %v1740_v10  ;;  %v2253_v18 = vadd.f32 %v5970_v32, %v2252_v11 }
 0x1a7   :  { %v2721_v39 = vld [vmem:[#allocation2 + $0x2c0] ss:$2 sm:$0xff]  ;;  %v2977_v40 = vld [vmem:[#allocation2 + $0x2c1] ss:$2 sm:$0xff]  ;;  %2600 = vst.msk [vmem:[#allocation2 + $0x6f8] sm:$0xff] %vm2376_vm1, %v2245_v25  ;;  %v3253_v42 = vmax.f32 %v2851_v33, %v3107_v38  ;;  %2470 = vst.msk [vmem:[#allocation2 + $0x2e8] sm:$0xff] %vm2376_vm1, %v1725_v34 }
 0x1a8   :  { %v3485_v41 = vld [vmem:[#allocation3 + $0x158] sm:$0xff]  ;;  %v3188_v43 = vmax.f32 %v2721_v39, %v2977_v40  ;;  %v2849_v44 = vld [vmem:[#allocation2 + $0x6c0] ss:$2 sm:$0xff]  ;;  %v3105_v45 = vld [vmem:[#allocation2 + $0x6c1] ss:$2 sm:$0xff]  ;;  %2598 = vst.msk [vmem:[#allocation2 + $0x6e8] sm:$0xff] %vm2376_vm1, %v2237_v35 }
 0x1a9   :  { %v3549_v47 = vmax.f32 %v3421_v28, %v3485_v41  ;;  %3317 = vst.msk [vmem:[#allocation3 + $0x168] sm:$0xff] %vm2376_vm1, %v3189_v37  ;;  %v3252_v51 = vmax.f32 %v2849_v44, %v3105_v45  ;;  %3381 = vst.msk [vmem:[#allocation3 + $0x368] sm:$0xff] %vm2376_vm1, %v3253_v42  ;;  %v4604_v27 = vpop.f32.mrb[100].mxu0  ;;  %v4732_v28 = vpop.f32.mrb[100].mxu1 }
 0x1aa   :  { %v3517_v49 = vld [vmem:[#allocation3 + $0x358] sm:$0xff]  ;;  %v3484_v50 = vld [vmem:[#allocation3 + $0x150] sm:$0xff]  ;;  %3316 = vst.msk [vmem:[#allocation3 + $0x160] sm:$0xff] %vm2376_vm1, %v3188_v43  ;;  %2475 = vst.msk [vmem:[#allocation2 + $0x310] sm:$0xff] %vm2376_vm1, %v1746_v60  ;;  %v1762_v29 = vadd.f32 %v5970_v32, %v4604_v27  ;;  %v2274_v31 = vadd.f32 %v5970_v32, %v4732_v28  ;;  %v1753_v33 = vpop.f32.mrb[101].mxu0  ;;  %v2265_v34 = vpop.f32.mrb[101].mxu1 }
 0x1ab   :  { %v3581_v53 = vmax.f32 %v3453_v36, %v3517_v49  ;;  %v3548_v54 = vmax.f32 %v3420_v46, %v3484_v50  ;;  %v3516_v55 = vld [vmem:[#allocation3 + $0x350] sm:$0xff]  ;;  %v3613_v58 = vmax.f32 %v3549_v47, 0.0  ;;  %3380 = vst.msk [vmem:[#allocation3 + $0x360] sm:$0xff] %vm2376_vm1, %v3252_v51  ;;  %2603 = vst.msk [vmem:[#allocation2 + $0x710] sm:$0xff] %vm2376_vm1, %v2258_v61  ;;  %v1754_v35 = vadd.f32 %v5970_v32, %v1753_v33  ;;  %v4605_v37 = vpop.f32.mrb[102].mxu0  ;;  %v4733_v38 = vpop.f32.mrb[102].mxu1 }
 0x1ac   :  { %v3580_v59 = vmax.f32 %v3452_v52, %v3516_v55  ;;  %2473 = vst.msk [vmem:[#allocation2 + $0x300] sm:$0xff] %vm2376_vm1, %v1738_v2  ;;  %2601 = vst.msk [vmem:[#allocation2 + $0x700] sm:$0xff] %vm2376_vm1, %v2250_v3  ;;  %v2266_v36 = vadd.f32 %v5970_v32, %v2265_v34  ;;  %v1765_v39 = vadd.f32 %v5970_v32, %v4605_v37  ;;  %v1756_v41 = vpop.f32.mrb[103].mxu0  ;;  %v2268_v42 = vpop.f32.mrb[103].mxu1 }
 0x1ad   :  { %v3645_v0 = vmax.f32 %v3581_v53, 0.0  ;;  %v3612_v1 = vmax.f32 %v3548_v54, 0.0  ;;  %v4325_v6 = vpack.c.bf16 %v3613_v58, %v3613_v58  ;;  %v2727_v14 = vld [vmem:[#allocation2 + $0x2f0] ss:$2 sm:$0xff]  ;;  %v2983_v15 = vld [vmem:[#allocation2 + $0x2f1] ss:$2 sm:$0xff]  ;;  %v2277_v40 = vadd.f32 %v5970_v32, %v4733_v38 }
 0x1ae   :  { %v3644_v7 = vmax.f32 %v3580_v59, 0.0  ;;  %v2855_v16 = vld [vmem:[#allocation2 + $0x6f0] ss:$2 sm:$0xff]  ;;  %v3191_v19 = vmax.f32 %v2727_v14, %v2983_v15  ;;  %v3111_v30 = vld [vmem:[#allocation2 + $0x6f1] ss:$2 sm:$0xff]  ;;  %2476 = vst.msk [vmem:[#allocation2 + $0x318] sm:$0xff] %vm2376_vm1, %v1749_v8  ;;  %v1757_v47 = vadd.f32 %v5970_v32, %v1756_v41  ;;  %v2269_v49 = vadd.f32 %v5970_v32, %v2268_v42 }
 0x1af   :  { %v4357_v12 = vpack.c.bf16 %v3645_v0, %v3645_v0  ;;  %v4324_v13 = vpack.c.bf16 %v3612_v1, %v3612_v1  ;;  %3934 = vst.msk [vmem:[%s6352_s3 + $0x54] sm:$0xf] %vm3912_vm2, %v4325_v6  ;;  %v2725_v20 = vld [vmem:[#allocation2 + $0x2e0] ss:$2 sm:$0xff]  ;;  %v2981_v21 = vld [vmem:[#allocation2 + $0x2e1] ss:$2 sm:$0xff]  ;;  %v3255_v22 = vmax.f32 %v2855_v16, %v3111_v30 }
 0x1b0   :  { %v4356_v48 = vpack.c.bf16 %v3644_v7, %v3644_v7  ;;  %2604 = vst.msk [vmem:[#allocation2 + $0x718] sm:$0xff] %vm2376_vm1, %v2261_v9  ;;  %v3190_v23 = vmax.f32 %v2725_v20, %v2981_v21  ;;  %v2853_v24 = vld [vmem:[#allocation2 + $0x6e0] ss:$2 sm:$0xff]  ;;  %v3109_v25 = vld [vmem:[#allocation2 + $0x6e1] ss:$2 sm:$0xff]  ;;  %2474 = vst.msk [vmem:[#allocation2 + $0x308] sm:$0xff] %vm2376_vm1, %v1741_v17 }
 0x1b1   :  { %3966 = vst.msk [vmem:[%s6352_s3 + $0xd4] sm:$0xf] %vm3912_vm2, %v4357_v12  ;;  %3933 = vst.msk [vmem:[%s6352_s3 + $0x50] sm:$0xf] %vm3912_vm2, %v4324_v13  ;;  %v3254_v26 = vmax.f32 %v2853_v24, %v3109_v25  ;;  %v3423_v43 = vld [vmem:[#allocation3 + $0x168] sm:$0xff]  ;;  %v3422_v60 = vld [vmem:[#allocation3 + $0x160] sm:$0xff] }
 0x1b2   :  { %2602 = vst.msk [vmem:[#allocation2 + $0x708] sm:$0xff] %vm2376_vm1, %v2253_v18  ;;  %3319 = vst.msk [vmem:[#allocation3 + $0x178] sm:$0xff] %vm2376_vm1, %v3191_v19  ;;  %v3455_v50 = vld [vmem:[#allocation3 + $0x368] sm:$0xff]  ;;  %v3454_v1 = vld [vmem:[#allocation3 + $0x360] sm:$0xff]  ;;  %v4608_v5 = vpop.f32.mrb[104].mxu0  ;;  %v4736_v6 = vpop.f32.mrb[104].mxu1 }
 0x1b3   :  { %3965 = vst.msk [vmem:[%s6352_s3 + $0xd0] sm:$0xf] %vm3912_vm2, %v4356_v48  ;;  %v1778_v9 = vadd.f32 %v5970_v32, %v4608_v5  ;;  %v2290_v10 = vadd.f32 %v5970_v32, %v4736_v6  ;;  %v1769_v11 = vpop.f32.mrb[105].mxu0  ;;  %v2281_v12 = vpop.f32.mrb[105].mxu1 }
 0x1b4   :  { %3383 = vst.msk [vmem:[#allocation3 + $0x378] sm:$0xff] %vm2376_vm1, %v3255_v22  ;;  %3318 = vst.msk [vmem:[#allocation3 + $0x170] sm:$0xff] %vm2376_vm1, %v3190_v23  ;;  %v1770_v15 = vadd.f32 %v5970_v32, %v1769_v11  ;;  %v2282_v16 = vadd.f32 %v5970_v32, %v2281_v12  ;;  %v4609_v17 = vpop.f32.mrb[106].mxu0  ;;  %v4737_v18 = vpop.f32.mrb[106].mxu1 }
 0x1b5   :  { %3382 = vst.msk [vmem:[#allocation3 + $0x370] sm:$0xff] %vm2376_vm1, %v3254_v26  ;;  %2479 = vst.msk [vmem:[#allocation2 + $0x330] sm:$0xff] %vm2376_vm1, %v1762_v29  ;;  %v2731_v44 = vld [vmem:[#allocation2 + $0x310] ss:$2 sm:$0xff]  ;;  %v2987_v45 = vld [vmem:[#allocation2 + $0x311] ss:$2 sm:$0xff]  ;;  %v1781_v30 = vadd.f32 %v5970_v32, %v4609_v17  ;;  %v2293_v20 = vadd.f32 %v5970_v32, %v4737_v18 }
 0x1b6   :  { %2607 = vst.msk [vmem:[#allocation2 + $0x730] sm:$0xff] %vm2376_vm1, %v2274_v31  ;;  %2477 = vst.msk [vmem:[#allocation2 + $0x320] sm:$0xff] %vm2376_vm1, %v1754_v35  ;;  %v3193_v51 = vmax.f32 %v2731_v44, %v2987_v45  ;;  %v1772_v21 = vpop.f32.mrb[107].mxu0  ;;  %v2284_v22 = vpop.f32.mrb[107].mxu1 }
 0x1b7   :  { %v2859_v46 = vld [vmem:[#allocation2 + $0x710] ss:$2 sm:$0xff]  ;;  %2605 = vst.msk [vmem:[#allocation2 + $0x720] sm:$0xff] %vm2376_vm1, %v2266_v36  ;;  %v3115_v52 = vld [vmem:[#allocation2 + $0x711] ss:$2 sm:$0xff]  ;;  %2480 = vst.msk [vmem:[#allocation2 + $0x338] sm:$0xff] %vm2376_vm1, %v1765_v39  ;;  %v1773_v28 = vadd.f32 %v5970_v32, %v1772_v21  ;;  %v2285_v29 = vadd.f32 %v5970_v32, %v2284_v22 }
 0x1b8   :  { %v2729_v53 = vld [vmem:[#allocation2 + $0x300] ss:$2 sm:$0xff]  ;;  %v2985_v54 = vld [vmem:[#allocation2 + $0x301] ss:$2 sm:$0xff]  ;;  %2608 = vst.msk [vmem:[#allocation2 + $0x738] sm:$0xff] %vm2376_vm1, %v2277_v40  ;;  %v3257_v56 = vmax.f32 %v2859_v46, %v3115_v52  ;;  %2478 = vst.msk [vmem:[#allocation2 + $0x328] sm:$0xff] %vm2376_vm1, %v1757_v47 }
 0x1b9   :  { %v3487_v55 = vld [vmem:[#allocation3 + $0x178] sm:$0xff]  ;;  %v3192_v57 = vmax.f32 %v2729_v53, %v2985_v54  ;;  %v2857_v58 = vld [vmem:[#allocation2 + $0x700] ss:$2 sm:$0xff]  ;;  %v3113_v59 = vld [vmem:[#allocation2 + $0x701] ss:$2 sm:$0xff]  ;;  %2606 = vst.msk [vmem:[#allocation2 + $0x728] sm:$0xff] %vm2376_vm1, %v2269_v49 }
 0x1ba   :  { %v3551_v61 = vmax.f32 %v3423_v43, %v3487_v55  ;;  %3321 = vst.msk [vmem:[#allocation3 + $0x188] sm:$0xff] %vm2376_vm1, %v3193_v51  ;;  %v3256_v0 = vmax.f32 %v2857_v58, %v3113_v59  ;;  %3385 = vst.msk [vmem:[#allocation3 + $0x388] sm:$0xff] %vm2376_vm1, %v3257_v56  ;;  %v4612_v42 = vpop.f32.mrb[108].mxu0  ;;  %v4740_v43 = vpop.f32.mrb[108].mxu1 }
 0x1bb   :  { %v3519_v62 = vld [vmem:[#allocation3 + $0x378] sm:$0xff]  ;;  %v3486_v63 = vld [vmem:[#allocation3 + $0x170] sm:$0xff]  ;;  %3320 = vst.msk [vmem:[#allocation3 + $0x180] sm:$0xff] %vm2376_vm1, %v3192_v57  ;;  %2483 = vst.msk [vmem:[#allocation2 + $0x350] sm:$0xff] %vm2376_vm1, %v1778_v9  ;;  %v1794_v44 = vadd.f32 %v5970_v32, %v4612_v42  ;;  %v2306_v45 = vadd.f32 %v5970_v32, %v4740_v43  ;;  %v1785_v46 = vpop.f32.mrb[109].mxu0  ;;  %v2297_v47 = vpop.f32.mrb[109].mxu1 }
 0x1bc   :  { %v3583_v2 = vmax.f32 %v3455_v50, %v3519_v62  ;;  %v3550_v3 = vmax.f32 %v3422_v60, %v3486_v63  ;;  %v3518_v4 = vld [vmem:[#allocation3 + $0x370] sm:$0xff]  ;;  %v3615_v7 = vmax.f32 %v3551_v61, 0.0  ;;  %3384 = vst.msk [vmem:[#allocation3 + $0x380] sm:$0xff] %vm2376_vm1, %v3256_v0  ;;  %2611 = vst.msk [vmem:[#allocation2 + $0x750] sm:$0xff] %vm2376_vm1, %v2290_v10  ;;  %v1786_v49 = vadd.f32 %v5970_v32, %v1785_v46  ;;  %v4613_v51 = vpop.f32.mrb[110].mxu0  ;;  %v4741_v52 = vpop.f32.mrb[110].mxu1 }
 0x1bd   :  { %v3582_v8 = vmax.f32 %v3454_v1, %v3518_v4  ;;  %2481 = vst.msk [vmem:[#allocation2 + $0x340] sm:$0xff] %vm2376_vm1, %v1770_v15  ;;  %2609 = vst.msk [vmem:[#allocation2 + $0x740] sm:$0xff] %vm2376_vm1, %v2282_v16  ;;  %v2298_v50 = vadd.f32 %v5970_v32, %v2297_v47  ;;  %v1797_v53 = vadd.f32 %v5970_v32, %v4613_v51  ;;  %v1788_v55 = vpop.f32.mrb[111].mxu0  ;;  %v2300_v56 = vpop.f32.mrb[111].mxu1 }
 0x1be   :  { %v3647_v13 = vmax.f32 %v3583_v2, 0.0  ;;  %v3614_v14 = vmax.f32 %v3550_v3, 0.0  ;;  %v4327_v48 = vpack.c.bf16 %v3615_v7, %v3615_v7  ;;  %v2735_v25 = vld [vmem:[#allocation2 + $0x330] ss:$2 sm:$0xff]  ;;  %v2991_v26 = vld [vmem:[#allocation2 + $0x331] ss:$2 sm:$0xff]  ;;  %v2309_v54 = vadd.f32 %v5970_v32, %v4741_v52 }
 0x1bf   :  { %v3646_v19 = vmax.f32 %v3582_v8, 0.0  ;;  %v2863_v27 = vld [vmem:[#allocation2 + $0x730] ss:$2 sm:$0xff]  ;;  %v3195_v33 = vmax.f32 %v2735_v25, %v2991_v26  ;;  %v3119_v34 = vld [vmem:[#allocation2 + $0x731] ss:$2 sm:$0xff]  ;;  %2484 = vst.msk [vmem:[#allocation2 + $0x358] sm:$0xff] %vm2376_vm1, %v1781_v30  ;;  %v1789_v61 = vadd.f32 %v5970_v32, %v1788_v55  ;;  %v2301_v62 = vadd.f32 %v5970_v32, %v2300_v56 }
 0x1c0   :  { %v4359_v23 = vpack.c.bf16 %v3647_v13, %v3647_v13  ;;  %v4326_v24 = vpack.c.bf16 %v3614_v14, %v3614_v14  ;;  %3936 = vst.msk [vmem:[%s6352_s3 + $0x5c] sm:$0xf] %vm3912_vm2, %v4327_v48  ;;  %v2733_v35 = vld [vmem:[#allocation2 + $0x320] ss:$2 sm:$0xff]  ;;  %v2989_v36 = vld [vmem:[#allocation2 + $0x321] ss:$2 sm:$0xff]  ;;  %v3259_v37 = vmax.f32 %v2863_v27, %v3119_v34 }
 0x1c1   :  { %v4358_v31 = vpack.c.bf16 %v3646_v19, %v3646_v19  ;;  %2612 = vst.msk [vmem:[#allocation2 + $0x758] sm:$0xff] %vm2376_vm1, %v2293_v20  ;;  %v3194_v38 = vmax.f32 %v2733_v35, %v2989_v36  ;;  %v2861_v39 = vld [vmem:[#allocation2 + $0x720] ss:$2 sm:$0xff]  ;;  %v3117_v40 = vld [vmem:[#allocation2 + $0x721] ss:$2 sm:$0xff]  ;;  %2482 = vst.msk [vmem:[#allocation2 + $0x348] sm:$0xff] %vm2376_vm1, %v1773_v28 }
 0x1c2   :  { %3968 = vst.msk [vmem:[%s6352_s3 + $0xdc] sm:$0xf] %vm3912_vm2, %v4359_v23  ;;  %3935 = vst.msk [vmem:[%s6352_s3 + $0x58] sm:$0xf] %vm3912_vm2, %v4326_v24  ;;  %v3258_v41 = vmax.f32 %v2861_v39, %v3117_v40  ;;  %v3425_v57 = vld [vmem:[#allocation3 + $0x188] sm:$0xff]  ;;  %v3424_v9 = vld [vmem:[#allocation3 + $0x180] sm:$0xff] }
 0x1c3   :  { %2610 = vst.msk [vmem:[#allocation2 + $0x748] sm:$0xff] %vm2376_vm1, %v2285_v29  ;;  %3323 = vst.msk [vmem:[#allocation3 + $0x198] sm:$0xff] %vm2376_vm1, %v3195_v33  ;;  %v3457_v63 = vld [vmem:[#allocation3 + $0x388] sm:$0xff]  ;;  %v3456_v14 = vld [vmem:[#allocation3 + $0x380] sm:$0xff]  ;;  %v4616_v18 = vpop.f32.mrb[112].mxu0  ;;  %v4744_v48 = vpop.f32.mrb[112].mxu1 }
 0x1c4   :  { %3967 = vst.msk [vmem:[%s6352_s3 + $0xd8] sm:$0xf] %vm3912_vm2, %v4358_v31  ;;  %v1810_v20 = vadd.f32 %v5970_v32, %v4616_v18  ;;  %v2322_v21 = vadd.f32 %v5970_v32, %v4744_v48  ;;  %v1801_v22 = vpop.f32.mrb[113].mxu0  ;;  %v2313_v23 = vpop.f32.mrb[113].mxu1 }
 0x1c5   :  { %3387 = vst.msk [vmem:[#allocation3 + $0x398] sm:$0xff] %vm2376_vm1, %v3259_v37  ;;  %3322 = vst.msk [vmem:[#allocation3 + $0x190] sm:$0xff] %vm2376_vm1, %v3194_v38  ;;  %v1802_v26 = vadd.f32 %v5970_v32, %v1801_v22  ;;  %v2314_v27 = vadd.f32 %v5970_v32, %v2313_v23  ;;  %v4617_v28 = vpop.f32.mrb[114].mxu0  ;;  %v4745_v29 = vpop.f32.mrb[114].mxu1 }
 0x1c6   :  { %3386 = vst.msk [vmem:[#allocation3 + $0x390] sm:$0xff] %vm2376_vm1, %v3258_v41  ;;  %2487 = vst.msk [vmem:[#allocation2 + $0x370] sm:$0xff] %vm2376_vm1, %v1794_v44  ;;  %v2739_v58 = vld [vmem:[#allocation2 + $0x350] ss:$2 sm:$0xff]  ;;  %v2995_v59 = vld [vmem:[#allocation2 + $0x351] ss:$2 sm:$0xff]  ;;  %v1813_v34 = vadd.f32 %v5970_v32, %v4617_v28  ;;  %v2325_v35 = vadd.f32 %v5970_v32, %v4745_v29 }
 0x1c7   :  { %2615 = vst.msk [vmem:[#allocation2 + $0x770] sm:$0xff] %vm2376_vm1, %v2306_v45  ;;  %2485 = vst.msk [vmem:[#allocation2 + $0x360] sm:$0xff] %vm2376_vm1, %v1786_v49  ;;  %v3197_v0 = vmax.f32 %v2739_v58, %v2995_v59  ;;  %v1804_v36 = vpop.f32.mrb[115].mxu0  ;;  %v2316_v37 = vpop.f32.mrb[115].mxu1 }
 0x1c8   :  { %v2867_v60 = vld [vmem:[#allocation2 + $0x750] ss:$2 sm:$0xff]  ;;  %2613 = vst.msk [vmem:[#allocation2 + $0x760] sm:$0xff] %vm2376_vm1, %v2298_v50  ;;  %v3123_v1 = vld [vmem:[#allocation2 + $0x751] ss:$2 sm:$0xff]  ;;  %2488 = vst.msk [vmem:[#allocation2 + $0x378] sm:$0xff] %vm2376_vm1, %v1797_v53  ;;  %v1805_v43 = vadd.f32 %v5970_v32, %v1804_v36  ;;  %v2317_v44 = vadd.f32 %v5970_v32, %v2316_v37 }
 0x1c9   :  { %v2737_v2 = vld [vmem:[#allocation2 + $0x340] ss:$2 sm:$0xff]  ;;  %v2993_v3 = vld [vmem:[#allocation2 + $0x341] ss:$2 sm:$0xff]  ;;  %2616 = vst.msk [vmem:[#allocation2 + $0x778] sm:$0xff] %vm2376_vm1, %v2309_v54  ;;  %v3261_v5 = vmax.f32 %v2867_v60, %v3123_v1  ;;  %2486 = vst.msk [vmem:[#allocation2 + $0x368] sm:$0xff] %vm2376_vm1, %v1789_v61 }
 0x1ca   :  { %v3489_v4 = vld [vmem:[#allocation3 + $0x198] sm:$0xff]  ;;  %v3196_v6 = vmax.f32 %v2737_v2, %v2993_v3  ;;  %v2865_v7 = vld [vmem:[#allocation2 + $0x740] ss:$2 sm:$0xff]  ;;  %v3121_v8 = vld [vmem:[#allocation2 + $0x741] ss:$2 sm:$0xff]  ;;  %2614 = vst.msk [vmem:[#allocation2 + $0x768] sm:$0xff] %vm2376_vm1, %v2301_v62 }
 0x1cb   :  { %v3553_v10 = vmax.f32 %v3425_v57, %v3489_v4  ;;  %3325 = vst.msk [vmem:[#allocation3 + $0x1a8] sm:$0xff] %vm2376_vm1, %v3197_v0  ;;  %v3260_v13 = vmax.f32 %v2865_v7, %v3121_v8  ;;  %3389 = vst.msk [vmem:[#allocation3 + $0x3a8] sm:$0xff] %vm2376_vm1, %v3261_v5  ;;  %v4620_v56 = vpop.f32.mrb[116].mxu0  ;;  %v4748_v57 = vpop.f32.mrb[116].mxu1 }
 0x1cc   :  { %v3521_v11 = vld [vmem:[#allocation3 + $0x398] sm:$0xff]  ;;  %v3488_v12 = vld [vmem:[#allocation3 + $0x190] sm:$0xff]  ;;  %3324 = vst.msk [vmem:[#allocation3 + $0x1a0] sm:$0xff] %vm2376_vm1, %v3196_v6  ;;  %2491 = vst.msk [vmem:[#allocation2 + $0x390] sm:$0xff] %vm2376_vm1, %v1810_v20  ;;  %v1826_v58 = vadd.f32 %v5970_v32, %v4620_v56  ;;  %v2338_v59 = vadd.f32 %v5970_v32, %v4748_v57  ;;  %v1817_v60 = vpop.f32.mrb[117].mxu0  ;;  %v2329_v61 = vpop.f32.mrb[117].mxu1 }
 0x1cd   :  { %v3585_v15 = vmax.f32 %v3457_v63, %v3521_v11  ;;  %v3552_v16 = vmax.f32 %v3424_v9, %v3488_v12  ;;  %v3520_v17 = vld [vmem:[#allocation3 + $0x390] sm:$0xff]  ;;  %v3617_v19 = vmax.f32 %v3553_v10, 0.0  ;;  %3388 = vst.msk [vmem:[#allocation3 + $0x3a0] sm:$0xff] %vm2376_vm1, %v3260_v13  ;;  %2619 = vst.msk [vmem:[#allocation2 + $0x790] sm:$0xff] %vm2376_vm1, %v2322_v21  ;;  %v1818_v62 = vadd.f32 %v5970_v32, %v1817_v60  ;;  %v4621_v0 = vpop.f32.mrb[118].mxu0  ;;  %v4749_v1 = vpop.f32.mrb[118].mxu1 }
 0x1ce   :  { %v3584_v30 = vmax.f32 %v3456_v14, %v3520_v17  ;;  %2489 = vst.msk [vmem:[#allocation2 + $0x380] sm:$0xff] %vm2376_vm1, %v1802_v26  ;;  %2617 = vst.msk [vmem:[#allocation2 + $0x780] sm:$0xff] %vm2376_vm1, %v2314_v27  ;;  %v2330_v63 = vadd.f32 %v5970_v32, %v2329_v61  ;;  %v1829_v2 = vadd.f32 %v5970_v32, %v4621_v0  ;;  %v1820_v4 = vpop.f32.mrb[119].mxu0  ;;  %v2332_v5 = vpop.f32.mrb[119].mxu1 }
 0x1cf   :  { %v3649_v24 = vmax.f32 %v3585_v15, 0.0  ;;  %v3616_v25 = vmax.f32 %v3552_v16, 0.0  ;;  %v4329_v31 = vpack.c.bf16 %v3617_v19, %v3617_v19  ;;  %v2743_v40 = vld [vmem:[#allocation2 + $0x370] ss:$2 sm:$0xff]  ;;  %v2999_v41 = vld [vmem:[#allocation2 + $0x371] ss:$2 sm:$0xff]  ;;  %v2341_v3 = vadd.f32 %v5970_v32, %v4749_v1 }
 0x1d0   :  { %v3648_v33 = vmax.f32 %v3584_v30, 0.0  ;;  %v2871_v42 = vld [vmem:[#allocation2 + $0x770] ss:$2 sm:$0xff]  ;;  %v3199_v46 = vmax.f32 %v2743_v40, %v2999_v41  ;;  %v3127_v47 = vld [vmem:[#allocation2 + $0x771] ss:$2 sm:$0xff]  ;;  %2492 = vst.msk [vmem:[#allocation2 + $0x398] sm:$0xff] %vm2376_vm1, %v1813_v34  ;;  %v1821_v10 = vadd.f32 %v5970_v32, %v1820_v4  ;;  %v2333_v11 = vadd.f32 %v5970_v32, %v2332_v5 }
 0x1d1   :  { %v4361_v38 = vpack.c.bf16 %v3649_v24, %v3649_v24  ;;  %v4328_v39 = vpack.c.bf16 %v3616_v25, %v3616_v25  ;;  %3938 = vst.msk [vmem:[%s6352_s3 + $0x64] sm:$0xf] %vm3912_vm2, %v4329_v31  ;;  %v2741_v49 = vld [vmem:[#allocation2 + $0x360] ss:$2 sm:$0xff]  ;;  %v2997_v50 = vld [vmem:[#allocation2 + $0x361] ss:$2 sm:$0xff]  ;;  %v3263_v51 = vmax.f32 %v2871_v42, %v3127_v47 }
 0x1d2   :  { %v4360_v45 = vpack.c.bf16 %v3648_v33, %v3648_v33  ;;  %2620 = vst.msk [vmem:[#allocation2 + $0x798] sm:$0xff] %vm2376_vm1, %v2325_v35  ;;  %v3198_v52 = vmax.f32 %v2741_v49, %v2997_v50  ;;  %v2869_v53 = vld [vmem:[#allocation2 + $0x760] ss:$2 sm:$0xff]  ;;  %v3125_v54 = vld [vmem:[#allocation2 + $0x761] ss:$2 sm:$0xff]  ;;  %2490 = vst.msk [vmem:[#allocation2 + $0x388] sm:$0xff] %vm2376_vm1, %v1805_v43 }
 0x1d3   :  { %3970 = vst.msk [vmem:[%s6352_s3 + $0xe4] sm:$0xf] %vm3912_vm2, %v4361_v38  ;;  %3937 = vst.msk [vmem:[%s6352_s3 + $0x60] sm:$0xf] %vm3912_vm2, %v4328_v39  ;;  %v3262_v55 = vmax.f32 %v2869_v53, %v3125_v54  ;;  %v3427_v6 = vld [vmem:[#allocation3 + $0x1a8] sm:$0xff]  ;;  %v3426_v20 = vld [vmem:[#allocation3 + $0x1a0] sm:$0xff] }
 0x1d4   :  { %2618 = vst.msk [vmem:[#allocation2 + $0x788] sm:$0xff] %vm2376_vm1, %v2317_v44  ;;  %3327 = vst.msk [vmem:[#allocation3 + $0x1b8] sm:$0xff] %vm2376_vm1, %v3199_v46  ;;  %v3459_v12 = vld [vmem:[#allocation3 + $0x3a8] sm:$0xff]  ;;  %v3458_v24 = vld [vmem:[#allocation3 + $0x3a0] sm:$0xff]  ;;  %v4624_v28 = vpop.f32.mrb[120].mxu0  ;;  %v4752_v29 = vpop.f32.mrb[120].mxu1 }
 0x1d5   :  { %3969 = vst.msk [vmem:[%s6352_s3 + $0xe0] sm:$0xf] %vm3912_vm2, %v4360_v45  ;;  %v6255_v34 = vld [vmem:[%s6351_s2] ss:$0 sm:$0xff]  ;;  %v1833_v37 = vpop.f32.mrb[121].mxu0  ;;  %v2345_v38 = vpop.f32.mrb[121].mxu1 }
 0x1d6   :  { %3391 = vst.msk [vmem:[#allocation3 + $0x3b8] sm:$0xff] %vm2376_vm1, %v3263_v51  ;;  %3326 = vst.msk [vmem:[#allocation3 + $0x1b0] sm:$0xff] %vm2376_vm1, %v3198_v52  ;;  %v1842_v35 = vadd.f32 %v6255_v34, %v4624_v28  ;;  %v2354_v36 = vadd.f32 %v6255_v34, %v4752_v29  ;;  %v1834_v41 = vadd.f32 %v6255_v34, %v1833_v37  ;;  %v4625_v43 = vpop.f32.mrb[122].mxu0  ;;  %v4753_v44 = vpop.f32.mrb[122].mxu1 }
 0x1d7   :  { %3390 = vst.msk [vmem:[#allocation3 + $0x3b0] sm:$0xff] %vm2376_vm1, %v3262_v55  ;;  %2495 = vst.msk [vmem:[#allocation2 + $0x3b0] sm:$0xff] %vm2376_vm1, %v1826_v58  ;;  %v2747_v7 = vld [vmem:[#allocation2 + $0x390] ss:$2 sm:$0xff]  ;;  %v3003_v8 = vld [vmem:[#allocation2 + $0x391] ss:$2 sm:$0xff]  ;;  %v2346_v42 = vadd.f32 %v6255_v34, %v2345_v38  ;;  %v1845_v47 = vadd.f32 %v6255_v34, %v4625_v43  ;;  %v2357_v49 = vadd.f32 %v6255_v34, %v4753_v44 }
 0x1d8   :  { %2623 = vst.msk [vmem:[#allocation2 + $0x7b0] sm:$0xff] %vm2376_vm1, %v2338_v59  ;;  %2493 = vst.msk [vmem:[#allocation2 + $0x3a0] sm:$0xff] %vm2376_vm1, %v1818_v62  ;;  %v3201_v13 = vmax.f32 %v2747_v7, %v3003_v8  ;;  %v1836_v50 = vpop.f32.mrb[123].mxu0  ;;  %v2348_v51 = vpop.f32.mrb[123].mxu1 }
 0x1d9   :  { %v2875_v9 = vld [vmem:[#allocation2 + $0x790] ss:$2 sm:$0xff]  ;;  %2621 = vst.msk [vmem:[#allocation2 + $0x7a0] sm:$0xff] %vm2376_vm1, %v2330_v63  ;;  %v3131_v14 = vld [vmem:[#allocation2 + $0x791] ss:$2 sm:$0xff]  ;;  %2496 = vst.msk [vmem:[#allocation2 + $0x3b8] sm:$0xff] %vm2376_vm1, %v1829_v2  ;;  %v1837_v57 = vadd.f32 %v6255_v34, %v1836_v50  ;;  %v2349_v58 = vadd.f32 %v6255_v34, %v2348_v51 }
 0x1da   :  { %v2745_v15 = vld [vmem:[#allocation2 + $0x380] ss:$2 sm:$0xff]  ;;  %v3001_v16 = vld [vmem:[#allocation2 + $0x381] ss:$2 sm:$0xff]  ;;  %2624 = vst.msk [vmem:[#allocation2 + $0x7b8] sm:$0xff] %vm2376_vm1, %v2341_v3  ;;  %v3265_v18 = vmax.f32 %v2875_v9, %v3131_v14  ;;  %2494 = vst.msk [vmem:[#allocation2 + $0x3a8] sm:$0xff] %vm2376_vm1, %v1821_v10 }
 0x1db   :  { %v3491_v17 = vld [vmem:[#allocation3 + $0x1b8] sm:$0xff]  ;;  %v3200_v48 = vmax.f32 %v2745_v15, %v3001_v16  ;;  %v2873_v19 = vld [vmem:[#allocation2 + $0x780] ss:$2 sm:$0xff]  ;;  %v3129_v30 = vld [vmem:[#allocation2 + $0x781] ss:$2 sm:$0xff]  ;;  %2622 = vst.msk [vmem:[#allocation2 + $0x7a8] sm:$0xff] %vm2376_vm1, %v2333_v11 }
 0x1dc   :  { %v3555_v32 = vmax.f32 %v3427_v6, %v3491_v17  ;;  %3329 = vst.msk [vmem:[#allocation3 + $0x1c8] sm:$0xff] %vm2376_vm1, %v3201_v13  ;;  %v3264_v23 = vmax.f32 %v2873_v19, %v3129_v30  ;;  %3393 = vst.msk [vmem:[#allocation3 + $0x3c8] sm:$0xff] %vm2376_vm1, %v3265_v18  ;;  %v4628_v5 = vpop.f32.mrb[124].mxu0  ;;  %v4756_v6 = vpop.f32.mrb[124].mxu1 }
 0x1dd   :  { %v3523_v21 = vld [vmem:[#allocation3 + $0x3b8] sm:$0xff]  ;;  %v3490_v22 = vld [vmem:[#allocation3 + $0x1b0] sm:$0xff]  ;;  %3328 = vst.msk [vmem:[#allocation3 + $0x1c0] sm:$0xff] %vm2376_vm1, %v3200_v48  ;;  %2499 = vst.msk [vmem:[#allocation2 + $0x3d0] sm:$0xff] %vm2376_vm1, %v1842_v35  ;;  %v1858_v7 = vadd.f32 %v6255_v34, %v4628_v5  ;;  %v2370_v8 = vadd.f32 %v6255_v34, %v4756_v6  ;;  %v1849_v9 = vpop.f32.mrb[125].mxu0  ;;  %v2361_v10 = vpop.f32.mrb[125].mxu1 }
 0x1de   :  { %v3587_v25 = vmax.f32 %v3459_v12, %v3523_v21  ;;  %v3554_v26 = vmax.f32 %v3426_v20, %v3490_v22  ;;  %v3522_v27 = vld [vmem:[#allocation3 + $0x3b0] sm:$0xff]  ;;  %v3619_v31 = vmax.f32 %v3555_v32, 0.0  ;;  %3392 = vst.msk [vmem:[#allocation3 + $0x3c0] sm:$0xff] %vm2376_vm1, %v3264_v23  ;;  %2627 = vst.msk [vmem:[#allocation2 + $0x7d0] sm:$0xff] %vm2376_vm1, %v2354_v36  ;;  %v1850_v11 = vadd.f32 %v6255_v34, %v1849_v9  ;;  %v4629_v13 = vpop.f32.mrb[126].mxu0  ;;  %v4757_v14 = vpop.f32.mrb[126].mxu1 }
 0x1df   :  { %v3586_v33 = vmax.f32 %v3458_v24, %v3522_v27  ;;  %2497 = vst.msk [vmem:[#allocation2 + $0x3c0] sm:$0xff] %vm2376_vm1, %v1834_v41  ;;  %2625 = vst.msk [vmem:[#allocation2 + $0x7c0] sm:$0xff] %vm2376_vm1, %v2346_v42  ;;  %v2362_v12 = vadd.f32 %v6255_v34, %v2361_v10  ;;  %v1861_v15 = vadd.f32 %v6255_v34, %v4629_v13  ;;  %v1852_v17 = vpop.f32.mrb[127].mxu0  ;;  %v2364_v18 = vpop.f32.mrb[127].mxu1 }
 0x1e0   :  { %v3651_v39 = vmax.f32 %v3587_v25, 0.0  ;;  %v3618_v40 = vmax.f32 %v3554_v26, 0.0  ;;  %v4331_v45 = vpack.c.bf16 %v3619_v31, %v3619_v31  ;;  %v2751_v54 = vld [vmem:[#allocation2 + $0x3b0] ss:$2 sm:$0xff]  ;;  %v3007_v55 = vld [vmem:[#allocation2 + $0x3b1] ss:$2 sm:$0xff]  ;;  %v2373_v16 = vadd.f32 %v6255_v34, %v4757_v14 }
 0x1e1   :  { %v3650_v46 = vmax.f32 %v3586_v33, 0.0  ;;  %v2879_v56 = vld [vmem:[#allocation2 + $0x7b0] ss:$2 sm:$0xff]  ;;  %v3203_v60 = vmax.f32 %v2751_v54, %v3007_v55  ;;  %v3135_v61 = vld [vmem:[#allocation2 + $0x7b1] ss:$2 sm:$0xff]  ;;  %2500 = vst.msk [vmem:[#allocation2 + $0x3d8] sm:$0xff] %vm2376_vm1, %v1845_v47  ;;  %v1853_v32 = vadd.f32 %v6255_v34, %v1852_v17  ;;  %v2365_v21 = vadd.f32 %v6255_v34, %v2364_v18 }
 0x1e2   :  { %v4363_v52 = vpack.c.bf16 %v3651_v39, %v3651_v39  ;;  %v4330_v53 = vpack.c.bf16 %v3618_v40, %v3618_v40  ;;  %3940 = vst.msk [vmem:[%s6352_s3 + $0x6c] sm:$0xf] %vm3912_vm2, %v4331_v45  ;;  %v2749_v62 = vld [vmem:[#allocation2 + $0x3a0] ss:$2 sm:$0xff]  ;;  %v3005_v63 = vld [vmem:[#allocation2 + $0x3a1] ss:$2 sm:$0xff]  ;;  %v3267_v0 = vmax.f32 %v2879_v56, %v3135_v61 }
 0x1e3   :  { %v4362_v59 = vpack.c.bf16 %v3650_v46, %v3650_v46  ;;  %2628 = vst.msk [vmem:[#allocation2 + $0x7d8] sm:$0xff] %vm2376_vm1, %v2357_v49  ;;  %v3202_v1 = vmax.f32 %v2749_v62, %v3005_v63  ;;  %v2877_v2 = vld [vmem:[#allocation2 + $0x7a0] ss:$2 sm:$0xff]  ;;  %v3133_v3 = vld [vmem:[#allocation2 + $0x7a1] ss:$2 sm:$0xff]  ;;  %2498 = vst.msk [vmem:[#allocation2 + $0x3c8] sm:$0xff] %vm2376_vm1, %v1837_v57 }
 0x1e4   :  { %3972 = vst.msk [vmem:[%s6352_s3 + $0xec] sm:$0xf] %vm3912_vm2, %v4363_v52  ;;  %3939 = vst.msk [vmem:[%s6352_s3 + $0x68] sm:$0xf] %vm3912_vm2, %v4330_v53  ;;  %v3266_v4 = vmax.f32 %v2877_v2, %v3133_v3  ;;  %v3429_v48 = vld [vmem:[#allocation3 + $0x1c8] sm:$0xff]  ;;  %v3428_v35 = vld [vmem:[#allocation3 + $0x1c0] sm:$0xff] }
 0x1e5   :  { %2626 = vst.msk [vmem:[#allocation2 + $0x7c8] sm:$0xff] %vm2376_vm1, %v2349_v58  ;;  %3331 = vst.msk [vmem:[#allocation3 + $0x1d8] sm:$0xff] %vm2376_vm1, %v3203_v60  ;;  %v3461_v22 = vld [vmem:[#allocation3 + $0x3c8] sm:$0xff]  ;;  %v3460_v39 = vld [vmem:[#allocation3 + $0x3c0] sm:$0xff] }
 0x1e6   :  { %3971 = vst.msk [vmem:[%s6352_s3 + $0xe8] sm:$0xf] %vm3912_vm2, %v4362_v59 }
 0x1e7   :  { %3395 = vst.msk [vmem:[#allocation3 + $0x3d8] sm:$0xff] %vm2376_vm1, %v3267_v0  ;;  %3330 = vst.msk [vmem:[#allocation3 + $0x1d0] sm:$0xff] %vm2376_vm1, %v3202_v1 }
 0x1e8   :  { %3394 = vst.msk [vmem:[#allocation3 + $0x3d0] sm:$0xff] %vm2376_vm1, %v3266_v4  ;;  %2503 = vst.msk [vmem:[#allocation2 + $0x3f0] sm:$0xff] %vm2376_vm1, %v1858_v7  ;;  %v2755_v19 = vld [vmem:[#allocation2 + $0x3d0] ss:$2 sm:$0xff]  ;;  %v3011_v30 = vld [vmem:[#allocation2 + $0x3d1] ss:$2 sm:$0xff] }
 0x1e9   :  { %2631 = vst.msk [vmem:[#allocation2 + $0x7f0] sm:$0xff] %vm2376_vm1, %v2370_v8  ;;  %2501 = vst.msk [vmem:[#allocation2 + $0x3e0] sm:$0xff] %vm2376_vm1, %v1850_v11  ;;  %v3205_v23 = vmax.f32 %v2755_v19, %v3011_v30 }
 0x1ea   :  { %v2883_v20 = vld [vmem:[#allocation2 + $0x7d0] ss:$2 sm:$0xff]  ;;  %2629 = vst.msk [vmem:[#allocation2 + $0x7e0] sm:$0xff] %vm2376_vm1, %v2362_v12  ;;  %v3139_v24 = vld [vmem:[#allocation2 + $0x7d1] ss:$2 sm:$0xff]  ;;  %2504 = vst.msk [vmem:[#allocation2 + $0x3f8] sm:$0xff] %vm2376_vm1, %v1861_v15 }
 0x1eb   :  { %v2753_v25 = vld [vmem:[#allocation2 + $0x3c0] ss:$2 sm:$0xff]  ;;  %v3009_v26 = vld [vmem:[#allocation2 + $0x3c1] ss:$2 sm:$0xff]  ;;  %2632 = vst.msk [vmem:[#allocation2 + $0x7f8] sm:$0xff] %vm2376_vm1, %v2373_v16  ;;  %v3269_v28 = vmax.f32 %v2883_v20, %v3139_v24  ;;  %2502 = vst.msk [vmem:[#allocation2 + $0x3e8] sm:$0xff] %vm2376_vm1, %v1853_v32 }
 0x1ec   :  { %v3493_v27 = vld [vmem:[#allocation3 + $0x1d8] sm:$0xff]  ;;  %v3204_v29 = vmax.f32 %v2753_v25, %v3009_v26  ;;  %v2881_v31 = vld [vmem:[#allocation2 + $0x7c0] ss:$2 sm:$0xff]  ;;  %v3137_v33 = vld [vmem:[#allocation2 + $0x7c1] ss:$2 sm:$0xff]  ;;  %2630 = vst.msk [vmem:[#allocation2 + $0x7e8] sm:$0xff] %vm2376_vm1, %v2365_v21 }
 0x1ed   :  { %v3557_v34 = vmax.f32 %v3429_v48, %v3493_v27  ;;  %3333 = vst.msk [vmem:[#allocation3 + $0x1e8] sm:$0xff] %vm2376_vm1, %v3205_v23  ;;  %v3268_v38 = vmax.f32 %v2881_v31, %v3137_v33  ;;  %3397 = vst.msk [vmem:[#allocation3 + $0x3e8] sm:$0xff] %vm2376_vm1, %v3269_v28 }
 0x1ee   :  { %v3525_v36 = vld [vmem:[#allocation3 + $0x3d8] sm:$0xff]  ;;  %v3492_v37 = vld [vmem:[#allocation3 + $0x1d0] sm:$0xff]  ;;  %3332 = vst.msk [vmem:[#allocation3 + $0x1e0] sm:$0xff] %vm2376_vm1, %v3204_v29 }
 0x1ef   :  { %v3589_v40 = vmax.f32 %v3461_v22, %v3525_v36  ;;  %v3556_v41 = vmax.f32 %v3428_v35, %v3492_v37  ;;  %v3524_v42 = vld [vmem:[#allocation3 + $0x3d0] sm:$0xff]  ;;  %v3621_v43 = vmax.f32 %v3557_v34, 0.0  ;;  %3396 = vst.msk [vmem:[#allocation3 + $0x3e0] sm:$0xff] %vm2376_vm1, %v3268_v38 }
 0x1f0   :  { %v3588_v44 = vmax.f32 %v3460_v39, %v3524_v42 }
 0x1f1   :  { %v3653_v45 = vmax.f32 %v3589_v40, 0.0  ;;  %v3620_v46 = vmax.f32 %v3556_v41, 0.0  ;;  %v4333_v47 = vpack.c.bf16 %v3621_v43, %v3621_v43  ;;  %v2759_v52 = vld [vmem:[#allocation2 + $0x3f0] ss:$2 sm:$0xff]  ;;  %v3015_v53 = vld [vmem:[#allocation2 + $0x3f1] ss:$2 sm:$0xff] }
 0x1f2   :  { %v3652_v49 = vmax.f32 %v3588_v44, 0.0  ;;  %v2887_v54 = vld [vmem:[#allocation2 + $0x7f0] ss:$2 sm:$0xff]  ;;  %v3207_v56 = vmax.f32 %v2759_v52, %v3015_v53  ;;  %v3143_v57 = vld [vmem:[#allocation2 + $0x7f1] ss:$2 sm:$0xff] }
 0x1f3   :  { %v4365_v50 = vpack.c.bf16 %v3653_v45, %v3653_v45  ;;  %v4332_v51 = vpack.c.bf16 %v3620_v46, %v3620_v46  ;;  %3942 = vst.msk [vmem:[%s6352_s3 + $0x74] sm:$0xf] %vm3912_vm2, %v4333_v47  ;;  %v2757_v58 = vld [vmem:[#allocation2 + $0x3e0] ss:$2 sm:$0xff]  ;;  %v3013_v59 = vld [vmem:[#allocation2 + $0x3e1] ss:$2 sm:$0xff]  ;;  %v3271_v60 = vmax.f32 %v2887_v54, %v3143_v57 }
 0x1f4   :  { %v4364_v55 = vpack.c.bf16 %v3652_v49, %v3652_v49  ;;  %v3206_v61 = vmax.f32 %v2757_v58, %v3013_v59  ;;  %v2885_v62 = vld [vmem:[#allocation2 + $0x7e0] ss:$2 sm:$0xff]  ;;  %v3141_v63 = vld [vmem:[#allocation2 + $0x7e1] ss:$2 sm:$0xff]  ;;  %3335 = vst.msk [vmem:[#allocation3 + $0x1f8] sm:$0xff] %vm2376_vm1, %v3207_v56 }
 0x1f5   :  { %3974 = vst.msk [vmem:[%s6352_s3 + $0xf4] sm:$0xf] %vm3912_vm2, %v4365_v50  ;;  %3941 = vst.msk [vmem:[%s6352_s3 + $0x70] sm:$0xf] %vm3912_vm2, %v4332_v51  ;;  %v3270_v0 = vmax.f32 %v2885_v62, %v3141_v63  ;;  %v3431_v1 = vld [vmem:[#allocation3 + $0x1e8] sm:$0xff]  ;;  %v3430_v4 = vld [vmem:[#allocation3 + $0x1e0] sm:$0xff] }
 0x1f6   :  { %3973 = vst.msk [vmem:[%s6352_s3 + $0xf0] sm:$0xf] %vm3912_vm2, %v4364_v55  ;;  %v3463_v2 = vld [vmem:[#allocation3 + $0x3e8] sm:$0xff]  ;;  %v3462_v8 = vld [vmem:[#allocation3 + $0x3e0] sm:$0xff] }
 0x1f7   :  { %3399 = vst.msk [vmem:[#allocation3 + $0x3f8] sm:$0xff] %vm2376_vm1, %v3271_v60  ;;  %3334 = vst.msk [vmem:[#allocation3 + $0x1f0] sm:$0xff] %vm2376_vm1, %v3206_v61 }
 0x1f8   :  { %3398 = vst.msk [vmem:[#allocation3 + $0x3f0] sm:$0xff] %vm2376_vm1, %v3270_v0 }
 0x1fb   :  { %v3495_v3 = vld [vmem:[#allocation3 + $0x1f8] sm:$0xff] }
 0x1fc   :  { %v3559_v5 = vmax.f32 %v3431_v1, %v3495_v3 }
 0x1fe   :  { %v3527_v6 = vld [vmem:[#allocation3 + $0x3f8] sm:$0xff]  ;;  %v3494_v7 = vld [vmem:[#allocation3 + $0x1f0] sm:$0xff]  ;;  %v3623_v12 = vmax.f32 %v3559_v5, 0.0 }
 0x1ff   :  { %v3591_v9 = vmax.f32 %v3463_v2, %v3527_v6  ;;  %v3558_v10 = vmax.f32 %v3430_v4, %v3494_v7  ;;  %v3526_v11 = vld [vmem:[#allocation3 + $0x3f0] sm:$0xff] }
 0x200   :  { %v3590_v13 = vmax.f32 %v3462_v8, %v3526_v11  ;;  %v4335_v16 = vpack.c.bf16 %v3623_v12, %v3623_v12 }
 0x201   :  { %v3655_v14 = vmax.f32 %v3591_v9, 0.0  ;;  %v3622_v15 = vmax.f32 %v3558_v10, 0.0 }
 0x202   :  { %v3654_v17 = vmax.f32 %v3590_v13, 0.0  ;;  %3944 = vst.msk [vmem:[%s6352_s3 + $0x7c] sm:$0xf] %vm3912_vm2, %v4335_v16 }
 0x203   :  { %v4367_v18 = vpack.c.bf16 %v3655_v14, %v3655_v14  ;;  %v4334_v48 = vpack.c.bf16 %v3622_v15, %v3622_v15 }
 0x204   :  { %v4366_v19 = vpack.c.bf16 %v3654_v17, %v3654_v17 }
 0x205   :  { %3976 = vst.msk [vmem:[%s6352_s3 + $0xfc] sm:$0xf] %vm3912_vm2, %v4367_v18  ;;  %3943 = vst.msk [vmem:[%s6352_s3 + $0x78] sm:$0xf] %vm3912_vm2, %v4334_v48 }
 0x206   :  { %3975 = vst.msk [vmem:[%s6352_s3 + $0xf8] sm:$0xf] %vm3912_vm2, %v4366_v19 }

// kernel: simple_cnn_forward.4
= control target key start
LH: loop header
LB: loop body
LE: loop exit
PB: predicated region body
PF: predicated region fallthrough
CT: control target
= control target key end

     0   :  { %v1499_v0 = vmov 0   ;;  %vm446_vm0 = vcmask 130048   ;;  %vm832_vm1 = vcmask 261120   ;;  %vm1216_vm2 = vcmask 257024   ;;  %s2000_s1 = inlined_call_operand.vmem [shape: bf16[144,32], index: 1, kind: input, shape index: {}]   ;;  %s2001_s0 = inlined_call_operand.vmem [shape: bf16[512,144], index: 0, kind: input, shape index: {}]   ;;  %s2002_s2 = inlined_call_operand.vmem [shape: f32[1,32], index: 2, kind: input, shape index: {}]   ;;  %s2003_s3 = inlined_call_operand.vmem [shape: bf16[128,32], index: 3, kind: output, shape index: {}]  }
   0x1   :  { %543 = vmatprep.subr.bf16.mxu0 %v1499_v0  ;;  %1375 = vmatprep.subr.bf16.mxu1 %v1499_v0  ;;  %v1394_v1 = vld [vmem:[%s2000_s1] sm:$0xff]   ;;  %v1395_v2 = vld [vmem:[%s2000_s1 + $0x8] sm:$0xff]   ;;  %v1396_v3 = vld [vmem:[%s2000_s1 + $0x10] sm:$0xff]  }
   0x2   :  { %544 = vmatpush1.bf16.msra.mxu0 %v1394_v1  ;;  %1384 = vmatpush1.bf16.msra.mxu1 %v1394_v1  ;;  %v1397_v4 = vld [vmem:[%s2000_s1 + $0x18] sm:$0xff]   ;;  %v1405_v5 = vld [vmem:[%s2001_s0 + $0x4] ss:$8 sps:$4 sm:$0xff]   ;;  %v1400_v9 = vld [vmem:[%s2000_s1 + $0x30] sm:$0xff]  }
   0x3   :  { %545 = vmatprep.subr.bf16.mxu0 %v1499_v0  ;;  %1376 = vmatprep.subr.bf16.mxu1 %v1499_v0  ;;  %v1408_v6 = vld [vmem:[%s2001_s0 + $0x104] ss:$8 sps:$4 sm:$0xff]   ;;  %v1401_v10 = vld [vmem:[%s2000_s1 + $0x38] sm:$0xff]   ;;  %v1403_v12 = vld [vmem:[%s2001_s0] ss:$8 sps:$4 sm:$0xff]  }
   0x4   :  { %1311 = vmatprep.mubr.msk.bf16.mxu0 %vm446_vm0, %v1405_v5  ;;  %1327 = vmatprep.mubr.msk.bf16.mxu1 %vm446_vm0, %v1408_v6  ;;  %v1398_v7 = vld [vmem:[%s2000_s1 + $0x20] sm:$0xff]   ;;  %v1399_v8 = vld [vmem:[%s2000_s1 + $0x28] sm:$0xff]   ;;  %v1409_v14 = vld [vmem:[%s2001_s0 + $0x14] ss:$8 sps:$4 sm:$0xff]  }
   0x5   :  { %v1402_v11 = vld [vmem:[%s2000_s1 + $0x40] sm:$0xff]   ;;  %v1411_v15 = vld [vmem:[%s2001_s0 + $0x114] ss:$8 sps:$4 sm:$0xff]   ;;  %v1413_v16 = vld [vmem:[%s2001_s0 + $0x10] ss:$8 sps:$4 sm:$0xff]  }
   0x6   :  { %546 = vmatpush1.bf16.msra.mxu0 %v1395_v2  ;;  %1385 = vmatpush1.bf16.msra.mxu1 %v1395_v2  ;;  %v1406_v13 = vld [vmem:[%s2001_s0 + $0x100] ss:$8 sps:$4 sm:$0xff]   ;;  %v1414_v17 = vld [vmem:[%s2001_s0 + $0x110] ss:$8 sps:$4 sm:$0xff]   ;;  %v1415_v18 = vld [vmem:[%s2001_s0 + $0x24] ss:$8 sps:$4 sm:$0xff]  }
   0x7   :  { %547 = vmatprep.subr.bf16.mxu0 %v1499_v0  ;;  %1377 = vmatprep.subr.bf16.mxu1 %v1499_v0  ;;  %v1417_v19 = vld [vmem:[%s2001_s0 + $0x124] ss:$8 sps:$4 sm:$0xff]   ;;  %v1419_v20 = vld [vmem:[%s2001_s0 + $0x20] ss:$8 sps:$4 sm:$0xff]   ;;  %v1421_v22 = vld [vmem:[%s2001_s0 + $0x34] ss:$8 sps:$4 sm:$0xff]  }
   0x8   :  { %v1420_v21 = vld [vmem:[%s2001_s0 + $0x120] ss:$8 sps:$4 sm:$0xff]   ;;  %v1423_v23 = vld [vmem:[%s2001_s0 + $0x134] ss:$8 sps:$4 sm:$0xff]   ;;  %v1425_v24 = vld [vmem:[%s2001_s0 + $0x30] ss:$8 sps:$4 sm:$0xff]  }
   0x9   :  { %v1426_v25 = vld [vmem:[%s2001_s0 + $0x130] ss:$8 sps:$4 sm:$0xff]   ;;  %v1427_v26 = vld [vmem:[%s2001_s0 + $0x44] ss:$8 sps:$4 sm:$0xff]   ;;  %v1431_v28 = vld [vmem:[%s2001_s0 + $0x40] ss:$8 sps:$4 sm:$0xff]  }
   0xa   :  { %548 = vmatpush1.bf16.msra.mxu0 %v1396_v3  ;;  %1386 = vmatpush1.bf16.msra.mxu1 %v1396_v3  ;;  %v1429_v27 = vld [vmem:[%s2001_s0 + $0x144] ss:$8 sps:$4 sm:$0xff]   ;;  %v1432_v29 = vld [vmem:[%s2001_s0 + $0x140] ss:$8 sps:$4 sm:$0xff]   ;;  %v1433_v30 = vld [vmem:[%s2001_s0 + $0x54] ss:$8 sps:$4 sm:$0xff]  }
   0xb   :  { %549 = vmatprep.subr.bf16.mxu0 %v1499_v0  ;;  %1378 = vmatprep.subr.bf16.mxu1 %v1499_v0  ;;  %v1435_v31 = vld [vmem:[%s2001_s0 + $0x154] ss:$8 sps:$4 sm:$0xff]   ;;  %v1437_v32 = vld [vmem:[%s2001_s0 + $0x50] ss:$8 sps:$4 sm:$0xff]   ;;  %v1439_v34 = vld [vmem:[%s2001_s0 + $0x64] ss:$8 sps:$4 sm:$0xff]  }
   0xc   :  { %v1438_v33 = vld [vmem:[%s2001_s0 + $0x150] ss:$8 sps:$4 sm:$0xff]   ;;  %v1441_v35 = vld [vmem:[%s2001_s0 + $0x164] ss:$8 sps:$4 sm:$0xff]   ;;  %v1443_v36 = vld [vmem:[%s2001_s0 + $0x60] ss:$8 sps:$4 sm:$0xff]  }
   0xd   :  { %v1444_v37 = vld [vmem:[%s2001_s0 + $0x160] ss:$8 sps:$4 sm:$0xff]   ;;  %v1445_v38 = vld [vmem:[%s2001_s0 + $0x74] ss:$8 sps:$4 sm:$0xff]   ;;  %v1449_v40 = vld [vmem:[%s2001_s0 + $0x70] ss:$8 sps:$4 sm:$0xff]  }
   0xe   :  { %550 = vmatpush1.bf16.msra.mxu0 %v1397_v4  ;;  %1387 = vmatpush1.bf16.msra.mxu1 %v1397_v4  ;;  %v1447_v39 = vld [vmem:[%s2001_s0 + $0x174] ss:$8 sps:$4 sm:$0xff]   ;;  %v1450_v41 = vld [vmem:[%s2001_s0 + $0x170] ss:$8 sps:$4 sm:$0xff]   ;;  %v1451_v42 = vld [vmem:[%s2001_s0 + $0x84] ss:$8 sps:$4 sm:$0xff]  }
   0xf   :  { %551 = vmatprep.subr.bf16.mxu0 %v1499_v0  ;;  %1379 = vmatprep.subr.bf16.mxu1 %v1499_v0  ;;  %v1453_v43 = vld [vmem:[%s2001_s0 + $0x184] ss:$8 sps:$4 sm:$0xff]   ;;  %v1455_v44 = vld [vmem:[%s2001_s0 + $0x80] ss:$8 sps:$4 sm:$0xff]   ;;  %v1457_v46 = vld [vmem:[%s2001_s0 + $0x94] ss:$8 sps:$4 sm:$0xff]  }
  0x10   :  { %v1456_v45 = vld [vmem:[%s2001_s0 + $0x180] ss:$8 sps:$4 sm:$0xff]   ;;  %v1459_v47 = vld [vmem:[%s2001_s0 + $0x194] ss:$8 sps:$4 sm:$0xff]   ;;  %v1461_v48 = vld [vmem:[%s2001_s0 + $0x90] ss:$8 sps:$4 sm:$0xff]  }
  0x11   :  { %v1462_v49 = vld [vmem:[%s2001_s0 + $0x190] ss:$8 sps:$4 sm:$0xff]   ;;  %v1463_v50 = vld [vmem:[%s2001_s0 + $0xa4] ss:$8 sps:$4 sm:$0xff]   ;;  %v1467_v52 = vld [vmem:[%s2001_s0 + $0xa0] ss:$8 sps:$4 sm:$0xff]  }
  0x12   :  { %552 = vmatpush1.bf16.msra.mxu0 %v1398_v7  ;;  %1388 = vmatpush1.bf16.msra.mxu1 %v1398_v7  ;;  %v1465_v51 = vld [vmem:[%s2001_s0 + $0x1a4] ss:$8 sps:$4 sm:$0xff]   ;;  %v1468_v53 = vld [vmem:[%s2001_s0 + $0x1a0] ss:$8 sps:$4 sm:$0xff]   ;;  %v1469_v54 = vld [vmem:[%s2001_s0 + $0xb4] ss:$8 sps:$4 sm:$0xff]  }
  0x13   :  { %553 = vmatprep.subr.bf16.mxu0 %v1499_v0  ;;  %1380 = vmatprep.subr.bf16.mxu1 %v1499_v0  ;;  %v1471_v55 = vld [vmem:[%s2001_s0 + $0x1b4] ss:$8 sps:$4 sm:$0xff]   ;;  %v1473_v56 = vld [vmem:[%s2001_s0 + $0xb0] ss:$8 sps:$4 sm:$0xff]   ;;  %v1475_v58 = vld [vmem:[%s2001_s0 + $0xc4] ss:$8 sps:$4 sm:$0xff]  }
  0x14   :  { %v1474_v57 = vld [vmem:[%s2001_s0 + $0x1b0] ss:$8 sps:$4 sm:$0xff]   ;;  %v1477_v59 = vld [vmem:[%s2001_s0 + $0x1c4] ss:$8 sps:$4 sm:$0xff]   ;;  %v1479_v60 = vld [vmem:[%s2001_s0 + $0xc0] ss:$8 sps:$4 sm:$0xff]  }
  0x15   :  { %v1480_v61 = vld [vmem:[%s2001_s0 + $0x1c0] ss:$8 sps:$4 sm:$0xff]   ;;  %v1481_v62 = vld [vmem:[%s2001_s0 + $0xd4] ss:$8 sps:$4 sm:$0xff]   ;;  %v1486_v1 = vld [vmem:[%s2001_s0 + $0x1d0] ss:$8 sps:$4 sm:$0xff]  }
  0x16   :  { %554 = vmatpush1.bf16.msra.mxu0 %v1399_v8  ;;  %1389 = vmatpush1.bf16.msra.mxu1 %v1399_v8  ;;  %v1483_v63 = vld [vmem:[%s2001_s0 + $0x1d4] ss:$8 sps:$4 sm:$0xff]   ;;  %v1487_v2 = vld [vmem:[%s2001_s0 + $0xe4] ss:$8 sps:$4 sm:$0xff]   ;;  %v1491_v4 = vld [vmem:[%s2001_s0 + $0xe0] ss:$8 sps:$4 sm:$0xff]  }
  0x17   :  { %555 = vmatprep.subr.bf16.mxu0 %v1499_v0  ;;  %1381 = vmatprep.subr.bf16.mxu1 %v1499_v0  ;;  %v1489_v3 = vld [vmem:[%s2001_s0 + $0x1e4] ss:$8 sps:$4 sm:$0xff]   ;;  %v1492_v5 = vld [vmem:[%s2001_s0 + $0x1e0] ss:$8 sps:$4 sm:$0xff]   ;;  %v1493_v6 = vld [vmem:[%s2001_s0 + $0xf4] ss:$8 sps:$4 sm:$0xff]  }
  0x18   :  { %v1495_v7 = vld [vmem:[%s2001_s0 + $0x1f4] ss:$8 sps:$4 sm:$0xff]   ;;  %v1497_v8 = vld [vmem:[%s2001_s0 + $0xf0] ss:$8 sps:$4 sm:$0xff]  }
  0x1a   :  { %556 = vmatpush1.bf16.msra.mxu0 %v1400_v9  ;;  %1390 = vmatpush1.bf16.msra.mxu1 %v1400_v9  ;;  %v1498_v9 = vld [vmem:[%s2001_s0 + $0x1f0] ss:$8 sps:$4 sm:$0xff]  }
  0x1b   :  { %557 = vmatprep.subr.bf16.mxu0 %v1499_v0  ;;  %1382 = vmatprep.subr.bf16.mxu1 %v1499_v0 }
  0x1e   :  { %558 = vmatpush1.bf16.msra.mxu0 %v1401_v10  ;;  %1391 = vmatpush1.bf16.msra.mxu1 %v1401_v10  ;;  %v1774_v10 = vld [vmem:[%s2002_s2] ss:$0 sm:$0xff] }
  0x1f   :  { %559 = vmatprep.subr.bf16.mxu0 %v1499_v0  ;;  %1383 = vmatprep.subr.bf16.mxu1 %v1499_v0  ;;  %v1485_v0 = vld [vmem:[%s2001_s0 + $0xd0] ss:$8 sps:$4 sm:$0xff]  }
  0x22   :  { %560 = vmatpush1.bf16.msra.mxu0 %v1402_v11  ;;  %1392 = vmatpush1.bf16.msra.mxu1 %v1402_v11 }
  0x25   :  { %576 = vmatmul.mubr.bf16.vlgmr.msra.gmra.mrb[0].mxu0 %v1403_v12  ;;  %704 = vmatmul.mubr.bf16.vlgmr.msra.gmra.mrb[0].mxu1 %v1406_v13 }
  0x26   :  { %1312 = vmatprep.mubr.msk.bf16.mxu0 %vm446_vm0, %v1409_v14  ;;  %1328 = vmatprep.mubr.msk.bf16.mxu1 %vm446_vm0, %v1411_v15 }
  0x2d   :  { %584 = vmatmul.mubr.bf16.gmra.mrb[4].mxu0 %v1413_v16  ;;  %712 = vmatmul.mubr.bf16.gmra.mrb[4].mxu1 %v1414_v17 }
  0x2e   :  { %1313 = vmatprep.mubr.msk.bf16.mxu0 %vm446_vm0, %v1415_v18  ;;  %1329 = vmatprep.mubr.msk.bf16.mxu1 %vm446_vm0, %v1417_v19 }
  0x35   :  { %592 = vmatmul.mubr.bf16.gmra.mrb[8].mxu0 %v1419_v20  ;;  %720 = vmatmul.mubr.bf16.gmra.mrb[8].mxu1 %v1420_v21 }
  0x36   :  { %1314 = vmatprep.mubr.msk.bf16.mxu0 %vm446_vm0, %v1421_v22  ;;  %1330 = vmatprep.mubr.msk.bf16.mxu1 %vm446_vm0, %v1423_v23 }
  0x3d   :  { %600 = vmatmul.mubr.bf16.gmra.mrb[12].mxu0 %v1425_v24  ;;  %728 = vmatmul.mubr.bf16.gmra.mrb[12].mxu1 %v1426_v25 }
  0x3e   :  { %1315 = vmatprep.mubr.msk.bf16.mxu0 %vm446_vm0, %v1427_v26  ;;  %1331 = vmatprep.mubr.msk.bf16.mxu1 %vm446_vm0, %v1429_v27 }
  0x45   :  { %608 = vmatmul.mubr.bf16.gmra.mrb[16].mxu0 %v1431_v28  ;;  %736 = vmatmul.mubr.bf16.gmra.mrb[16].mxu1 %v1432_v29 }
  0x46   :  { %1316 = vmatprep.mubr.msk.bf16.mxu0 %vm446_vm0, %v1433_v30  ;;  %1332 = vmatprep.mubr.msk.bf16.mxu1 %vm446_vm0, %v1435_v31 }
  0x4d   :  { %616 = vmatmul.mubr.bf16.gmra.mrb[20].mxu0 %v1437_v32  ;;  %744 = vmatmul.mubr.bf16.gmra.mrb[20].mxu1 %v1438_v33 }
  0x4e   :  { %1317 = vmatprep.mubr.msk.bf16.mxu0 %vm446_vm0, %v1439_v34  ;;  %1333 = vmatprep.mubr.msk.bf16.mxu1 %vm446_vm0, %v1441_v35 }
  0x55   :  { %624 = vmatmul.mubr.bf16.gmra.mrb[24].mxu0 %v1443_v36  ;;  %752 = vmatmul.mubr.bf16.gmra.mrb[24].mxu1 %v1444_v37 }
  0x56   :  { %1318 = vmatprep.mubr.msk.bf16.mxu0 %vm446_vm0, %v1445_v38  ;;  %1334 = vmatprep.mubr.msk.bf16.mxu1 %vm446_vm0, %v1447_v39 }
  0x5d   :  { %632 = vmatmul.mubr.bf16.gmra.mrb[28].mxu0 %v1449_v40  ;;  %760 = vmatmul.mubr.bf16.gmra.mrb[28].mxu1 %v1450_v41 }
  0x5e   :  { %1319 = vmatprep.mubr.msk.bf16.mxu0 %vm446_vm0, %v1451_v42  ;;  %1335 = vmatprep.mubr.msk.bf16.mxu1 %vm446_vm0, %v1453_v43 }
  0x65   :  { %640 = vmatmul.mubr.bf16.gmra.mrb[32].mxu0 %v1455_v44  ;;  %768 = vmatmul.mubr.bf16.gmra.mrb[32].mxu1 %v1456_v45 }
  0x66   :  { %1320 = vmatprep.mubr.msk.bf16.mxu0 %vm446_vm0, %v1457_v46  ;;  %1336 = vmatprep.mubr.msk.bf16.mxu1 %vm446_vm0, %v1459_v47 }
  0x6d   :  { %648 = vmatmul.mubr.bf16.gmra.mrb[36].mxu0 %v1461_v48  ;;  %776 = vmatmul.mubr.bf16.gmra.mrb[36].mxu1 %v1462_v49 }
  0x6e   :  { %1321 = vmatprep.mubr.msk.bf16.mxu0 %vm446_vm0, %v1463_v50  ;;  %1337 = vmatprep.mubr.msk.bf16.mxu1 %vm446_vm0, %v1465_v51 }
  0x75   :  { %656 = vmatmul.mubr.bf16.gmra.mrb[40].mxu0 %v1467_v52  ;;  %784 = vmatmul.mubr.bf16.gmra.mrb[40].mxu1 %v1468_v53 }
  0x76   :  { %1322 = vmatprep.mubr.msk.bf16.mxu0 %vm446_vm0, %v1469_v54  ;;  %1338 = vmatprep.mubr.msk.bf16.mxu1 %vm446_vm0, %v1471_v55 }
  0x7d   :  { %664 = vmatmul.mubr.bf16.gmra.mrb[44].mxu0 %v1473_v56  ;;  %792 = vmatmul.mubr.bf16.gmra.mrb[44].mxu1 %v1474_v57 }
  0x7e   :  { %1323 = vmatprep.mubr.msk.bf16.mxu0 %vm446_vm0, %v1475_v58  ;;  %1339 = vmatprep.mubr.msk.bf16.mxu1 %vm446_vm0, %v1477_v59 }
  0x85   :  { %672 = vmatmul.mubr.bf16.gmra.mrb[48].mxu0 %v1479_v60  ;;  %800 = vmatmul.mubr.bf16.gmra.mrb[48].mxu1 %v1480_v61 }
  0x86   :  { %1324 = vmatprep.mubr.msk.bf16.mxu0 %vm446_vm0, %v1481_v62  ;;  %1340 = vmatprep.mubr.msk.bf16.mxu1 %vm446_vm0, %v1483_v63 }
  0x8d   :  { %680 = vmatmul.mubr.bf16.gmra.mrb[52].mxu0 %v1485_v0  ;;  %808 = vmatmul.mubr.bf16.gmra.mrb[52].mxu1 %v1486_v1 }
  0x8e   :  { %1325 = vmatprep.mubr.msk.bf16.mxu0 %vm446_vm0, %v1487_v2  ;;  %1341 = vmatprep.mubr.msk.bf16.mxu1 %vm446_vm0, %v1489_v3 }
  0x95   :  { %688 = vmatmul.mubr.bf16.gmra.mrb[56].mxu0 %v1491_v4  ;;  %816 = vmatmul.mubr.bf16.gmra.mrb[56].mxu1 %v1492_v5 }
  0x96   :  { %1326 = vmatprep.mubr.msk.bf16.mxu0 %vm446_vm0, %v1493_v6  ;;  %1342 = vmatprep.mubr.msk.bf16.mxu1 %vm446_vm0, %v1495_v7 }
  0x9d   :  { %696 = vmatmul.mubr.bf16.gmra.mrb[60].mxu0 %v1497_v8  ;;  %824 = vmatmul.mubr.bf16.gmra.mrb[60].mxu1 %v1498_v9 }
  0xf8   :  { %v577_v11 = vpop.f32.mrb[0].mxu0  ;;  %v705_v12 = vpop.f32.mrb[0].mxu1 }
  0xf9   :  { %v578_v13 = vadd.f32 %v1774_v10, %v577_v11  ;;  %v706_v14 = vadd.f32 %v1774_v10, %v705_v12  ;;  %v579_v15 = vpop.f32.mrb[1].mxu0  ;;  %v707_v16 = vpop.f32.mrb[1].mxu1 }
  0xfa   :  { %v580_v17 = vpop.f32.mrb[2].mxu0  ;;  %v708_v18 = vpop.f32.mrb[2].mxu1 }
  0xfb   :  { %833 = vst.msk [vmem:[#allocation2] sm:$0xff] %vm832_vm1, %v578_v13  ;;  %865 = vst.msk [vmem:[#allocation2 + $0x100] sm:$0xff] %vm832_vm1, %v706_v14  ;;  %v581_v19 = vadd.f32 %v1774_v10, %v580_v17  ;;  %v709_v20 = vadd.f32 %v1774_v10, %v708_v18  ;;  %v582_v21 = vpop.f32.mrb[3].mxu0  ;;  %v710_v22 = vpop.f32.mrb[3].mxu1 }
  0xfd   :  { %834 = vst.msk [vmem:[#allocation2 + $0x8] sm:$0xff] %vm832_vm1, %v581_v19  ;;  %866 = vst.msk [vmem:[#allocation2 + $0x108] sm:$0xff] %vm832_vm1, %v709_v20 }
 0x100   :  { %v585_v23 = vpop.f32.mrb[4].mxu0  ;;  %v713_v24 = vpop.f32.mrb[4].mxu1 }
 0x101   :  { %v586_v25 = vadd.f32 %v1774_v10, %v585_v23  ;;  %v714_v26 = vadd.f32 %v1774_v10, %v713_v24  ;;  %v587_v27 = vpop.f32.mrb[5].mxu0  ;;  %v715_v28 = vpop.f32.mrb[5].mxu1 }
 0x102   :  { %v588_v29 = vpop.f32.mrb[6].mxu0  ;;  %v716_v30 = vpop.f32.mrb[6].mxu1 }
 0x103   :  { %835 = vst.msk [vmem:[#allocation2 + $0x10] sm:$0xff] %vm832_vm1, %v586_v25  ;;  %867 = vst.msk [vmem:[#allocation2 + $0x110] sm:$0xff] %vm832_vm1, %v714_v26  ;;  %v589_v31 = vadd.f32 %v1774_v10, %v588_v29  ;;  %v717_v32 = vadd.f32 %v1774_v10, %v716_v30  ;;  %v590_v33 = vpop.f32.mrb[7].mxu0  ;;  %v718_v34 = vpop.f32.mrb[7].mxu1 }
 0x104   :  { %v897_v35 = vld [vmem:[#allocation2] ss:$2 sm:$0xff]  ;;  %v961_v36 = vld [vmem:[#allocation2 + $0x1] ss:$2 sm:$0xff] }
 0x105   :  { %v929_v37 = vld [vmem:[#allocation2 + $0x100] ss:$2 sm:$0xff]  ;;  %v1024_v38 = vmax.f32 %v897_v35, %v961_v36  ;;  %v993_v39 = vld [vmem:[#allocation2 + $0x101] ss:$2 sm:$0xff]  ;;  %836 = vst.msk [vmem:[#allocation2 + $0x18] sm:$0xff] %vm832_vm1, %v589_v31  ;;  %868 = vst.msk [vmem:[#allocation2 + $0x118] sm:$0xff] %vm832_vm1, %v717_v32 }
 0x106   :  { %v1040_v40 = vmax.f32 %v929_v37, %v993_v39 }
 0x107   :  { %1056 = vst.msk [vmem:[#allocation3] sm:$0xff] %vm832_vm1, %v1024_v38 }
 0x108   :  { %1072 = vst.msk [vmem:[#allocation3 + $0x80] sm:$0xff] %vm832_vm1, %v1040_v40  ;;  %v593_v41 = vpop.f32.mrb[8].mxu0  ;;  %v721_v42 = vpop.f32.mrb[8].mxu1 }
 0x109   :  { %v594_v43 = vadd.f32 %v1774_v10, %v593_v41  ;;  %v722_v44 = vadd.f32 %v1774_v10, %v721_v42  ;;  %v595_v45 = vpop.f32.mrb[9].mxu0  ;;  %v723_v46 = vpop.f32.mrb[9].mxu1 }
 0x10a   :  { %v596_v47 = vpop.f32.mrb[10].mxu0  ;;  %v724_v48 = vpop.f32.mrb[10].mxu1 }
 0x10b   :  { %837 = vst.msk [vmem:[#allocation2 + $0x20] sm:$0xff] %vm832_vm1, %v594_v43  ;;  %869 = vst.msk [vmem:[#allocation2 + $0x120] sm:$0xff] %vm832_vm1, %v722_v44  ;;  %v597_v49 = vadd.f32 %v1774_v10, %v596_v47  ;;  %v725_v50 = vadd.f32 %v1774_v10, %v724_v48  ;;  %v598_v51 = vpop.f32.mrb[11].mxu0  ;;  %v726_v52 = vpop.f32.mrb[11].mxu1 }
 0x10c   :  { %v899_v53 = vld [vmem:[#allocation2 + $0x10] ss:$2 sm:$0xff]  ;;  %v963_v54 = vld [vmem:[#allocation2 + $0x11] ss:$2 sm:$0xff] }
 0x10d   :  { %v931_v55 = vld [vmem:[#allocation2 + $0x110] ss:$2 sm:$0xff]  ;;  %v1025_v56 = vmax.f32 %v899_v53, %v963_v54  ;;  %v995_v57 = vld [vmem:[#allocation2 + $0x111] ss:$2 sm:$0xff]  ;;  %838 = vst.msk [vmem:[#allocation2 + $0x28] sm:$0xff] %vm832_vm1, %v597_v49  ;;  %870 = vst.msk [vmem:[#allocation2 + $0x128] sm:$0xff] %vm832_vm1, %v725_v50 }
 0x10e   :  { %v1041_v58 = vmax.f32 %v931_v55, %v995_v57  ;;  %v1088_v13 = vld [vmem:[#allocation3] sm:$0xff] }
 0x10f   :  { %1057 = vst.msk [vmem:[#allocation3 + $0x8] sm:$0xff] %vm832_vm1, %v1025_v56  ;;  %v1096_v16 = vld [vmem:[#allocation3 + $0x80] sm:$0xff] }
 0x110   :  { %1073 = vst.msk [vmem:[#allocation3 + $0x88] sm:$0xff] %vm832_vm1, %v1041_v58  ;;  %v601_v59 = vpop.f32.mrb[12].mxu0  ;;  %v729_v60 = vpop.f32.mrb[12].mxu1 }
 0x111   :  { %v602_v61 = vadd.f32 %v1774_v10, %v601_v59  ;;  %v730_v62 = vadd.f32 %v1774_v10, %v729_v60  ;;  %v603_v63 = vpop.f32.mrb[13].mxu0  ;;  %v731_v0 = vpop.f32.mrb[13].mxu1 }
 0x112   :  { %v604_v1 = vpop.f32.mrb[14].mxu0  ;;  %v732_v2 = vpop.f32.mrb[14].mxu1 }
 0x113   :  { %839 = vst.msk [vmem:[#allocation2 + $0x30] sm:$0xff] %vm832_vm1, %v602_v61  ;;  %871 = vst.msk [vmem:[#allocation2 + $0x130] sm:$0xff] %vm832_vm1, %v730_v62  ;;  %v605_v3 = vadd.f32 %v1774_v10, %v604_v1  ;;  %v733_v4 = vadd.f32 %v1774_v10, %v732_v2  ;;  %v606_v5 = vpop.f32.mrb[15].mxu0  ;;  %v734_v6 = vpop.f32.mrb[15].mxu1 }
 0x114   :  { %v901_v7 = vld [vmem:[#allocation2 + $0x20] ss:$2 sm:$0xff]  ;;  %v965_v8 = vld [vmem:[#allocation2 + $0x21] ss:$2 sm:$0xff] }
 0x115   :  { %v933_v9 = vld [vmem:[#allocation2 + $0x120] ss:$2 sm:$0xff]  ;;  %v1026_v11 = vmax.f32 %v901_v7, %v965_v8  ;;  %v997_v12 = vld [vmem:[#allocation2 + $0x121] ss:$2 sm:$0xff]  ;;  %840 = vst.msk [vmem:[#allocation2 + $0x38] sm:$0xff] %vm832_vm1, %v605_v3  ;;  %872 = vst.msk [vmem:[#allocation2 + $0x138] sm:$0xff] %vm832_vm1, %v733_v4 }
 0x116   :  { %v1104_v14 = vld [vmem:[#allocation3 + $0x8] sm:$0xff]  ;;  %v1042_v15 = vmax.f32 %v933_v9, %v997_v12 }
 0x117   :  { %v1120_v17 = vmax.f32 %v1088_v13, %v1104_v14  ;;  %v1112_v18 = vld [vmem:[#allocation3 + $0x88] sm:$0xff]  ;;  %1058 = vst.msk [vmem:[#allocation3 + $0x10] sm:$0xff] %vm832_vm1, %v1026_v11 }
 0x118   :  { %v1128_v19 = vmax.f32 %v1096_v16, %v1112_v18  ;;  %1074 = vst.msk [vmem:[#allocation3 + $0x90] sm:$0xff] %vm832_vm1, %v1042_v15  ;;  %v609_v20 = vpop.f32.mrb[16].mxu0  ;;  %v737_v21 = vpop.f32.mrb[16].mxu1 }
 0x119   :  { %v1136_v22 = vmax.f32 %v1120_v17, 0.0  ;;  %v610_v23 = vadd.f32 %v1774_v10, %v609_v20  ;;  %v738_v24 = vadd.f32 %v1774_v10, %v737_v21  ;;  %v611_v25 = vpop.f32.mrb[17].mxu0  ;;  %v739_v26 = vpop.f32.mrb[17].mxu1 }
 0x11a   :  { %v1144_v27 = vmax.f32 %v1128_v19, 0.0  ;;  %v612_v28 = vpop.f32.mrb[18].mxu0  ;;  %v740_v29 = vpop.f32.mrb[18].mxu1 }
 0x11b   :  { %v1359_v30 = vpack.c.bf16 %v1136_v22, %v1136_v22  ;;  %841 = vst.msk [vmem:[#allocation2 + $0x40] sm:$0xff] %vm832_vm1, %v610_v23  ;;  %873 = vst.msk [vmem:[#allocation2 + $0x140] sm:$0xff] %vm832_vm1, %v738_v24  ;;  %v613_v31 = vadd.f32 %v1774_v10, %v612_v28  ;;  %v741_v32 = vadd.f32 %v1774_v10, %v740_v29  ;;  %v614_v33 = vpop.f32.mrb[19].mxu0  ;;  %v742_v34 = vpop.f32.mrb[19].mxu1 }
 0x11c   :  { %v1367_v35 = vpack.c.bf16 %v1144_v27, %v1144_v27  ;;  %v903_v36 = vld [vmem:[#allocation2 + $0x30] ss:$2 sm:$0xff]  ;;  %v967_v37 = vld [vmem:[#allocation2 + $0x31] ss:$2 sm:$0xff] }
 0x11d   :  { %v935_v38 = vld [vmem:[#allocation2 + $0x130] ss:$2 sm:$0xff]  ;;  %1217 = vst.msk [vmem:[%s2003_s3] sm:$0xf] %vm1216_vm2, %v1359_v30  ;;  %v1027_v39 = vmax.f32 %v903_v36, %v967_v37  ;;  %v999_v40 = vld [vmem:[#allocation2 + $0x131] ss:$2 sm:$0xff] }
 0x11e   :  { %842 = vst.msk [vmem:[#allocation2 + $0x48] sm:$0xff] %vm832_vm1, %v613_v31  ;;  %874 = vst.msk [vmem:[#allocation2 + $0x148] sm:$0xff] %vm832_vm1, %v741_v32  ;;  %v1043_v41 = vmax.f32 %v935_v38, %v999_v40  ;;  %v1089_v59 = vld [vmem:[#allocation3 + $0x10] sm:$0xff] }
 0x11f   :  { %1225 = vst.msk [vmem:[%s2003_s3 + $0x20] sm:$0xf] %vm1216_vm2, %v1367_v35  ;;  %v1097_v62 = vld [vmem:[#allocation3 + $0x90] sm:$0xff] }
 0x120   :  { %1059 = vst.msk [vmem:[#allocation3 + $0x18] sm:$0xff] %vm832_vm1, %v1027_v39  ;;  %1075 = vst.msk [vmem:[#allocation3 + $0x98] sm:$0xff] %vm832_vm1, %v1043_v41  ;;  %v617_v42 = vpop.f32.mrb[20].mxu0  ;;  %v745_v43 = vpop.f32.mrb[20].mxu1 }
 0x121   :  { %v618_v44 = vadd.f32 %v1774_v10, %v617_v42  ;;  %v746_v45 = vadd.f32 %v1774_v10, %v745_v43  ;;  %v619_v46 = vpop.f32.mrb[21].mxu0  ;;  %v747_v47 = vpop.f32.mrb[21].mxu1 }
 0x122   :  { %v620_v48 = vpop.f32.mrb[22].mxu0  ;;  %v748_v49 = vpop.f32.mrb[22].mxu1 }
 0x123   :  { %843 = vst.msk [vmem:[#allocation2 + $0x50] sm:$0xff] %vm832_vm1, %v618_v44  ;;  %875 = vst.msk [vmem:[#allocation2 + $0x150] sm:$0xff] %vm832_vm1, %v746_v45  ;;  %v621_v50 = vadd.f32 %v1774_v10, %v620_v48  ;;  %v749_v51 = vadd.f32 %v1774_v10, %v748_v49  ;;  %v622_v52 = vpop.f32.mrb[23].mxu0  ;;  %v750_v53 = vpop.f32.mrb[23].mxu1 }
 0x125   :  { %v905_v54 = vld [vmem:[#allocation2 + $0x40] ss:$2 sm:$0xff]  ;;  %v969_v55 = vld [vmem:[#allocation2 + $0x41] ss:$2 sm:$0xff]  ;;  %844 = vst.msk [vmem:[#allocation2 + $0x58] sm:$0xff] %vm832_vm1, %v621_v50  ;;  %876 = vst.msk [vmem:[#allocation2 + $0x158] sm:$0xff] %vm832_vm1, %v749_v51 }
 0x126   :  { %v937_v56 = vld [vmem:[#allocation2 + $0x140] ss:$2 sm:$0xff]  ;;  %v1028_v57 = vmax.f32 %v905_v54, %v969_v55  ;;  %v1001_v58 = vld [vmem:[#allocation2 + $0x141] ss:$2 sm:$0xff] }
 0x127   :  { %v1105_v60 = vld [vmem:[#allocation3 + $0x18] sm:$0xff]  ;;  %v1044_v61 = vmax.f32 %v937_v56, %v1001_v58 }
 0x128   :  { %v1121_v63 = vmax.f32 %v1089_v59, %v1105_v60  ;;  %v1113_v0 = vld [vmem:[#allocation3 + $0x98] sm:$0xff]  ;;  %1060 = vst.msk [vmem:[#allocation3 + $0x20] sm:$0xff] %vm832_vm1, %v1028_v57  ;;  %v625_v2 = vpop.f32.mrb[24].mxu0  ;;  %v753_v3 = vpop.f32.mrb[24].mxu1 }
 0x129   :  { %v1129_v1 = vmax.f32 %v1097_v62, %v1113_v0  ;;  %1076 = vst.msk [vmem:[#allocation3 + $0xa0] sm:$0xff] %vm832_vm1, %v1044_v61  ;;  %v626_v5 = vadd.f32 %v1774_v10, %v625_v2  ;;  %v754_v6 = vadd.f32 %v1774_v10, %v753_v3  ;;  %v627_v7 = vpop.f32.mrb[25].mxu0  ;;  %v755_v8 = vpop.f32.mrb[25].mxu1 }
 0x12a   :  { %v1137_v4 = vmax.f32 %v1121_v63, 0.0  ;;  %v628_v11 = vpop.f32.mrb[26].mxu0  ;;  %v756_v12 = vpop.f32.mrb[26].mxu1 }
 0x12b   :  { %v1145_v9 = vmax.f32 %v1129_v1, 0.0  ;;  %845 = vst.msk [vmem:[#allocation2 + $0x60] sm:$0xff] %vm832_vm1, %v626_v5  ;;  %877 = vst.msk [vmem:[#allocation2 + $0x160] sm:$0xff] %vm832_vm1, %v754_v6  ;;  %v629_v14 = vadd.f32 %v1774_v10, %v628_v11  ;;  %v757_v15 = vadd.f32 %v1774_v10, %v756_v12  ;;  %v630_v16 = vpop.f32.mrb[27].mxu0  ;;  %v758_v17 = vpop.f32.mrb[27].mxu1 }
 0x12c   :  { %v1360_v13 = vpack.c.bf16 %v1137_v4, %v1137_v4  ;;  %v907_v19 = vld [vmem:[#allocation2 + $0x50] ss:$2 sm:$0xff]  ;;  %v971_v20 = vld [vmem:[#allocation2 + $0x51] ss:$2 sm:$0xff] }
 0x12d   :  { %v1368_v18 = vpack.c.bf16 %v1145_v9, %v1145_v9  ;;  %v939_v21 = vld [vmem:[#allocation2 + $0x150] ss:$2 sm:$0xff]  ;;  %v1029_v22 = vmax.f32 %v907_v19, %v971_v20  ;;  %v1003_v23 = vld [vmem:[#allocation2 + $0x151] ss:$2 sm:$0xff]  ;;  %846 = vst.msk [vmem:[#allocation2 + $0x68] sm:$0xff] %vm832_vm1, %v629_v14  ;;  %878 = vst.msk [vmem:[#allocation2 + $0x168] sm:$0xff] %vm832_vm1, %v757_v15 }
 0x12e   :  { %1218 = vst.msk [vmem:[%s2003_s3 + $0x4] sm:$0xf] %vm1216_vm2, %v1360_v13  ;;  %v1045_v24 = vmax.f32 %v939_v21, %v1003_v23 }
 0x12f   :  { %1226 = vst.msk [vmem:[%s2003_s3 + $0x24] sm:$0xf] %vm1216_vm2, %v1368_v18  ;;  %v1090_v42 = vld [vmem:[#allocation3 + $0x20] sm:$0xff] }
 0x130   :  { %1061 = vst.msk [vmem:[#allocation3 + $0x28] sm:$0xff] %vm832_vm1, %v1029_v22  ;;  %1077 = vst.msk [vmem:[#allocation3 + $0xa8] sm:$0xff] %vm832_vm1, %v1045_v24  ;;  %v633_v25 = vpop.f32.mrb[28].mxu0  ;;  %v761_v26 = vpop.f32.mrb[28].mxu1  ;;  %v1098_v45 = vld [vmem:[#allocation3 + $0xa0] sm:$0xff] }
 0x131   :  { %v634_v27 = vadd.f32 %v1774_v10, %v633_v25  ;;  %v762_v28 = vadd.f32 %v1774_v10, %v761_v26  ;;  %v635_v29 = vpop.f32.mrb[29].mxu0  ;;  %v763_v30 = vpop.f32.mrb[29].mxu1 }
 0x132   :  { %v636_v31 = vpop.f32.mrb[30].mxu0  ;;  %v764_v32 = vpop.f32.mrb[30].mxu1 }
 0x133   :  { %847 = vst.msk [vmem:[#allocation2 + $0x70] sm:$0xff] %vm832_vm1, %v634_v27  ;;  %879 = vst.msk [vmem:[#allocation2 + $0x170] sm:$0xff] %vm832_vm1, %v762_v28  ;;  %v637_v33 = vadd.f32 %v1774_v10, %v636_v31  ;;  %v765_v34 = vadd.f32 %v1774_v10, %v764_v32  ;;  %v638_v35 = vpop.f32.mrb[31].mxu0  ;;  %v766_v36 = vpop.f32.mrb[31].mxu1 }
 0x134   :  { %v909_v37 = vld [vmem:[#allocation2 + $0x60] ss:$2 sm:$0xff]  ;;  %v973_v38 = vld [vmem:[#allocation2 + $0x61] ss:$2 sm:$0xff] }
 0x135   :  { %v941_v39 = vld [vmem:[#allocation2 + $0x160] ss:$2 sm:$0xff]  ;;  %v1030_v40 = vmax.f32 %v909_v37, %v973_v38  ;;  %v1005_v41 = vld [vmem:[#allocation2 + $0x161] ss:$2 sm:$0xff]  ;;  %848 = vst.msk [vmem:[#allocation2 + $0x78] sm:$0xff] %vm832_vm1, %v637_v33  ;;  %880 = vst.msk [vmem:[#allocation2 + $0x178] sm:$0xff] %vm832_vm1, %v765_v34 }
 0x136   :  { %v1046_v44 = vmax.f32 %v941_v39, %v1005_v41 }
 0x137   :  { %v1106_v43 = vld [vmem:[#allocation3 + $0x28] sm:$0xff]  ;;  %1062 = vst.msk [vmem:[#allocation3 + $0x30] sm:$0xff] %vm832_vm1, %v1030_v40 }
 0x138   :  { %v1122_v46 = vmax.f32 %v1090_v42, %v1106_v43  ;;  %v1114_v47 = vld [vmem:[#allocation3 + $0xa8] sm:$0xff]  ;;  %1078 = vst.msk [vmem:[#allocation3 + $0xb0] sm:$0xff] %vm832_vm1, %v1046_v44  ;;  %v641_v49 = vpop.f32.mrb[32].mxu0  ;;  %v769_v50 = vpop.f32.mrb[32].mxu1 }
 0x139   :  { %v1130_v48 = vmax.f32 %v1098_v45, %v1114_v47  ;;  %v642_v52 = vadd.f32 %v1774_v10, %v641_v49  ;;  %v770_v53 = vadd.f32 %v1774_v10, %v769_v50  ;;  %v643_v54 = vpop.f32.mrb[33].mxu0  ;;  %v771_v55 = vpop.f32.mrb[33].mxu1 }
 0x13a   :  { %v1138_v51 = vmax.f32 %v1122_v46, 0.0  ;;  %v644_v57 = vpop.f32.mrb[34].mxu0  ;;  %v772_v58 = vpop.f32.mrb[34].mxu1 }
 0x13b   :  { %v1146_v56 = vmax.f32 %v1130_v48, 0.0  ;;  %849 = vst.msk [vmem:[#allocation2 + $0x80] sm:$0xff] %vm832_vm1, %v642_v52  ;;  %881 = vst.msk [vmem:[#allocation2 + $0x180] sm:$0xff] %vm832_vm1, %v770_v53  ;;  %v645_v60 = vadd.f32 %v1774_v10, %v644_v57  ;;  %v773_v61 = vadd.f32 %v1774_v10, %v772_v58  ;;  %v646_v62 = vpop.f32.mrb[35].mxu0  ;;  %v774_v63 = vpop.f32.mrb[35].mxu1 }
 0x13c   :  { %v1361_v59 = vpack.c.bf16 %v1138_v51, %v1138_v51  ;;  %v911_v1 = vld [vmem:[#allocation2 + $0x70] ss:$2 sm:$0xff]  ;;  %v975_v2 = vld [vmem:[#allocation2 + $0x71] ss:$2 sm:$0xff] }
 0x13d   :  { %v1369_v0 = vpack.c.bf16 %v1146_v56, %v1146_v56  ;;  %v943_v3 = vld [vmem:[#allocation2 + $0x170] ss:$2 sm:$0xff]  ;;  %v1031_v4 = vmax.f32 %v911_v1, %v975_v2  ;;  %v1007_v5 = vld [vmem:[#allocation2 + $0x171] ss:$2 sm:$0xff]  ;;  %850 = vst.msk [vmem:[#allocation2 + $0x88] sm:$0xff] %vm832_vm1, %v645_v60  ;;  %882 = vst.msk [vmem:[#allocation2 + $0x188] sm:$0xff] %vm832_vm1, %v773_v61 }
 0x13e   :  { %1219 = vst.msk [vmem:[%s2003_s3 + $0x8] sm:$0xf] %vm1216_vm2, %v1361_v59  ;;  %v1047_v6 = vmax.f32 %v943_v3, %v1007_v5  ;;  %v1091_v25 = vld [vmem:[#allocation3 + $0x30] sm:$0xff] }
 0x13f   :  { %1227 = vst.msk [vmem:[%s2003_s3 + $0x28] sm:$0xf] %vm1216_vm2, %v1369_v0  ;;  %v1099_v28 = vld [vmem:[#allocation3 + $0xb0] sm:$0xff] }
 0x140   :  { %1063 = vst.msk [vmem:[#allocation3 + $0x38] sm:$0xff] %vm832_vm1, %v1031_v4  ;;  %1079 = vst.msk [vmem:[#allocation3 + $0xb8] sm:$0xff] %vm832_vm1, %v1047_v6  ;;  %v649_v7 = vpop.f32.mrb[36].mxu0  ;;  %v777_v8 = vpop.f32.mrb[36].mxu1 }
 0x141   :  { %v650_v9 = vadd.f32 %v1774_v10, %v649_v7  ;;  %v778_v11 = vadd.f32 %v1774_v10, %v777_v8  ;;  %v651_v12 = vpop.f32.mrb[37].mxu0  ;;  %v779_v13 = vpop.f32.mrb[37].mxu1 }
 0x142   :  { %v652_v14 = vpop.f32.mrb[38].mxu0  ;;  %v780_v15 = vpop.f32.mrb[38].mxu1 }
 0x143   :  { %851 = vst.msk [vmem:[#allocation2 + $0x90] sm:$0xff] %vm832_vm1, %v650_v9  ;;  %883 = vst.msk [vmem:[#allocation2 + $0x190] sm:$0xff] %vm832_vm1, %v778_v11  ;;  %v653_v16 = vadd.f32 %v1774_v10, %v652_v14  ;;  %v781_v17 = vadd.f32 %v1774_v10, %v780_v15  ;;  %v654_v18 = vpop.f32.mrb[39].mxu0  ;;  %v782_v19 = vpop.f32.mrb[39].mxu1 }
 0x144   :  { %v913_v20 = vld [vmem:[#allocation2 + $0x80] ss:$2 sm:$0xff]  ;;  %v977_v21 = vld [vmem:[#allocation2 + $0x81] ss:$2 sm:$0xff] }
 0x145   :  { %v945_v22 = vld [vmem:[#allocation2 + $0x180] ss:$2 sm:$0xff]  ;;  %v1032_v23 = vmax.f32 %v913_v20, %v977_v21  ;;  %v1009_v24 = vld [vmem:[#allocation2 + $0x181] ss:$2 sm:$0xff]  ;;  %852 = vst.msk [vmem:[#allocation2 + $0x98] sm:$0xff] %vm832_vm1, %v653_v16  ;;  %884 = vst.msk [vmem:[#allocation2 + $0x198] sm:$0xff] %vm832_vm1, %v781_v17 }
 0x146   :  { %v1048_v27 = vmax.f32 %v945_v22, %v1009_v24 }
 0x147   :  { %v1107_v26 = vld [vmem:[#allocation3 + $0x38] sm:$0xff]  ;;  %1064 = vst.msk [vmem:[#allocation3 + $0x40] sm:$0xff] %vm832_vm1, %v1032_v23 }
 0x148   :  { %v1123_v29 = vmax.f32 %v1091_v25, %v1107_v26  ;;  %v1115_v30 = vld [vmem:[#allocation3 + $0xb8] sm:$0xff]  ;;  %1080 = vst.msk [vmem:[#allocation3 + $0xc0] sm:$0xff] %vm832_vm1, %v1048_v27  ;;  %v657_v32 = vpop.f32.mrb[40].mxu0  ;;  %v785_v33 = vpop.f32.mrb[40].mxu1 }
 0x149   :  { %v1131_v31 = vmax.f32 %v1099_v28, %v1115_v30  ;;  %v658_v35 = vadd.f32 %v1774_v10, %v657_v32  ;;  %v786_v36 = vadd.f32 %v1774_v10, %v785_v33  ;;  %v659_v37 = vpop.f32.mrb[41].mxu0  ;;  %v787_v38 = vpop.f32.mrb[41].mxu1 }
 0x14a   :  { %v1139_v34 = vmax.f32 %v1123_v29, 0.0  ;;  %v660_v40 = vpop.f32.mrb[42].mxu0  ;;  %v788_v41 = vpop.f32.mrb[42].mxu1 }
 0x14b   :  { %v1147_v39 = vmax.f32 %v1131_v31, 0.0  ;;  %853 = vst.msk [vmem:[#allocation2 + $0xa0] sm:$0xff] %vm832_vm1, %v658_v35  ;;  %885 = vst.msk [vmem:[#allocation2 + $0x1a0] sm:$0xff] %vm832_vm1, %v786_v36  ;;  %v661_v43 = vadd.f32 %v1774_v10, %v660_v40  ;;  %v789_v44 = vadd.f32 %v1774_v10, %v788_v41  ;;  %v662_v45 = vpop.f32.mrb[43].mxu0  ;;  %v790_v46 = vpop.f32.mrb[43].mxu1 }
 0x14c   :  { %v1362_v42 = vpack.c.bf16 %v1139_v34, %v1139_v34  ;;  %v915_v48 = vld [vmem:[#allocation2 + $0x90] ss:$2 sm:$0xff]  ;;  %v979_v49 = vld [vmem:[#allocation2 + $0x91] ss:$2 sm:$0xff] }
 0x14d   :  { %v1370_v47 = vpack.c.bf16 %v1147_v39, %v1147_v39  ;;  %v947_v50 = vld [vmem:[#allocation2 + $0x190] ss:$2 sm:$0xff]  ;;  %v1033_v51 = vmax.f32 %v915_v48, %v979_v49  ;;  %v1011_v52 = vld [vmem:[#allocation2 + $0x191] ss:$2 sm:$0xff]  ;;  %854 = vst.msk [vmem:[#allocation2 + $0xa8] sm:$0xff] %vm832_vm1, %v661_v43  ;;  %886 = vst.msk [vmem:[#allocation2 + $0x1a8] sm:$0xff] %vm832_vm1, %v789_v44 }
 0x14e   :  { %1220 = vst.msk [vmem:[%s2003_s3 + $0xc] sm:$0xf] %vm1216_vm2, %v1362_v42  ;;  %v1049_v53 = vmax.f32 %v947_v50, %v1011_v52  ;;  %v1092_v7 = vld [vmem:[#allocation3 + $0x40] sm:$0xff] }
 0x14f   :  { %1228 = vst.msk [vmem:[%s2003_s3 + $0x2c] sm:$0xf] %vm1216_vm2, %v1370_v47  ;;  %v1100_v11 = vld [vmem:[#allocation3 + $0xc0] sm:$0xff] }
 0x150   :  { %1065 = vst.msk [vmem:[#allocation3 + $0x48] sm:$0xff] %vm832_vm1, %v1033_v51  ;;  %1081 = vst.msk [vmem:[#allocation3 + $0xc8] sm:$0xff] %vm832_vm1, %v1049_v53  ;;  %v665_v54 = vpop.f32.mrb[44].mxu0  ;;  %v793_v55 = vpop.f32.mrb[44].mxu1 }
 0x151   :  { %v666_v56 = vadd.f32 %v1774_v10, %v665_v54  ;;  %v794_v57 = vadd.f32 %v1774_v10, %v793_v55  ;;  %v667_v58 = vpop.f32.mrb[45].mxu0  ;;  %v795_v59 = vpop.f32.mrb[45].mxu1 }
 0x152   :  { %v668_v60 = vpop.f32.mrb[46].mxu0  ;;  %v796_v61 = vpop.f32.mrb[46].mxu1 }
 0x153   :  { %855 = vst.msk [vmem:[#allocation2 + $0xb0] sm:$0xff] %vm832_vm1, %v666_v56  ;;  %887 = vst.msk [vmem:[#allocation2 + $0x1b0] sm:$0xff] %vm832_vm1, %v794_v57  ;;  %v669_v62 = vadd.f32 %v1774_v10, %v668_v60  ;;  %v797_v63 = vadd.f32 %v1774_v10, %v796_v61  ;;  %v670_v0 = vpop.f32.mrb[47].mxu0  ;;  %v798_v1 = vpop.f32.mrb[47].mxu1 }
 0x154   :  { %v917_v2 = vld [vmem:[#allocation2 + $0xa0] ss:$2 sm:$0xff]  ;;  %v981_v3 = vld [vmem:[#allocation2 + $0xa1] ss:$2 sm:$0xff] }
 0x155   :  { %v949_v4 = vld [vmem:[#allocation2 + $0x1a0] ss:$2 sm:$0xff]  ;;  %v1034_v5 = vmax.f32 %v917_v2, %v981_v3  ;;  %v1013_v6 = vld [vmem:[#allocation2 + $0x1a1] ss:$2 sm:$0xff]  ;;  %856 = vst.msk [vmem:[#allocation2 + $0xb8] sm:$0xff] %vm832_vm1, %v669_v62  ;;  %888 = vst.msk [vmem:[#allocation2 + $0x1b8] sm:$0xff] %vm832_vm1, %v797_v63 }
 0x156   :  { %v1050_v9 = vmax.f32 %v949_v4, %v1013_v6 }
 0x157   :  { %v1108_v8 = vld [vmem:[#allocation3 + $0x48] sm:$0xff]  ;;  %1066 = vst.msk [vmem:[#allocation3 + $0x50] sm:$0xff] %vm832_vm1, %v1034_v5 }
 0x158   :  { %v1124_v12 = vmax.f32 %v1092_v7, %v1108_v8  ;;  %v1116_v13 = vld [vmem:[#allocation3 + $0xc8] sm:$0xff]  ;;  %1082 = vst.msk [vmem:[#allocation3 + $0xd0] sm:$0xff] %vm832_vm1, %v1050_v9  ;;  %v673_v15 = vpop.f32.mrb[48].mxu0  ;;  %v801_v16 = vpop.f32.mrb[48].mxu1 }
 0x159   :  { %v1132_v14 = vmax.f32 %v1100_v11, %v1116_v13  ;;  %v674_v18 = vadd.f32 %v1774_v10, %v673_v15  ;;  %v802_v19 = vadd.f32 %v1774_v10, %v801_v16  ;;  %v675_v20 = vpop.f32.mrb[49].mxu0  ;;  %v803_v21 = vpop.f32.mrb[49].mxu1 }
 0x15a   :  { %v1140_v17 = vmax.f32 %v1124_v12, 0.0  ;;  %v676_v23 = vpop.f32.mrb[50].mxu0  ;;  %v804_v24 = vpop.f32.mrb[50].mxu1 }
 0x15b   :  { %v1148_v22 = vmax.f32 %v1132_v14, 0.0  ;;  %857 = vst.msk [vmem:[#allocation2 + $0xc0] sm:$0xff] %vm832_vm1, %v674_v18  ;;  %889 = vst.msk [vmem:[#allocation2 + $0x1c0] sm:$0xff] %vm832_vm1, %v802_v19  ;;  %v677_v26 = vadd.f32 %v1774_v10, %v676_v23  ;;  %v805_v27 = vadd.f32 %v1774_v10, %v804_v24  ;;  %v678_v28 = vpop.f32.mrb[51].mxu0  ;;  %v806_v29 = vpop.f32.mrb[51].mxu1 }
 0x15c   :  { %v1363_v25 = vpack.c.bf16 %v1140_v17, %v1140_v17  ;;  %v919_v31 = vld [vmem:[#allocation2 + $0xb0] ss:$2 sm:$0xff]  ;;  %v983_v32 = vld [vmem:[#allocation2 + $0xb1] ss:$2 sm:$0xff] }
 0x15d   :  { %v1371_v30 = vpack.c.bf16 %v1148_v22, %v1148_v22  ;;  %v951_v33 = vld [vmem:[#allocation2 + $0x1b0] ss:$2 sm:$0xff]  ;;  %v1035_v34 = vmax.f32 %v919_v31, %v983_v32  ;;  %v1015_v35 = vld [vmem:[#allocation2 + $0x1b1] ss:$2 sm:$0xff]  ;;  %858 = vst.msk [vmem:[#allocation2 + $0xc8] sm:$0xff] %vm832_vm1, %v677_v26  ;;  %890 = vst.msk [vmem:[#allocation2 + $0x1c8] sm:$0xff] %vm832_vm1, %v805_v27 }
 0x15e   :  { %1221 = vst.msk [vmem:[%s2003_s3 + $0x10] sm:$0xf] %vm1216_vm2, %v1363_v25  ;;  %v1051_v36 = vmax.f32 %v951_v33, %v1015_v35  ;;  %v1093_v54 = vld [vmem:[#allocation3 + $0x50] sm:$0xff] }
 0x15f   :  { %1229 = vst.msk [vmem:[%s2003_s3 + $0x30] sm:$0xf] %vm1216_vm2, %v1371_v30  ;;  %v1101_v57 = vld [vmem:[#allocation3 + $0xd0] sm:$0xff] }
 0x160   :  { %1067 = vst.msk [vmem:[#allocation3 + $0x58] sm:$0xff] %vm832_vm1, %v1035_v34  ;;  %1083 = vst.msk [vmem:[#allocation3 + $0xd8] sm:$0xff] %vm832_vm1, %v1051_v36  ;;  %v681_v37 = vpop.f32.mrb[52].mxu0  ;;  %v809_v38 = vpop.f32.mrb[52].mxu1 }
 0x161   :  { %v682_v39 = vadd.f32 %v1774_v10, %v681_v37  ;;  %v810_v40 = vadd.f32 %v1774_v10, %v809_v38  ;;  %v683_v41 = vpop.f32.mrb[53].mxu0  ;;  %v811_v42 = vpop.f32.mrb[53].mxu1 }
 0x162   :  { %v684_v43 = vpop.f32.mrb[54].mxu0  ;;  %v812_v44 = vpop.f32.mrb[54].mxu1 }
 0x163   :  { %859 = vst.msk [vmem:[#allocation2 + $0xd0] sm:$0xff] %vm832_vm1, %v682_v39  ;;  %891 = vst.msk [vmem:[#allocation2 + $0x1d0] sm:$0xff] %vm832_vm1, %v810_v40  ;;  %v685_v45 = vadd.f32 %v1774_v10, %v684_v43  ;;  %v813_v46 = vadd.f32 %v1774_v10, %v812_v44  ;;  %v686_v47 = vpop.f32.mrb[55].mxu0  ;;  %v814_v48 = vpop.f32.mrb[55].mxu1 }
 0x164   :  { %v921_v49 = vld [vmem:[#allocation2 + $0xc0] ss:$2 sm:$0xff]  ;;  %v985_v50 = vld [vmem:[#allocation2 + $0xc1] ss:$2 sm:$0xff] }
 0x165   :  { %v953_v51 = vld [vmem:[#allocation2 + $0x1c0] ss:$2 sm:$0xff]  ;;  %v1036_v52 = vmax.f32 %v921_v49, %v985_v50  ;;  %v1017_v53 = vld [vmem:[#allocation2 + $0x1c1] ss:$2 sm:$0xff]  ;;  %860 = vst.msk [vmem:[#allocation2 + $0xd8] sm:$0xff] %vm832_vm1, %v685_v45  ;;  %892 = vst.msk [vmem:[#allocation2 + $0x1d8] sm:$0xff] %vm832_vm1, %v813_v46 }
 0x166   :  { %v1052_v56 = vmax.f32 %v953_v51, %v1017_v53 }
 0x167   :  { %v1109_v55 = vld [vmem:[#allocation3 + $0x58] sm:$0xff]  ;;  %1068 = vst.msk [vmem:[#allocation3 + $0x60] sm:$0xff] %vm832_vm1, %v1036_v52 }
 0x168   :  { %v1125_v58 = vmax.f32 %v1093_v54, %v1109_v55  ;;  %v1117_v59 = vld [vmem:[#allocation3 + $0xd8] sm:$0xff]  ;;  %1084 = vst.msk [vmem:[#allocation3 + $0xe0] sm:$0xff] %vm832_vm1, %v1052_v56  ;;  %v689_v61 = vpop.f32.mrb[56].mxu0  ;;  %v817_v62 = vpop.f32.mrb[56].mxu1 }
 0x169   :  { %v1133_v60 = vmax.f32 %v1101_v57, %v1117_v59  ;;  %v690_v0 = vadd.f32 %v1774_v10, %v689_v61  ;;  %v818_v1 = vadd.f32 %v1774_v10, %v817_v62  ;;  %v691_v2 = vpop.f32.mrb[57].mxu0  ;;  %v819_v3 = vpop.f32.mrb[57].mxu1 }
 0x16a   :  { %v1141_v63 = vmax.f32 %v1125_v58, 0.0  ;;  %v692_v5 = vpop.f32.mrb[58].mxu0  ;;  %v820_v6 = vpop.f32.mrb[58].mxu1 }
 0x16b   :  { %v1149_v4 = vmax.f32 %v1133_v60, 0.0  ;;  %861 = vst.msk [vmem:[#allocation2 + $0xe0] sm:$0xff] %vm832_vm1, %v690_v0  ;;  %893 = vst.msk [vmem:[#allocation2 + $0x1e0] sm:$0xff] %vm832_vm1, %v818_v1  ;;  %v693_v8 = vadd.f32 %v1774_v10, %v692_v5  ;;  %v821_v9 = vadd.f32 %v1774_v10, %v820_v6  ;;  %v694_v11 = vpop.f32.mrb[59].mxu0  ;;  %v822_v12 = vpop.f32.mrb[59].mxu1 }
 0x16c   :  { %v1364_v7 = vpack.c.bf16 %v1141_v63, %v1141_v63  ;;  %v923_v14 = vld [vmem:[#allocation2 + $0xd0] ss:$2 sm:$0xff]  ;;  %v987_v15 = vld [vmem:[#allocation2 + $0xd1] ss:$2 sm:$0xff] }
 0x16d   :  { %v1372_v13 = vpack.c.bf16 %v1149_v4, %v1149_v4  ;;  %v955_v16 = vld [vmem:[#allocation2 + $0x1d0] ss:$2 sm:$0xff]  ;;  %v1037_v17 = vmax.f32 %v923_v14, %v987_v15  ;;  %v1019_v18 = vld [vmem:[#allocation2 + $0x1d1] ss:$2 sm:$0xff]  ;;  %862 = vst.msk [vmem:[#allocation2 + $0xe8] sm:$0xff] %vm832_vm1, %v693_v8  ;;  %894 = vst.msk [vmem:[#allocation2 + $0x1e8] sm:$0xff] %vm832_vm1, %v821_v9 }
 0x16e   :  { %1222 = vst.msk [vmem:[%s2003_s3 + $0x14] sm:$0xf] %vm1216_vm2, %v1364_v7  ;;  %v1053_v19 = vmax.f32 %v955_v16, %v1019_v18  ;;  %v1094_v37 = vld [vmem:[#allocation3 + $0x60] sm:$0xff] }
 0x16f   :  { %1230 = vst.msk [vmem:[%s2003_s3 + $0x34] sm:$0xf] %vm1216_vm2, %v1372_v13  ;;  %v1102_v40 = vld [vmem:[#allocation3 + $0xe0] sm:$0xff] }
 0x170   :  { %1069 = vst.msk [vmem:[#allocation3 + $0x68] sm:$0xff] %vm832_vm1, %v1037_v17  ;;  %1085 = vst.msk [vmem:[#allocation3 + $0xe8] sm:$0xff] %vm832_vm1, %v1053_v19  ;;  %v697_v20 = vpop.f32.mrb[60].mxu0  ;;  %v825_v21 = vpop.f32.mrb[60].mxu1 }
 0x171   :  { %v698_v22 = vadd.f32 %v1774_v10, %v697_v20  ;;  %v826_v23 = vadd.f32 %v1774_v10, %v825_v21  ;;  %v699_v24 = vpop.f32.mrb[61].mxu0  ;;  %v827_v25 = vpop.f32.mrb[61].mxu1 }
 0x172   :  { %v700_v26 = vpop.f32.mrb[62].mxu0  ;;  %v828_v27 = vpop.f32.mrb[62].mxu1 }
 0x173   :  { %863 = vst.msk [vmem:[#allocation2 + $0xf0] sm:$0xff] %vm832_vm1, %v698_v22  ;;  %895 = vst.msk [vmem:[#allocation2 + $0x1f0] sm:$0xff] %vm832_vm1, %v826_v23  ;;  %v701_v28 = vadd.f32 %v1774_v10, %v700_v26  ;;  %v829_v29 = vadd.f32 %v1774_v10, %v828_v27  ;;  %v702_v30 = vpop.f32.mrb[63].mxu0  ;;  %v830_v31 = vpop.f32.mrb[63].mxu1 }
 0x174   :  { %v925_v32 = vld [vmem:[#allocation2 + $0xe0] ss:$2 sm:$0xff]  ;;  %v989_v33 = vld [vmem:[#allocation2 + $0xe1] ss:$2 sm:$0xff] }
 0x175   :  { %v957_v34 = vld [vmem:[#allocation2 + $0x1e0] ss:$2 sm:$0xff]  ;;  %v1038_v35 = vmax.f32 %v925_v32, %v989_v33  ;;  %v1021_v36 = vld [vmem:[#allocation2 + $0x1e1] ss:$2 sm:$0xff]  ;;  %864 = vst.msk [vmem:[#allocation2 + $0xf8] sm:$0xff] %vm832_vm1, %v701_v28  ;;  %896 = vst.msk [vmem:[#allocation2 + $0x1f8] sm:$0xff] %vm832_vm1, %v829_v29 }
 0x176   :  { %v1054_v39 = vmax.f32 %v957_v34, %v1021_v36 }
 0x177   :  { %v1110_v38 = vld [vmem:[#allocation3 + $0x68] sm:$0xff]  ;;  %1070 = vst.msk [vmem:[#allocation3 + $0x70] sm:$0xff] %vm832_vm1, %v1038_v35 }
 0x178   :  { %v1126_v41 = vmax.f32 %v1094_v37, %v1110_v38  ;;  %v1118_v42 = vld [vmem:[#allocation3 + $0xe8] sm:$0xff]  ;;  %1086 = vst.msk [vmem:[#allocation3 + $0xf0] sm:$0xff] %vm832_vm1, %v1054_v39 }
 0x179   :  { %v1134_v10 = vmax.f32 %v1102_v40, %v1118_v42 }
 0x17a   :  { %v1142_v43 = vmax.f32 %v1126_v41, 0.0 }
 0x17b   :  { %v1150_v44 = vmax.f32 %v1134_v10, 0.0 }
 0x17c   :  { %v1365_v45 = vpack.c.bf16 %v1142_v43, %v1142_v43  ;;  %v927_v47 = vld [vmem:[#allocation2 + $0xf0] ss:$2 sm:$0xff]  ;;  %v991_v48 = vld [vmem:[#allocation2 + $0xf1] ss:$2 sm:$0xff] }
 0x17d   :  { %v1373_v46 = vpack.c.bf16 %v1150_v44, %v1150_v44  ;;  %v959_v49 = vld [vmem:[#allocation2 + $0x1f0] ss:$2 sm:$0xff]  ;;  %v1039_v50 = vmax.f32 %v927_v47, %v991_v48  ;;  %v1023_v51 = vld [vmem:[#allocation2 + $0x1f1] ss:$2 sm:$0xff] }
 0x17e   :  { %1223 = vst.msk [vmem:[%s2003_s3 + $0x18] sm:$0xf] %vm1216_vm2, %v1365_v45  ;;  %v1055_v52 = vmax.f32 %v959_v49, %v1023_v51  ;;  %v1095_v53 = vld [vmem:[#allocation3 + $0x70] sm:$0xff] }
 0x17f   :  { %1231 = vst.msk [vmem:[%s2003_s3 + $0x38] sm:$0xf] %vm1216_vm2, %v1373_v46  ;;  %v1103_v55 = vld [vmem:[#allocation3 + $0xf0] sm:$0xff] }
 0x180   :  { %1071 = vst.msk [vmem:[#allocation3 + $0x78] sm:$0xff] %vm832_vm1, %v1039_v50  ;;  %1087 = vst.msk [vmem:[#allocation3 + $0xf8] sm:$0xff] %vm832_vm1, %v1055_v52 }
 0x187   :  { %v1111_v54 = vld [vmem:[#allocation3 + $0x78] sm:$0xff] }
 0x188   :  { %v1127_v56 = vmax.f32 %v1095_v53, %v1111_v54  ;;  %v1119_v57 = vld [vmem:[#allocation3 + $0xf8] sm:$0xff] }
 0x189   :  { %v1135_v58 = vmax.f32 %v1103_v55, %v1119_v57 }
 0x18a   :  { %v1143_v59 = vmax.f32 %v1127_v56, 0.0 }
 0x18b   :  { %v1151_v60 = vmax.f32 %v1135_v58, 0.0 }
 0x18c   :  { %v1366_v61 = vpack.c.bf16 %v1143_v59, %v1143_v59 }
 0x18d   :  { %v1374_v62 = vpack.c.bf16 %v1151_v60, %v1151_v60 }
 0x18e   :  { %1224 = vst.msk [vmem:[%s2003_s3 + $0x1c] sm:$0xf] %vm1216_vm2, %v1366_v61 }
 0x18f   :  { %1232 = vst.msk [vmem:[%s2003_s3 + $0x3c] sm:$0xf] %vm1216_vm2, %v1374_v62 }

// kernel: simple_cnn_forward.5
= control target key start
LH: loop header
LB: loop body
LE: loop exit
PB: predicated region body
PF: predicated region fallthrough
CT: control target
= control target key end

     0   :  { %vm2022_vm0 = vmmov 0   ;;  %vm1477_vm1 = vcmask 523264   ;;  %vm1521_vm2 = vcmask 80896   ;;  %s2482_s1 = inlined_call_operand.vmem [shape: bf16[2048,64], index: 1, kind: input, shape index: {}]   ;;  %s2483_s0 = inlined_call_operand.vmem [shape: bf16[8,2048], index: 0, kind: input, shape index: {}]   ;;  %s2484_s3 = inlined_call_operand.vmem [shape: bf16[64,10], index: 3, kind: input, shape index: {}]   ;;  %s2485_s2 = inlined_call_operand.vmem [shape: f32[1,64], index: 2, kind: input, shape index: {}]   ;;  %s2486_s4 = inlined_call_operand.vmem [shape: f32[1,10], index: 4, kind: input, shape index: {}]   ;;  %s2487_s5 = inlined_call_operand.vmem [shape: f32[8,10], index: 5, kind: output, shape index: {}]  }
   0x1   :  { %v1873_v0 = vld [vmem:[%s2482_s1 + $0x40] sm:$0xff]   ;;  %v1877_v4 = vld [vmem:[%s2482_s1 + $0x48] sm:$0xff]   ;;  %v1881_v8 = vld [vmem:[%s2482_s1 + $0x50] sm:$0xff]  }
   0x2   :  { %v1874_v1 = vld [vmem:[%s2482_s1 + $0xc0] sm:$0xff]   ;;  %1678 = vmatprep.subr.bf16.mxu0 %v1873_v0  ;;  %v1878_v5 = vld [vmem:[%s2482_s1 + $0xc8] sm:$0xff]   ;;  %v1882_v9 = vld [vmem:[%s2482_s1 + $0xd0] sm:$0xff]  }
   0x3   :  { %v1875_v2 = vld [vmem:[%s2482_s1] sm:$0xff]   ;;  %1700 = vmatprep.subr.bf16.mxu1 %v1874_v1  ;;  %v1879_v6 = vld [vmem:[%s2482_s1 + $0x8] sm:$0xff]   ;;  %v1883_v10 = vld [vmem:[%s2482_s1 + $0x10] sm:$0xff]  }
   0x4   :  { %v1876_v3 = vld [vmem:[%s2482_s1 + $0x80] sm:$0xff]   ;;  %1679 = vmatpush3.bf16.msra.mxu0 %v1875_v2  ;;  %v1880_v7 = vld [vmem:[%s2482_s1 + $0x88] sm:$0xff]   ;;  %v1884_v11 = vld [vmem:[%s2482_s1 + $0x90] sm:$0xff]  }
   0x5   :  { %1701 = vmatpush3.bf16.msra.mxu1 %v1876_v3  ;;  %1680 = vmatprep.subr.bf16.mxu0 %v1877_v4  ;;  %v1885_v12 = vld [vmem:[%s2482_s1 + $0x58] sm:$0xff]   ;;  %v1889_v16 = vld [vmem:[%s2482_s1 + $0x60] sm:$0xff]   ;;  %v1893_v20 = vld [vmem:[%s2482_s1 + $0x68] sm:$0xff]  }
   0x6   :  { %1702 = vmatprep.subr.bf16.mxu1 %v1878_v5  ;;  %v1886_v13 = vld [vmem:[%s2482_s1 + $0xd8] sm:$0xff]   ;;  %v1890_v17 = vld [vmem:[%s2482_s1 + $0xe0] sm:$0xff]   ;;  %v1894_v21 = vld [vmem:[%s2482_s1 + $0xe8] sm:$0xff]  }
   0x7   :  { %v1887_v14 = vld [vmem:[%s2482_s1 + $0x18] sm:$0xff]   ;;  %v1891_v18 = vld [vmem:[%s2482_s1 + $0x20] sm:$0xff]   ;;  %v1895_v22 = vld [vmem:[%s2482_s1 + $0x28] sm:$0xff]  }
   0x8   :  { %1681 = vmatpush3.bf16.msra.mxu0 %v1879_v6  ;;  %v1888_v15 = vld [vmem:[%s2482_s1 + $0x98] sm:$0xff]   ;;  %v1892_v19 = vld [vmem:[%s2482_s1 + $0xa0] sm:$0xff]   ;;  %v1896_v23 = vld [vmem:[%s2482_s1 + $0xa8] sm:$0xff]  }
   0x9   :  { %1703 = vmatpush3.bf16.msra.mxu1 %v1880_v7  ;;  %1682 = vmatprep.subr.bf16.mxu0 %v1881_v8  ;;  %v1897_v24 = vld [vmem:[%s2482_s1 + $0x70] sm:$0xff]   ;;  %v1901_v28 = vld [vmem:[%s2482_s1 + $0x78] sm:$0xff]   ;;  %v21_v32 = vld [vmem:[%s2483_s0] sm:$0xff] }
   0xa   :  { %1704 = vmatprep.subr.bf16.mxu1 %v1882_v9  ;;  %v1898_v25 = vld [vmem:[%s2482_s1 + $0xf0] sm:$0xff]   ;;  %v1902_v29 = vld [vmem:[%s2482_s1 + $0xf8] sm:$0xff]   ;;  %v22_v33 = vld [vmem:[%s2483_s0 + $0x8] sm:$0xff]  ;;  %v1528_v34 = vcombine.low %v21_v32, %v21_v32  ;;  %v1529_v35 = vcombine.high %v21_v32, %v21_v32 }
   0xb   :  { %v1899_v26 = vld [vmem:[%s2482_s1 + $0x30] sm:$0xff]   ;;  %v1903_v30 = vld [vmem:[%s2482_s1 + $0x38] sm:$0xff]   ;;  %v1530_v36 = vcombine.low %v22_v33, %v22_v33  ;;  %v1531_v37 = vcombine.high %v22_v33, %v22_v33  ;;  %v1909_v38 = vld [vmem:[%s2482_s1 + $0x140] sm:$0xff]  }
   0xc   :  { %1683 = vmatpush3.bf16.msra.mxu0 %v1883_v10  ;;  %v1900_v27 = vld [vmem:[%s2482_s1 + $0xb0] sm:$0xff]   ;;  %v1904_v31 = vld [vmem:[%s2482_s1 + $0xb8] sm:$0xff]   ;;  %v1910_v39 = vld [vmem:[%s2482_s1 + $0x1c0] sm:$0xff]   ;;  %1148 = vmatprep.mubr.bf16.mxu0 %v1529_v35 }
   0xd   :  { %1705 = vmatpush3.bf16.msra.mxu1 %v1884_v11  ;;  %1684 = vmatprep.subr.bf16.mxu0 %v1885_v12  ;;  %v1911_v40 = vld [vmem:[%s2482_s1 + $0x100] sm:$0xff]   ;;  %v1913_v42 = vld [vmem:[%s2482_s1 + $0x148] sm:$0xff]   ;;  %v1917_v46 = vld [vmem:[%s2482_s1 + $0x150] sm:$0xff]  }
   0xe   :  { %1706 = vmatprep.subr.bf16.mxu1 %v1886_v13  ;;  %1188 = vmatprep.mubr.bf16.mxu1 %v1531_v37  ;;  %v1912_v41 = vld [vmem:[%s2482_s1 + $0x180] sm:$0xff]   ;;  %v1914_v43 = vld [vmem:[%s2482_s1 + $0x1c8] sm:$0xff]   ;;  %v1918_v47 = vld [vmem:[%s2482_s1 + $0x1d0] sm:$0xff]  }
   0xf   :  { %v1915_v44 = vld [vmem:[%s2482_s1 + $0x108] sm:$0xff]   ;;  %v1919_v48 = vld [vmem:[%s2482_s1 + $0x110] sm:$0xff]   ;;  %v1921_v50 = vld [vmem:[%s2482_s1 + $0x158] sm:$0xff]  }
  0x10   :  { %1685 = vmatpush3.bf16.msra.mxu0 %v1887_v14  ;;  %v1916_v45 = vld [vmem:[%s2482_s1 + $0x188] sm:$0xff]   ;;  %v1920_v49 = vld [vmem:[%s2482_s1 + $0x190] sm:$0xff]   ;;  %v1922_v51 = vld [vmem:[%s2482_s1 + $0x1d8] sm:$0xff]  }
  0x11   :  { %1707 = vmatpush3.bf16.msra.mxu1 %v1888_v15  ;;  %1686 = vmatprep.subr.bf16.mxu0 %v1889_v16  ;;  %v1923_v52 = vld [vmem:[%s2482_s1 + $0x118] sm:$0xff]   ;;  %v1925_v54 = vld [vmem:[%s2482_s1 + $0x160] sm:$0xff]   ;;  %v1929_v58 = vld [vmem:[%s2482_s1 + $0x168] sm:$0xff]  }
  0x12   :  { %1708 = vmatprep.subr.bf16.mxu1 %v1890_v17  ;;  %v1924_v53 = vld [vmem:[%s2482_s1 + $0x198] sm:$0xff]   ;;  %v1926_v55 = vld [vmem:[%s2482_s1 + $0x1e0] sm:$0xff]   ;;  %v1930_v59 = vld [vmem:[%s2482_s1 + $0x1e8] sm:$0xff]  }
  0x13   :  { %v1927_v56 = vld [vmem:[%s2482_s1 + $0x120] sm:$0xff]   ;;  %v1931_v60 = vld [vmem:[%s2482_s1 + $0x128] sm:$0xff]   ;;  %v1933_v62 = vld [vmem:[%s2482_s1 + $0x170] sm:$0xff]  }
  0x14   :  { %1687 = vmatpush3.bf16.msra.mxu0 %v1891_v18  ;;  %v1928_v57 = vld [vmem:[%s2482_s1 + $0x1a0] sm:$0xff]   ;;  %v1932_v61 = vld [vmem:[%s2482_s1 + $0x1a8] sm:$0xff]   ;;  %v1934_v63 = vld [vmem:[%s2482_s1 + $0x1f0] sm:$0xff]  }
  0x15   :  { %1709 = vmatpush3.bf16.msra.mxu1 %v1892_v19  ;;  %1688 = vmatprep.subr.bf16.mxu0 %v1893_v20  ;;  %v1935_v0 = vld [vmem:[%s2482_s1 + $0x130] sm:$0xff]   ;;  %v1937_v2 = vld [vmem:[%s2482_s1 + $0x178] sm:$0xff]   ;;  %v1945_v12 = vld [vmem:[%s2482_s1 + $0x240] sm:$0xff]  }
  0x16   :  { %1710 = vmatprep.subr.bf16.mxu1 %v1894_v21  ;;  %v1936_v1 = vld [vmem:[%s2482_s1 + $0x1b0] sm:$0xff]   ;;  %v1938_v3 = vld [vmem:[%s2482_s1 + $0x1f8] sm:$0xff]   ;;  %v1946_v13 = vld [vmem:[%s2482_s1 + $0x2c0] sm:$0xff]  }
  0x17   :  { %v1939_v4 = vld [vmem:[%s2482_s1 + $0x138] sm:$0xff]   ;;  %v23_v6 = vld [vmem:[%s2483_s0 + $0x10] sm:$0xff]  ;;  %v1947_v14 = vld [vmem:[%s2482_s1 + $0x200] sm:$0xff]  }
  0x18   :  { %1689 = vmatpush3.bf16.msra.mxu0 %v1895_v22  ;;  %v1940_v5 = vld [vmem:[%s2482_s1 + $0x1b8] sm:$0xff]   ;;  %v1532_v7 = vcombine.low %v23_v6, %v23_v6  ;;  %v1533_v8 = vcombine.high %v23_v6, %v23_v6  ;;  %v1948_v15 = vld [vmem:[%s2482_s1 + $0x280] sm:$0xff]   ;;  %v1949_v16 = vld [vmem:[%s2482_s1 + $0x248] sm:$0xff]  }
  0x19   :  { %1711 = vmatpush3.bf16.msra.mxu1 %v1896_v23  ;;  %1690 = vmatprep.subr.bf16.mxu0 %v1897_v24  ;;  %v24_v9 = vld [vmem:[%s2483_s0 + $0x18] sm:$0xff]  ;;  %v1950_v17 = vld [vmem:[%s2482_s1 + $0x2c8] sm:$0xff]   ;;  %v1953_v20 = vld [vmem:[%s2482_s1 + $0x250] sm:$0xff]  }
  0x1a   :  { %1712 = vmatprep.subr.bf16.mxu1 %v1898_v25  ;;  %v1534_v10 = vcombine.low %v24_v9, %v24_v9  ;;  %v1535_v11 = vcombine.high %v24_v9, %v24_v9  ;;  %v1951_v18 = vld [vmem:[%s2482_s1 + $0x208] sm:$0xff]   ;;  %v1954_v21 = vld [vmem:[%s2482_s1 + $0x2d0] sm:$0xff]   ;;  %v1957_v24 = vld [vmem:[%s2482_s1 + $0x258] sm:$0xff]  }
  0x1b   :  { %v1952_v19 = vld [vmem:[%s2482_s1 + $0x288] sm:$0xff]   ;;  %v1955_v22 = vld [vmem:[%s2482_s1 + $0x210] sm:$0xff]   ;;  %v1958_v25 = vld [vmem:[%s2482_s1 + $0x2d8] sm:$0xff]  }
  0x1c   :  { %1691 = vmatpush3.bf16.msra.mxu0 %v1899_v26  ;;  %v1956_v23 = vld [vmem:[%s2482_s1 + $0x290] sm:$0xff]   ;;  %v1959_v26 = vld [vmem:[%s2482_s1 + $0x218] sm:$0xff]   ;;  %v1965_v32 = vld [vmem:[%s2482_s1 + $0x268] sm:$0xff]  }
  0x1d   :  { %1713 = vmatpush3.bf16.msra.mxu1 %v1900_v27  ;;  %1692 = vmatprep.subr.bf16.mxu0 %v1901_v28  ;;  %v1960_v27 = vld [vmem:[%s2482_s1 + $0x298] sm:$0xff]   ;;  %v1961_v28 = vld [vmem:[%s2482_s1 + $0x260] sm:$0xff]   ;;  %v1966_v33 = vld [vmem:[%s2482_s1 + $0x2e8] sm:$0xff]  }
  0x1e   :  { %1714 = vmatprep.subr.bf16.mxu1 %v1902_v29  ;;  %v1962_v29 = vld [vmem:[%s2482_s1 + $0x2e0] sm:$0xff]   ;;  %v1968_v35 = vld [vmem:[%s2482_s1 + $0x2a8] sm:$0xff]   ;;  %v1970_v37 = vld [vmem:[%s2482_s1 + $0x2f0] sm:$0xff]  }
  0x1f   :  { %v2001_v6 = vld [vmem:[%s2482_s1 + $0x368] sm:$0xff]  }
  0x20   :  { %1693 = vmatpush3.bf16.msra.mxu0 %v1903_v30  ;;  %v1963_v30 = vld [vmem:[%s2482_s1 + $0x220] sm:$0xff]   ;;  %v2004_v9 = vld [vmem:[%s2482_s1 + $0x3a8] sm:$0xff]  }
  0x21   :  { %1715 = vmatpush3.bf16.msra.mxu1 %v1904_v31  ;;  %1722 = vmatprep.subr.bf16.mxu0 %v1909_v38  ;;  %v1964_v31 = vld [vmem:[%s2482_s1 + $0x2a0] sm:$0xff]   ;;  %v1971_v38 = vld [vmem:[%s2482_s1 + $0x230] sm:$0xff]  }
  0x22   :  { %1744 = vmatprep.subr.bf16.mxu1 %v1910_v39  ;;  %v1972_v39 = vld [vmem:[%s2482_s1 + $0x2b0] sm:$0xff]  }
  0x23   :  { %1149 = vmatmul.mubr.bf16.vlgmr.msra.gmra.mrb[0].mxu0 %v1528_v34  ;;  %v1967_v34 = vld [vmem:[%s2482_s1 + $0x228] sm:$0xff]  }
  0x24   :  { %1189 = vmatmul.mubr.bf16.vlgmr.msra.gmra.mrb[0].mxu1 %v1530_v36  ;;  %1723 = vmatpush3.bf16.msra.mxu0 %v1911_v40  ;;  %v1969_v36 = vld [vmem:[%s2482_s1 + $0x270] sm:$0xff]   ;;  %v1973_v40 = vld [vmem:[%s2482_s1 + $0x278] sm:$0xff]  }
  0x25   :  { %1745 = vmatpush3.bf16.msra.mxu1 %v1912_v41  ;;  %1724 = vmatprep.subr.bf16.mxu0 %v1913_v42  ;;  %v1974_v41 = vld [vmem:[%s2482_s1 + $0x2f8] sm:$0xff]  }
  0x26   :  { %1746 = vmatprep.subr.bf16.mxu1 %v1914_v43  ;;  %1228 = vmatprep.mubr.bf16.mxu0 %v1533_v8  ;;  %v1975_v42 = vld [vmem:[%s2482_s1 + $0x238] sm:$0xff]   ;;  %v2003_v8 = vld [vmem:[%s2482_s1 + $0x328] sm:$0xff]  }
  0x27   :  { %1268 = vmatprep.mubr.bf16.mxu1 %v1535_v11  ;;  %v1976_v43 = vld [vmem:[%s2482_s1 + $0x2b8] sm:$0xff]   ;;  %v2006_v11 = vld [vmem:[%s2482_s1 + $0x3f0] sm:$0xff]  }
  0x28   :  { %1725 = vmatpush3.bf16.msra.mxu0 %v1915_v44  ;;  %v25_v44 = vld [vmem:[%s2483_s0 + $0x20] sm:$0xff] }
  0x29   :  { %1747 = vmatpush3.bf16.msra.mxu1 %v1916_v45  ;;  %1726 = vmatprep.subr.bf16.mxu0 %v1917_v46  ;;  %v26_v45 = vld [vmem:[%s2483_s0 + $0x28] sm:$0xff]  ;;  %v1536_v46 = vcombine.low %v25_v44, %v25_v44 }
  0x2a   :  { %1748 = vmatprep.subr.bf16.mxu1 %v1918_v47  ;;  %v1537_v47 = vcombine.high %v25_v44, %v25_v44 }
  0x2c   :  { %1727 = vmatpush3.bf16.msra.mxu0 %v1919_v48  ;;  %v1538_v48 = vcombine.low %v26_v45, %v26_v45 }
  0x2d   :  { %1749 = vmatpush3.bf16.msra.mxu1 %v1920_v49  ;;  %1728 = vmatprep.subr.bf16.mxu0 %v1921_v50  ;;  %v1539_v49 = vcombine.high %v26_v45, %v26_v45  ;;  %v1981_v50 = vld [vmem:[%s2482_s1 + $0x340] sm:$0xff]  }
  0x2e   :  { %1750 = vmatprep.subr.bf16.mxu1 %v1922_v51  ;;  %v1982_v51 = vld [vmem:[%s2482_s1 + $0x3c0] sm:$0xff]  }
  0x30   :  { %1729 = vmatpush3.bf16.msra.mxu0 %v1923_v52  ;;  %v1983_v52 = vld [vmem:[%s2482_s1 + $0x300] sm:$0xff]  }
  0x31   :  { %1751 = vmatpush3.bf16.msra.mxu1 %v1924_v53  ;;  %1730 = vmatprep.subr.bf16.mxu0 %v1925_v54  ;;  %v1984_v53 = vld [vmem:[%s2482_s1 + $0x380] sm:$0xff]   ;;  %v1985_v54 = vld [vmem:[%s2482_s1 + $0x348] sm:$0xff]  }
  0x32   :  { %1752 = vmatprep.subr.bf16.mxu1 %v1926_v55  ;;  %v1986_v55 = vld [vmem:[%s2482_s1 + $0x3c8] sm:$0xff]  }
  0x34   :  { %1731 = vmatpush3.bf16.msra.mxu0 %v1927_v56  ;;  %v1987_v56 = vld [vmem:[%s2482_s1 + $0x308] sm:$0xff]  }
  0x35   :  { %1753 = vmatpush3.bf16.msra.mxu1 %v1928_v57  ;;  %1732 = vmatprep.subr.bf16.mxu0 %v1929_v58  ;;  %v1988_v57 = vld [vmem:[%s2482_s1 + $0x388] sm:$0xff]   ;;  %v1989_v58 = vld [vmem:[%s2482_s1 + $0x350] sm:$0xff]  }
  0x36   :  { %1754 = vmatprep.subr.bf16.mxu1 %v1930_v59  ;;  %v1990_v59 = vld [vmem:[%s2482_s1 + $0x3d0] sm:$0xff]  }
  0x38   :  { %1733 = vmatpush3.bf16.msra.mxu0 %v1931_v60  ;;  %v1991_v60 = vld [vmem:[%s2482_s1 + $0x310] sm:$0xff]  }
  0x39   :  { %1755 = vmatpush3.bf16.msra.mxu1 %v1932_v61  ;;  %1734 = vmatprep.subr.bf16.mxu0 %v1933_v62  ;;  %v1992_v61 = vld [vmem:[%s2482_s1 + $0x390] sm:$0xff]   ;;  %v1993_v62 = vld [vmem:[%s2482_s1 + $0x358] sm:$0xff]  }
  0x3a   :  { %1756 = vmatprep.subr.bf16.mxu1 %v1934_v63  ;;  %v1994_v63 = vld [vmem:[%s2482_s1 + $0x3d8] sm:$0xff]  }
  0x3c   :  { %1735 = vmatpush3.bf16.msra.mxu0 %v1935_v0  ;;  %v1995_v0 = vld [vmem:[%s2482_s1 + $0x318] sm:$0xff]  }
  0x3d   :  { %1757 = vmatpush3.bf16.msra.mxu1 %v1936_v1  ;;  %1736 = vmatprep.subr.bf16.mxu0 %v1937_v2  ;;  %v1996_v1 = vld [vmem:[%s2482_s1 + $0x398] sm:$0xff]   ;;  %v1997_v2 = vld [vmem:[%s2482_s1 + $0x360] sm:$0xff]  }
  0x3e   :  { %1758 = vmatprep.subr.bf16.mxu1 %v1938_v3  ;;  %v1998_v3 = vld [vmem:[%s2482_s1 + $0x3e0] sm:$0xff]  }
  0x40   :  { %1737 = vmatpush3.bf16.msra.mxu0 %v1939_v4  ;;  %v1999_v4 = vld [vmem:[%s2482_s1 + $0x320] sm:$0xff]  }
  0x41   :  { %1759 = vmatpush3.bf16.msra.mxu1 %v1940_v5  ;;  %1766 = vmatprep.subr.bf16.mxu0 %v1945_v12  ;;  %v2000_v5 = vld [vmem:[%s2482_s1 + $0x3a0] sm:$0xff]   ;;  %v2007_v12 = vld [vmem:[%s2482_s1 + $0x330] sm:$0xff]  }
  0x42   :  { %1788 = vmatprep.subr.bf16.mxu1 %v1946_v13  ;;  %v2008_v13 = vld [vmem:[%s2482_s1 + $0x3b0] sm:$0xff]  }
  0x43   :  { %1229 = vmatmul.mubr.bf16.vlgmr.msra.gmra.mrb[4].mxu0 %v1532_v7  ;;  %v2002_v7 = vld [vmem:[%s2482_s1 + $0x3e8] sm:$0xff]  }
  0x44   :  { %1269 = vmatmul.mubr.bf16.vlgmr.msra.gmra.mrb[4].mxu1 %v1534_v10  ;;  %1767 = vmatpush3.bf16.msra.mxu0 %v1947_v14  ;;  %v2005_v10 = vld [vmem:[%s2482_s1 + $0x370] sm:$0xff]   ;;  %v2009_v14 = vld [vmem:[%s2482_s1 + $0x378] sm:$0xff]  }
  0x45   :  { %1789 = vmatpush3.bf16.msra.mxu1 %v1948_v15  ;;  %1768 = vmatprep.subr.bf16.mxu0 %v1949_v16  ;;  %v2010_v15 = vld [vmem:[%s2482_s1 + $0x3f8] sm:$0xff]  }
  0x46   :  { %1790 = vmatprep.subr.bf16.mxu1 %v1950_v17  ;;  %1308 = vmatprep.mubr.bf16.mxu0 %v1537_v47  ;;  %v2011_v16 = vld [vmem:[%s2482_s1 + $0x338] sm:$0xff]  }
  0x47   :  { %1348 = vmatprep.mubr.bf16.mxu1 %v1539_v49  ;;  %v2012_v17 = vld [vmem:[%s2482_s1 + $0x3b8] sm:$0xff]  }
  0x48   :  { %1769 = vmatpush3.bf16.msra.mxu0 %v1951_v18  ;;  %v27_v18 = vld [vmem:[%s2483_s0 + $0x30] sm:$0xff] }
  0x49   :  { %1791 = vmatpush3.bf16.msra.mxu1 %v1952_v19  ;;  %1770 = vmatprep.subr.bf16.mxu0 %v1953_v20  ;;  %v28_v19 = vld [vmem:[%s2483_s0 + $0x38] sm:$0xff]  ;;  %v1540_v20 = vcombine.low %v27_v18, %v27_v18 }
  0x4a   :  { %1792 = vmatprep.subr.bf16.mxu1 %v1954_v21  ;;  %v1541_v21 = vcombine.high %v27_v18, %v27_v18 }
  0x4c   :  { %1771 = vmatpush3.bf16.msra.mxu0 %v1955_v22  ;;  %v1542_v22 = vcombine.low %v28_v19, %v28_v19 }
  0x4d   :  { %1793 = vmatpush3.bf16.msra.mxu1 %v1956_v23  ;;  %1772 = vmatprep.subr.bf16.mxu0 %v1957_v24  ;;  %v1543_v23 = vcombine.high %v28_v19, %v28_v19  ;;  %v2021_v24 = vmov 0.0  }
  0x4e   :  { %1794 = vmatprep.subr.bf16.mxu1 %v1958_v25  ;;  %v2017_v25 = vld [vmem:[%s2484_s3] sm:$0xff]  }
  0x50   :  { %1773 = vmatpush3.bf16.msra.mxu0 %v1959_v26  ;;  %v2018_v26 = vld [vmem:[%s2484_s3 + $0x8] sm:$0xff]  }
  0x51   :  { %1795 = vmatpush3.bf16.msra.mxu1 %v1960_v27  ;;  %1774 = vmatprep.subr.bf16.mxu0 %v1961_v28  ;;  %v2019_v27 = vld [vmem:[%s2484_s3 + $0x10] sm:$0xff]   ;;  %v2020_v28 = vld [vmem:[%s2484_s3 + $0x18] sm:$0xff]  }
  0x52   :  { %1796 = vmatprep.subr.bf16.mxu1 %v1962_v29 }
  0x54   :  { %1775 = vmatpush3.bf16.msra.mxu0 %v1963_v30 }
  0x55   :  { %1797 = vmatpush3.bf16.msra.mxu1 %v1964_v31  ;;  %1776 = vmatprep.subr.bf16.mxu0 %v1965_v32  ;;  %v1527_v31 = vld [vmem:[%s2485_s2] ss:$0 sm:$0xff] }
  0x56   :  { %1798 = vmatprep.subr.bf16.mxu1 %v1966_v33 }
  0x58   :  { %1777 = vmatpush3.bf16.msra.mxu0 %v1967_v34 }
  0x59   :  { %1799 = vmatpush3.bf16.msra.mxu1 %v1968_v35  ;;  %1778 = vmatprep.subr.bf16.mxu0 %v1969_v36 }
  0x5a   :  { %1800 = vmatprep.subr.bf16.mxu1 %v1970_v37 }
  0x5c   :  { %1779 = vmatpush3.bf16.msra.mxu0 %v1971_v38 }
  0x5d   :  { %1801 = vmatpush3.bf16.msra.mxu1 %v1972_v39  ;;  %1780 = vmatprep.subr.bf16.mxu0 %v1973_v40 }
  0x5e   :  { %1802 = vmatprep.subr.bf16.mxu1 %v1974_v41 }
  0x60   :  { %1781 = vmatpush3.bf16.msra.mxu0 %v1975_v42 }
  0x61   :  { %1803 = vmatpush3.bf16.msra.mxu1 %v1976_v43  ;;  %1810 = vmatprep.subr.bf16.mxu0 %v1981_v50 }
  0x62   :  { %1832 = vmatprep.subr.bf16.mxu1 %v1982_v51 }
  0x63   :  { %1309 = vmatmul.mubr.bf16.vlgmr.msra.gmra.mrb[8].mxu0 %v1536_v46 }
  0x64   :  { %1349 = vmatmul.mubr.bf16.vlgmr.msra.gmra.mrb[8].mxu1 %v1538_v48  ;;  %1811 = vmatpush3.bf16.msra.mxu0 %v1983_v52 }
  0x65   :  { %1833 = vmatpush3.bf16.msra.mxu1 %v1984_v53  ;;  %1812 = vmatprep.subr.bf16.mxu0 %v1985_v54 }
  0x66   :  { %1834 = vmatprep.subr.bf16.mxu1 %v1986_v55  ;;  %1388 = vmatprep.mubr.bf16.mxu0 %v1541_v21 }
  0x67   :  { %1428 = vmatprep.mubr.bf16.mxu1 %v1543_v23 }
  0x68   :  { %1813 = vmatpush3.bf16.msra.mxu0 %v1987_v56 }
  0x69   :  { %1835 = vmatpush3.bf16.msra.mxu1 %v1988_v57  ;;  %1814 = vmatprep.subr.bf16.mxu0 %v1989_v58 }
  0x6a   :  { %1836 = vmatprep.subr.bf16.mxu1 %v1990_v59 }
  0x6c   :  { %1815 = vmatpush3.bf16.msra.mxu0 %v1991_v60 }
  0x6d   :  { %1837 = vmatpush3.bf16.msra.mxu1 %v1992_v61  ;;  %1816 = vmatprep.subr.bf16.mxu0 %v1993_v62 }
  0x6e   :  { %1838 = vmatprep.subr.bf16.mxu1 %v1994_v63 }
  0x70   :  { %1817 = vmatpush3.bf16.msra.mxu0 %v1995_v0 }
  0x71   :  { %1839 = vmatpush3.bf16.msra.mxu1 %v1996_v1  ;;  %1818 = vmatprep.subr.bf16.mxu0 %v1997_v2 }
  0x72   :  { %1840 = vmatprep.subr.bf16.mxu1 %v1998_v3 }
  0x74   :  { %1819 = vmatpush3.bf16.msra.mxu0 %v1999_v4 }
  0x75   :  { %1841 = vmatpush3.bf16.msra.mxu1 %v2000_v5  ;;  %1820 = vmatprep.subr.bf16.mxu0 %v2001_v6 }
  0x76   :  { %1842 = vmatprep.subr.bf16.mxu1 %v2002_v7 }
  0x78   :  { %1821 = vmatpush3.bf16.msra.mxu0 %v2003_v8 }
  0x79   :  { %1843 = vmatpush3.bf16.msra.mxu1 %v2004_v9  ;;  %1822 = vmatprep.subr.bf16.mxu0 %v2005_v10 }
  0x7a   :  { %1844 = vmatprep.subr.bf16.mxu1 %v2006_v11 }
  0x7c   :  { %1823 = vmatpush3.bf16.msra.mxu0 %v2007_v12 }
  0x7d   :  { %1845 = vmatpush3.bf16.msra.mxu1 %v2008_v13  ;;  %1824 = vmatprep.subr.bf16.mxu0 %v2009_v14 }
  0x7e   :  { %1846 = vmatprep.subr.bf16.mxu1 %v2010_v15 }
  0x80   :  { %1825 = vmatpush3.bf16.msra.mxu0 %v2011_v16  ;;  %v1672_v16 = vld [vmem:[%s2486_s4] ss:$0 sm:$0xff] }
  0x81   :  { %1847 = vmatpush3.bf16.msra.mxu1 %v2012_v17  ;;  %1859 = vmatprep.subr.bf16.mxu0 %v2021_v24 }
  0x83   :  { %1389 = vmatmul.mubr.bf16.vlgmr.msra.gmra.mrb[12].mxu0 %v1540_v20 }
  0x84   :  { %1429 = vmatmul.mubr.bf16.vlgmr.msra.gmra.mrb[12].mxu1 %v1542_v22  ;;  %1860 = vmatpush3.bf16.msra.mxu0 %v2017_v25 }
  0x85   :  { %1861 = vmatprep.subr.bf16.mxu0 %v2021_v24  ;;  %1867 = vmatprep.mubr.msk.bf16.mxu0 %vm2022_vm0, %v2021_v24 }
  0x88   :  { %1862 = vmatpush3.bf16.msra.mxu0 %v2018_v26 }
  0x89   :  { %1863 = vmatprep.subr.bf16.mxu0 %v2021_v24 }
  0x8c   :  { %1864 = vmatpush3.bf16.msra.mxu0 %v2019_v27 }
  0x8d   :  { %1865 = vmatprep.subr.bf16.mxu0 %v2021_v24 }
  0x90   :  { %1866 = vmatpush3.bf16.msra.mxu0 %v2020_v28 }
  0xf6   :  { %v1694_v29 = vpop.f32.mrb[0].mxu0 }
  0xf7   :  { %v1716_v30 = vpop.f32.mrb[0].mxu1  ;;  %v1695_v32 = vpop.f32.mrb[1].mxu0 }
  0xf8   :  { %v1717_v33 = vpop.f32.mrb[1].mxu1  ;;  %v1696_v34 = vadd.f32 %v1695_v32, %v1694_v29  ;;  %v1697_v36 = vpop.f32.mrb[2].mxu0 }
  0xf9   :  { %v1718_v35 = vadd.f32 %v1717_v33, %v1716_v30  ;;  %v1719_v37 = vpop.f32.mrb[2].mxu1  ;;  %v1698_v38 = vpop.f32.mrb[3].mxu0 }
  0xfa   :  { %v1720_v39 = vpop.f32.mrb[3].mxu1  ;;  %v1151_v40 = vadd.f32 %v1696_v34, %v1527_v31 }
  0xfc   :  { %v1191_v41 = vadd.f32 %v1718_v35, %v1151_v40 }
 0x116   :  { %v1738_v42 = vpop.f32.mrb[4].mxu0 }
 0x117   :  { %v1760_v43 = vpop.f32.mrb[4].mxu1  ;;  %v1739_v44 = vpop.f32.mrb[5].mxu0 }
 0x118   :  { %v1761_v45 = vpop.f32.mrb[5].mxu1  ;;  %v1740_v46 = vadd.f32 %v1739_v44, %v1738_v42  ;;  %v1741_v48 = vpop.f32.mrb[6].mxu0 }
 0x119   :  { %v1762_v47 = vadd.f32 %v1761_v45, %v1760_v43  ;;  %v1763_v49 = vpop.f32.mrb[6].mxu1  ;;  %v1742_v50 = vpop.f32.mrb[7].mxu0 }
 0x11a   :  { %v1764_v51 = vpop.f32.mrb[7].mxu1  ;;  %v1231_v52 = vadd.f32 %v1740_v46, %v1191_v41 }
 0x11c   :  { %v1271_v53 = vadd.f32 %v1762_v47, %v1231_v52 }
 0x136   :  { %v1782_v54 = vpop.f32.mrb[8].mxu0 }
 0x137   :  { %v1804_v55 = vpop.f32.mrb[8].mxu1  ;;  %v1783_v56 = vpop.f32.mrb[9].mxu0 }
 0x138   :  { %v1784_v57 = vadd.f32 %v1783_v56, %v1782_v54  ;;  %v1805_v58 = vpop.f32.mrb[9].mxu1  ;;  %v1785_v59 = vpop.f32.mrb[10].mxu0 }
 0x139   :  { %v1806_v60 = vadd.f32 %v1805_v58, %v1804_v55  ;;  %v1807_v61 = vpop.f32.mrb[10].mxu1  ;;  %v1786_v62 = vpop.f32.mrb[11].mxu0 }
 0x13a   :  { %v1311_v63 = vadd.f32 %v1784_v57, %v1271_v53  ;;  %v1808_v0 = vpop.f32.mrb[11].mxu1 }
 0x13c   :  { %v1351_v1 = vadd.f32 %v1806_v60, %v1311_v63 }
 0x156   :  { %v1826_v2 = vpop.f32.mrb[12].mxu0 }
 0x157   :  { %v1848_v3 = vpop.f32.mrb[12].mxu1  ;;  %v1827_v4 = vpop.f32.mrb[13].mxu0 }
 0x158   :  { %v1828_v5 = vadd.f32 %v1827_v4, %v1826_v2  ;;  %v1849_v6 = vpop.f32.mrb[13].mxu1  ;;  %v1829_v7 = vpop.f32.mrb[14].mxu0 }
 0x159   :  { %v1850_v8 = vadd.f32 %v1849_v6, %v1848_v3  ;;  %v1851_v9 = vpop.f32.mrb[14].mxu1  ;;  %v1830_v10 = vpop.f32.mrb[15].mxu0 }
 0x15a   :  { %v1391_v11 = vadd.f32 %v1828_v5, %v1351_v1  ;;  %v1852_v12 = vpop.f32.mrb[15].mxu1 }
 0x15c   :  { %v1431_v13 = vadd.f32 %v1850_v8, %v1391_v11 }
 0x15e   :  { %v1436_v14 = vmax.f32 %v1431_v13, 0.0 }
 0x160   :  { %v1437_v15 = vpack.c.bf16 %v1436_v14, %v1436_v14 }
 0x162   :  { %1868 = vmatmul.mubr.msk.bf16.vlgmr.msra.gmra.mrb[16].mxu0 %vm1477_vm1, %v1437_v15 }
 0x235   :  { %v1515_v17 = vpop.f32.mrb[16].mxu0 }
 0x236   :  { %v1516_v18 = vadd.f32 %v1672_v16, %v1515_v17  ;;  %v1869_v19 = vpop.f32.mrb[17].mxu0 }
 0x237   :  { %v1518_v20 = vpop.f32.mrb[18].mxu0 }
 0x238   :  { %1522 = vst.msk [vmem:[%s2487_s5] sm:$0xff] %vm1521_vm2, %v1516_v18  ;;  %v1870_v21 = vpop.f32.mrb[19].mxu0 }

</bundles_post_ra>
